<compile_context>
chip_gen: v7x
topology: tpu7x:2x2x1
jax: 0.10.0
libtpu: 0.0.40
codegen_flags: <defaults>
</compile_context>

<pallas_src>
import functools

import jax
import jax.numpy as jnp
from jax.experimental import pallas as pl
from jax.experimental.pallas import tpu as pltpu

VOCABS = (13, 48, 300, 538)
EMB_DIMS = (16, 16, 32, 32)
CAT_DIM = sum(EMB_DIMS)                 # 96
SEG_PAD = (16, 48, 304, 544)            # each vocab padded to a multiple of 8
SEG_OFFSETS = (0, 16, 64, 368)          # sublane-aligned segment starts
TOTAL_PAD = sum(SEG_PAD)                # 912
K_PAD = 1024                            # combined vocab axis padded to 8 * 128
TB_MAX = 1024                           # batch rows per grid step (lane multiple)


def _cd_embedder_kernel(ids_ref, tbl_ref, bias_ref, out_ref, oh_ref):
    """One batch tile.

    ids_ref  : [4, TB]       int32  raw per-vocab ids, batch on the lane axis
    tbl_ref  : [out, K_PAD]  f32    fused (embedding @ W^T) table, transposed
    bias_ref : [out, 1]      f32    linear bias (broadcast over lanes)
    out_ref  : [out, TB]     f32    transposed output tile (lane-dense stores)
    oh_ref   : [K_PAD, TB]   f32    VMEM scratch holding the multi-hot operand
    """
    tb = out_ref.shape[1]

    # Zero the pad tail once; segment rows [0, 912) are fully rewritten every
    # step and the scratch persists across grid steps.
    @pl.when(pl.program_id(0) == 0)
    def _():
        oh_ref[TOTAL_PAD:K_PAD, :] = jnp.zeros((K_PAD - TOTAL_PAD, tb), jnp.float32)

    ids = ids_ref[...]                                          # [4, tb]
    # One compare (+ cast) per vocab segment, stored at its 8-aligned offset.
    for c in range(4):
        off, size = SEG_OFFSETS[c], SEG_PAD[c]
        seg_iota = jax.lax.broadcasted_iota(jnp.int32, (size, tb), 0)
        oh_ref[off:off + size, :] = (seg_iota == ids[c:c + 1, :]).astype(jnp.float32)

    # Single MXU matmul: [out, K_PAD] @ [K_PAD, TB] -> [out, TB].  HIGHEST
    # precision keeps the f32 table from being truncated to one bf16 pass.
    acc = jnp.dot(
        tbl_ref[...], oh_ref[...],
        precision=jax.lax.Precision.HIGHEST,
        preferred_element_type=jnp.float32,
    )
    out_ref[...] = (acc + bias_ref[...]).astype(out_ref.dtype)


def build_fused_table(params):
    """Fold the linear layer into the embedding tables (offline, outside the kernel)."""
    wid, ken, lrg, sml, W, b = params           # W: [out, 96] (torch nn.Linear layout)
    Wt = W.T.astype(jnp.float32)                # [96, out]
    hp = jax.lax.Precision.HIGHEST
    col_slices = ((0, 16), (16, 32), (32, 64), (64, 96))
    pieces = []
    for tbl, (s, e), pad in zip((wid, ken, lrg, sml), col_slices, SEG_PAD):
        fused_c = jnp.dot(tbl.astype(jnp.float32), Wt[s:e], precision=hp)   # [V_c, out]
        pieces.append(jnp.pad(fused_c, ((0, pad - fused_c.shape[0]), (0, 0))))
    fused = jnp.concatenate(pieces, axis=0)                                 # [912, out]
    fused = jnp.pad(fused, ((0, K_PAD - TOTAL_PAD), (0, 0)))                # [1024, out]
    return fused.T, b.astype(jnp.float32)[:, None]       # [out, K_PAD], [out, 1]


@functools.partial(jax.jit, static_argnums=(2, 3))
def cd_embedder_pallas(x, params, output_dim, transposed_output=False):
    """x: [B, 4] integer ids.  Returns [B, output_dim] f32 (PyTorch layout), or
    [output_dim, B] when transposed_output=True (skips the wrapper-side HBM
    transpose pass so a downstream consumer can stay lane-dense)."""
    B = x.shape[0]
    fused_t, bias = build_fused_table(params)                 # [out, K_PAD], [out, 1]

    tb = min(TB_MAX, max(128, pl.cdiv(B, 128) * 128))         # lane-multiple batch tile
    b_pad = pl.cdiv(B, tb) * tb
    ids = jnp.pad(x.astype(jnp.int32), ((0, b_pad - B), (0, 0)))
    ids_t = ids.T                                             # [4, b_pad] (16 B/row; cheap)

    out_t = pl.pallas_call(
        _cd_embedder_kernel,
        out_shape=jax.ShapeDtypeStruct((output_dim, b_pad), jnp.float32),
        grid=(b_pad // tb,),
        in_specs=[
            pl.BlockSpec((4, tb), lambda i: (0, i)),                 # ids tile
            # Constant index_map: the fused table / bias stay resident in VMEM
            # and are not re-DMA'd per step.  (pl.Buffered(1) would also trim
            # the redundant second 128 KiB buffer; left at the default here.)
            pl.BlockSpec((output_dim, K_PAD), lambda i: (0, 0)),     # fused table
            pl.BlockSpec((output_dim, 1), lambda i: (0, 0)),         # bias
        ],
        out_specs=pl.BlockSpec((output_dim, tb), lambda i: (0, i)),
        scratch_shapes=[pltpu.VMEM((K_PAD, tb), jnp.float32)],       # multi-hot operand
        compiler_params=pltpu.CompilerParams(
            dimension_semantics=("parallel",),    # v7x: shard batch tiles over both TCs
            vmem_limit_bytes=48 * 1024 * 1024,    # headroom under v7x's 64 MiB VMEM
        ),
    )(ids_t, fused_t, bias)

    if transposed_output:
        return out_t[:, :B]                                   # [out, B]
    return out_t[:, :B].T                                     # [B, out] (PyTorch layout)


def init_params(output_dim, key):
    """Deterministic synthetic parameters matching nn.Embedding / nn.Linear shapes."""
    ks = jax.random.split(key, 6)
    wid = jax.random.normal(ks[0], (VOCABS[0], EMB_DIMS[0]), jnp.float32)
    ken = jax.random.normal(ks[1], (VOCABS[1], EMB_DIMS[1]), jnp.float32)
    lrg = jax.random.normal(ks[2], (VOCABS[2], EMB_DIMS[2]), jnp.float32)
    sml = jax.random.normal(ks[3], (VOCABS[3], EMB_DIMS[3]), jnp.float32)
    bound = 1.0 / (CAT_DIM ** 0.5)
    W = jax.random.uniform(ks[4], (output_dim, CAT_DIM), jnp.float32, -bound, bound)
    b = jax.random.uniform(ks[5], (output_dim,), jnp.float32, -bound, bound)
    return wid, ken, lrg, sml, W, b


def ref_forward(x, params):
    """Pure-JAX reference of the PyTorch forward (gather -> concat -> linear)."""
    wid, ken, lrg, sml, W, b = params
    feat = jnp.concatenate(
        [wid[x[:, 0]], ken[x[:, 1]], lrg[x[:, 2]], sml[x[:, 3]]], axis=1)   # [B, 96]
    return jnp.dot(feat, W.T, precision=jax.lax.Precision.HIGHEST) + b


if __name__ == "__main__":
    B = 8
    OUTPUT_DIM = 32

    key = jax.random.PRNGKey(0)
    kparams, kx = jax.random.split(key)
    params = init_params(OUTPUT_DIM, kparams)

    # Deterministic example input: one in-range index per categorical column.
    kcols = jax.random.split(kx, 4)
    x = jnp.stack(
        [jax.random.randint(kcols[i], (B,), 0, VOCABS[i], dtype=jnp.int32)
         for i in range(4)],
        axis=1,
    )  # [B, 4] int32

    out = cd_embedder_pallas(x, params, OUTPUT_DIM, False)
    out = jax.block_until_ready(out)

    ref = ref_forward(x, params)
    assert out.shape == (B, OUTPUT_DIM)
    assert jnp.allclose(out, ref, rtol=1e-3, atol=1e-3), "mismatch vs reference"

    # Transposed path (avoids the wrapper-side output transpose for fused consumers).
    out_t = jax.block_until_ready(cd_embedder_pallas(x, params, OUTPUT_DIM, True))
    assert out_t.shape == (OUTPUT_DIM, B)
    assert jnp.allclose(out_t, ref.T, rtol=1e-3, atol=1e-3), "transposed mismatch"

    print("KERNEL_OK")
</pallas_src>

<mosaic_0001>
module attributes {stable_mosaic.version = 11 : i64} {
  func.func @_cd_embedder_kernel(%arg0: i32, %arg1: memref<4x128xi32, #tpu.memory_space<vmem>>, %arg2: memref<32x1024xf32, #tpu.memory_space<vmem>>, %arg3: memref<32x1xf32, #tpu.memory_space<vmem>>, %arg4: memref<32x128xf32, #tpu.memory_space<vmem>>, %arg5: memref<1024x128xf32, #tpu.memory_space<vmem>>) attributes {dimension_semantics = [#tpu.dimension_semantics<parallel>], iteration_bounds = array<i64: 1>, scalar_prefetch = 0 : i64, scratch_operands = 1 : i64, tpu.core_type = #tpu.core_type<tc>, window_params = [{transform_indices = @transform_0, window_bounds = array<i64: 4, 128>}, {pipeline_mode = #tpu.pipeline_mode<synchronous>, transform_indices = @transform_1, window_bounds = array<i64: 32, 1024>}, {pipeline_mode = #tpu.pipeline_mode<synchronous>, transform_indices = @transform_2, window_bounds = array<i64: 32, 1>}, {transform_indices = @transform_3, window_bounds = array<i64: 32, 128>}]} {
    %c0_i32 = arith.constant 0 : i32
    %0 = arith.cmpi eq, %arg0, %c0_i32 : i32
    %1 = arith.extui %0 : i1 to i32
    %c0_i32_0 = arith.constant 0 : i32
    %2 = arith.cmpi ne, %1, %c0_i32_0 : i32
    scf.if %2 {
      %cst_15 = arith.constant 0.000000e+00 : f32
      %39 = vector.broadcast %cst_15 : f32 to vector<112x128xf32>
      %c912 = arith.constant 912 : index
      %c0_16 = arith.constant 0 : index
      %40 = vector.load %arg5[%c912, %c0_16] : memref<1024x128xf32, #tpu.memory_space<vmem>>, vector<112x128xf32>
      tpu.vector_store %arg5[%c912, %c0_16], %39 {strides = array<i32>} : memref<1024x128xf32, #tpu.memory_space<vmem>>, vector<112x128xf32>,
    } else {
    }
    %c0 = arith.constant 0 : index
    %c0_1 = arith.constant 0 : index
    %3 = vector.load %arg1[%c0, %c0_1] : memref<4x128xi32, #tpu.memory_space<vmem>>, vector<4x128xi32>
    %4 = tpu.iota {dimensions = array<i32: 0>} : vector<16x128xi32>
    %5 = vector.extract_strided_slice %3 {offsets = [0, 0], sizes = [1, 128], strides = [1, 1]} : vector<4x128xi32> to vector<1x128xi32>
    %6 = vector.broadcast %5 : vector<1x128xi32> to vector<16x128xi32>
    %7 = arith.cmpi eq, %4, %6 : vector<16x128xi32>
    %8 = arith.extui %7 : vector<16x128xi1> to vector<16x128xi32>
    %9 = arith.sitofp %8 : vector<16x128xi32> to vector<16x128xf32>
    %c0_2 = arith.constant 0 : index
    %c0_3 = arith.constant 0 : index
    %10 = vector.load %arg5[%c0_2, %c0_3] : memref<1024x128xf32, #tpu.memory_space<vmem>>, vector<16x128xf32>
    tpu.vector_store %arg5[%c0_2, %c0_3], %9 {strides = array<i32>} : memref<1024x128xf32, #tpu.memory_space<vmem>>, vector<16x128xf32>,
    %11 = tpu.iota {dimensions = array<i32: 0>} : vector<48x128xi32>
    %12 = vector.extract_strided_slice %3 {offsets = [1, 0], sizes = [1, 128], strides = [1, 1]} : vector<4x128xi32> to vector<1x128xi32>
    %13 = vector.broadcast %12 : vector<1x128xi32> to vector<48x128xi32>
    %14 = arith.cmpi eq, %11, %13 : vector<48x128xi32>
    %15 = arith.extui %14 : vector<48x128xi1> to vector<48x128xi32>
    %16 = arith.sitofp %15 : vector<48x128xi32> to vector<48x128xf32>
    %c16 = arith.constant 16 : index
    %c0_4 = arith.constant 0 : index
    %17 = vector.load %arg5[%c16, %c0_4] : memref<1024x128xf32, #tpu.memory_space<vmem>>, vector<48x128xf32>
    tpu.vector_store %arg5[%c16, %c0_4], %16 {strides = array<i32>} : memref<1024x128xf32, #tpu.memory_space<vmem>>, vector<48x128xf32>,
    %18 = tpu.iota {dimensions = array<i32: 0>} : vector<304x128xi32>
    %19 = vector.extract_strided_slice %3 {offsets = [2, 0], sizes = [1, 128], strides = [1, 1]} : vector<4x128xi32> to vector<1x128xi32>
    %20 = vector.broadcast %19 : vector<1x128xi32> to vector<304x128xi32>
    %21 = arith.cmpi eq, %18, %20 : vector<304x128xi32>
    %22 = arith.extui %21 : vector<304x128xi1> to vector<304x128xi32>
    %23 = arith.sitofp %22 : vector<304x128xi32> to vector<304x128xf32>
    %c64 = arith.constant 64 : index
    %c0_5 = arith.constant 0 : index
    %24 = vector.load %arg5[%c64, %c0_5] : memref<1024x128xf32, #tpu.memory_space<vmem>>, vector<304x128xf32>
    tpu.vector_store %arg5[%c64, %c0_5], %23 {strides = array<i32>} : memref<1024x128xf32, #tpu.memory_space<vmem>>, vector<304x128xf32>,
    %25 = tpu.iota {dimensions = array<i32: 0>} : vector<544x128xi32>
    %26 = vector.extract_strided_slice %3 {offsets = [3, 0], sizes = [1, 128], strides = [1, 1]} : vector<4x128xi32> to vector<1x128xi32>
    %27 = vector.broadcast %26 : vector<1x128xi32> to vector<544x128xi32>
    %28 = arith.cmpi eq, %25, %27 : vector<544x128xi32>
    %29 = arith.extui %28 : vector<544x128xi1> to vector<544x128xi32>
    %30 = arith.sitofp %29 : vector<544x128xi32> to vector<544x128xf32>
    %c368 = arith.constant 368 : index
    %c0_6 = arith.constant 0 : index
    %31 = vector.load %arg5[%c368, %c0_6] : memref<1024x128xf32, #tpu.memory_space<vmem>>, vector<544x128xf32>
    tpu.vector_store %arg5[%c368, %c0_6], %30 {strides = array<i32>} : memref<1024x128xf32, #tpu.memory_space<vmem>>, vector<544x128xf32>,
    %c0_7 = arith.constant 0 : index
    %c0_8 = arith.constant 0 : index
    %32 = vector.load %arg2[%c0_7, %c0_8] : memref<32x1024xf32, #tpu.memory_space<vmem>>, vector<32x1024xf32>
    %c0_9 = arith.constant 0 : index
    %c0_10 = arith.constant 0 : index
    %33 = vector.load %arg5[%c0_9, %c0_10] : memref<1024x128xf32, #tpu.memory_space<vmem>>, vector<1024x128xf32>
    %cst = arith.constant dense<0.000000e+00> : vector<32x128xf32>
    %34 = tpu.matmul %32, %33, %cst {dimension_numbers = #tpu.dot_dimension_numbers<[1], [0], [0], [1], [0, 0, 1, 1], [], []>, precision = #tpu.contract_precision<fp32>} : vector<32x1024xf32>, vector<1024x128xf32>, vector<32x128xf32> -> vector<32x128xf32>
    %c0_11 = arith.constant 0 : index
    %c0_12 = arith.constant 0 : index
    %35 = vector.load %arg3[%c0_11, %c0_12] : memref<32x1xf32, #tpu.memory_space<vmem>>, vector<32x1xf32>
    %36 = vector.broadcast %35 : vector<32x1xf32> to vector<32x128xf32>
    %37 = arith.addf %34, %36 : vector<32x128xf32>
    %c0_13 = arith.constant 0 : index
    %c0_14 = arith.constant 0 : index
    %38 = vector.load %arg4[%c0_13, %c0_14] : memref<32x128xf32, #tpu.memory_space<vmem>>, vector<32x128xf32>
    tpu.vector_store %arg4[%c0_13, %c0_14], %37 {strides = array<i32>} : memref<32x128xf32, #tpu.memory_space<vmem>>, vector<32x128xf32>,
    return
  }
  func.func @transform_0(%arg0: i32) -> (i32, i32) {
    %c0_i32 = arith.constant 0 : i32
    %c0_i32_0 = arith.constant 0 : i32
    return %c0_i32, %arg0 : i32, i32
  }
  func.func @transform_1(%arg0: i32) -> (i32, i32) {
    %c0_i32 = arith.constant 0 : i32
    %c0_i32_0 = arith.constant 0 : i32
    %c0_i32_1 = arith.constant 0 : i32
    return %c0_i32, %c0_i32_0 : i32, i32
  }
  func.func @transform_2(%arg0: i32) -> (i32, i32) {
    %c0_i32 = arith.constant 0 : i32
    %c0_i32_0 = arith.constant 0 : i32
    %c0_i32_1 = arith.constant 0 : i32
    return %c0_i32, %c0_i32_0 : i32, i32
  }
  func.func @transform_3(%arg0: i32) -> (i32, i32) {
    %c0_i32 = arith.constant 0 : i32
    %c0_i32_0 = arith.constant 0 : i32
    return %c0_i32, %arg0 : i32, i32
  }
}

</mosaic_0001>

<bundles_post_ra>
// kernel: cd_embedder_pallas.1
= control target key start
LH: loop header
LB: loop body
LE: loop exit
PB: predicated region body
PF: predicated region fallthrough
CT: control target
= control target key end

     0   :  { %v33_v0 = vlaneseq  ;;  %v10563_v25 = vmov 0.0   ;;  %v11004_v28 = vmov 0  ;;  %v10566_v29 = vmov 1.0|1.0   ;;  %s10543_s0 = inlined_call_operand.vmem [shape: s32[4,128], index: 0, kind: input, shape index: {}]   ;;  %s10544_s1 = inlined_call_operand.vmem [shape: f32[32,1024], index: 1, kind: input, shape index: {}]   ;;  %s10545_s2 = inlined_call_operand.vmem [shape: f32[32,1], index: 2, kind: input, shape index: {}]   ;;  %s10546_s3 = inlined_call_operand.vmem [shape: f32[32,128], index: 3, kind: output, shape index: {}]  }
   0x1   :  { %v6945_v1 = vld [vmem:[%s10544_s1 + $0x8] sm:$0xff]  ;;  %v6950_v2 = vld [vmem:[%s10544_s1] sm:$0xff]  ;;  %v11015_v57 = vmov 0 }
   0x2   :  { %v6952_v3 = vshrl.u32 %v33_v0, 7  ;;  %v6955_v4 = vand.u32 4294901760, %v6945_v1  ;;  %v6960_v5 = vld [vmem:[%s10544_s1 + $0x48] sm:$0xff]  ;;  %v6965_v6 = vld [vmem:[%s10543_s0] sm:$0xf]  ;;  %v6968_v7 = vand.u32 4294901760, %v6950_v2 }
   0x3   :  { %10990 = vst [vmem:[#allocation5_spill] sm:$0xff] %v6965_v6  ;;  %v6973_v8 = vld [vmem:[%s10544_s1 + $0x40] sm:$0xff]  ;;  %v6984_v12 = vand.u32 4294901760, %v6960_v5 }
   0x4   :  { %10988 = vst [vmem:[#allocation3_spill] sm:$0xff] %v6952_v3  ;;  %10989 = vst [vmem:[#allocation4_spill] sm:$0xff] %v6955_v4  ;;  %v6976_v9 = vadd.s32 64, %v6952_v3  ;;  %v6979_v10 = vadd.s32 72, %v6952_v3  ;;  %v114_v11 = vsub.s32 2, %v6952_v3  ;;  %1140 = vmatprep.mubr.f32.mxu1 %v6955_v4  ;;  %v6987_v13 = vadd.s32 8, %v6952_v3 }
   0x5   :  { %10991 = vst [vmem:[#allocation6_spill] sm:$0xff] %v6968_v7  ;;  %10994 = vst [vmem:[#allocation9_spill] sm:$0xff] %v6984_v12  ;;  %v38_v14 = vsub.s32 0, %v6952_v3  ;;  %v6991_v15 = vadd.s32 80, %v6952_v3  ;;  %v6994_v16 = vadd.s32 88, %v6952_v3  ;;  %v54_v18 = vsub.s32 1, %v6952_v3 }
   0x6   :  { %10992 = vst [vmem:[#allocation7_spill] sm:$0xff] %v6976_v9  ;;  %10993 = vst [vmem:[#allocation8_spill] sm:$0xff] %v6979_v10  ;;  %v6997_v17 = vrot.slane %v6965_v6, %v114_v11  ;;  %v7001_v19 = vadd.s32 96, %v6952_v3  ;;  %v7004_v20 = vand.u32 4294901760, %v6973_v8  ;;  %v7008_v22 = vadd.s32 104, %v6952_v3 }
   0x7   :  { %10995 = vst [vmem:[#allocation10_spill] sm:$0xff] %v6987_v13  ;;  %10996 = vst [vmem:[#allocation11_spill] sm:$0xff] %v6991_v15  ;;  %v39_v21 = vrot.slane %v6965_v6, %v38_v14  ;;  %v7011_v23 = vadd.s32 16, %v6952_v3  ;;  %v7014_v24 = vadd.s32 24, %v6952_v3  ;;  %v55_v42 = vrot.slane %v6965_v6, %v54_v18 }
   0x8   :  { %10997 = vst [vmem:[#allocation12_spill] sm:$0xff] %v6994_v16  ;;  %10998 = vst [vmem:[#allocation13_spill] sm:$0xff] %v6997_v17  ;;  %vm124_vm0 = vcmp.eq.s32.totalorder %v6976_v9, %v6997_v17  ;;  %vm125_vm1 = vcmp.eq.s32.totalorder %v6979_v10, %v6997_v17  ;;  %vm126_vm2 = vcmp.eq.s32.totalorder %v6991_v15, %v6997_v17  ;;  %v7133_v0 = vadd.s32 112, %v6952_v3 }
   0x9   :  { %10999 = vst [vmem:[#allocation14_spill] sm:$0xff] %v7001_v19  ;;  %11000 = vst [vmem:[#allocation15_spill] sm:$0xff] %v7004_v20  ;;  %vm127_vm3 = vcmp.eq.s32.totalorder %v6994_v16, %v6997_v17  ;;  %v4902_v26 = vsel %vm124_vm0, 1.0, %v10563_v25  ;;  %v4903_v27 = vsel %vm125_vm1, 1.0, %v10563_v25  ;;  %vm40_vm5 = vcmp.eq.s32.totalorder %v6952_v3, %v39_v21 }
   0xa   :  { %11001 = vst [vmem:[#allocation16_spill] sm:$0xff] %v7008_v22  ;;  %11002 = vst [vmem:[#allocation17_spill] sm:$0xff] %v7011_v23  ;;  %vm41_vm6 = vcmp.eq.s32.totalorder %v6987_v13, %v39_v21  ;;  %v7035_v30 = vsub.f32 %v4902_v26, %v4902_v26  ;;  %v7037_v31 = vsub.f32 %v4903_v27, %v4903_v27  ;;  %v4886_v32 = vsel %vm40_vm5, 1.0, %v10563_v25 }
   0xb   :  { %11003 = vst [vmem:[#allocation18_spill] sm:$0xff] %v7014_v24  ;;  %vm7026_vm4 = vmpackc.low %vm125_vm1, %vm124_vm0  ;;  %v4887_v33 = vsel %vm41_vm6, 1.0, %v10563_v25  ;;  %v7048_v35 = vsub.f32 %v4886_v32, %v4886_v32  ;;  %v4904_v37 = vsel %vm126_vm2, 1.0, %v10563_v25  ;;  %v4905_v38 = vsel %vm127_vm3, 1.0, %v10563_v25 }
   0xc   :  { %v11005_v28 = vsel %vm7026_vm4, 4294967295, %v11004_v28  ;;  %6135 = vmatprep.subr.msk.bf16.mxu0 %vm7026_vm4, %v10566_v29  ;;  %vm7041_vm7 = vmpackc.low %vm41_vm6, %vm40_vm5  ;;  %v7050_v36 = vsub.f32 %v4887_v33, %v4887_v33  ;;  %v7073_v40 = vsub.f32 %v4904_v37, %v4904_v37  ;;  %v7075_v41 = vsub.f32 %v4905_v38, %v4905_v38  ;;  %11018 = vst [vmem:[#allocation21_spill] sm:$0xff] %v7133_v0 }
   0xd   :  { %11006 = vst [vmem:[#allocation19_spill] sm:$0xff] %v11005_v28  ;;  %6137 = vmatpush3.bf16.msk.msra.mxu0 %vm7041_vm7, %v10566_v29  ;;  %vm7066_vm8 = vmpackc.low %vm127_vm3, %vm126_vm2  ;;  %vm128_vm9 = vcmp.eq.s32.totalorder %v7001_v19, %v6997_v17  ;;  %vm129_vm10 = vcmp.eq.s32.totalorder %v7008_v22, %v6997_v17  ;;  %v10554_v44 = vand.u32 4294901760, %v7035_v30  ;;  %v10553_v45 = vand.u32 4294901760, %v7037_v31 }
   0xe   :  { %6139 = vmatprep.subr.msk.bf16.mxu0 %vm7066_vm8, %v10566_v29  ;;  %v4906_v43 = vsel %vm128_vm9, 1.0, %v10563_v25  ;;  %vm56_vm11 = vcmp.eq.s32.totalorder %v6952_v3, %v55_v42  ;;  %vm57_vm12 = vcmp.eq.s32.totalorder %v6987_v13, %v55_v42  ;;  %v4907_v46 = vsel %vm129_vm10, 1.0, %v10563_v25  ;;  %vm7088_vm13 = vmpackc.low %vm129_vm10, %vm128_vm9 }
   0xf   :  { %v7092_v48 = vsub.f32 %v4906_v43, %v4906_v43  ;;  %v4888_v49 = vsel %vm56_vm11, 1.0, %v10563_v25  ;;  %v4889_v50 = vsel %vm57_vm12, 1.0, %v10563_v25  ;;  %vm7096_vm14 = vmpackc.low %vm57_vm12, %vm56_vm11  ;;  %v7100_v52 = vsub.f32 %v4907_v46, %v4907_v46 }
  0x10   :  { %vm58_vm15 = vcmp.eq.s32.totalorder %v7011_v23, %v55_v42  ;;  %v7106_v53 = vsub.f32 %v4888_v49, %v4888_v49  ;;  %v7108_v54 = vsub.f32 %v4889_v50, %v4889_v50  ;;  %vm59_vm0 = vcmp.eq.s32.totalorder %v7014_v24, %v55_v42 }
  0x11   :  { %6141 = vmatpush3.bf16.msk.msra.mxu0 %vm7096_vm14, %v10566_v29  ;;  %v4890_v55 = vsel %vm58_vm15, 1.0, %v10563_v25  ;;  %v4891_v56 = vsel %vm59_vm0, 1.0, %v10563_v25  ;;  %vm7116_vm1 = vmpackc.low %vm59_vm0, %vm58_vm15  ;;  %v1031_v59 = vsub.f32 %v7035_v30, %v10554_v44  ;;  %v1038_v60 = vsub.f32 %v7037_v31, %v10553_v45 }
  0x12   :  { %6143 = vmatprep.subr.msk.bf16.mxu0 %vm7088_vm13, %v10566_v29  ;;  %v11016_v57 = vsel %vm7116_vm1, 4294967295, %v11015_v57  ;;  %v7120_v58 = vsub.f32 %v4890_v55, %v4890_v55  ;;  %v7128_v61 = vsub.f32 %v4891_v56, %v4891_v56  ;;  %v10551_v62 = vand.u32 4294901760, %v7048_v35 }
  0x13   :  { %11017 = vst [vmem:[#allocation20_spill] sm:$0xff] %v11016_v57  ;;  %v10549_v63 = vand.u32 4294901760, %v7050_v36  ;;  %v1032_v11 = vand.u32 4294901760, %v1031_v59  ;;  %v1039_v14 = vand.u32 4294901760, %v1038_v60  ;;  %v7136_v18 = vadd.s32 120, %v6952_v3 }
  0x14   :  { %v7139_v21 = vadd.s32 32, %v6952_v3  ;;  %v919_v26 = vsub.f32 %v7048_v35, %v10551_v62  ;;  %vm130_vm2 = vcmp.eq.s32.totalorder %v7133_v0, %v6997_v17  ;;  %v7153_v32 = vadd.s32 40, %v6952_v3 }
  0x15   :  { %11019 = vst [vmem:[#allocation22_spill] sm:$0xff] %v7136_v18  ;;  %6145 = vmatpush3.bf16.msk.msra.mxu0 %vm7116_vm1, %v10566_v29  ;;  %v926_v27 = vsub.f32 %v7050_v36, %v10549_v63  ;;  %v6166_v33 = vpack.c.bf16 %v1039_v14, %v1032_v11  ;;  %vm131_vm3 = vcmp.eq.s32.totalorder %v7136_v18, %v6997_v17  ;;  %v4908_v37 = vsel %vm130_vm2, 1.0, %v10563_v25 }
  0x16   :  { %11020 = vst [vmem:[#allocation23_spill] sm:$0xff] %v7139_v21  ;;  %11021 = vst [vmem:[#allocation24_spill] sm:$0xff] %v7153_v32  ;;  %vm60_vm5 = vcmp.eq.s32.totalorder %v7139_v21, %v55_v42  ;;  %v920_v38 = vand.u32 4294901760, %v919_v26  ;;  %v4909_v46 = vsel %vm131_vm3, 1.0, %v10563_v25  ;;  %v11022_v49 = vmov 0 }
  0x17   :  { %v927_v43 = vand.u32 4294901760, %v926_v27  ;;  %vm7160_vm6 = vmpackc.low %vm131_vm3, %vm130_vm2  ;;  %v7164_v50 = vsub.f32 %v4908_v37, %v4908_v37  ;;  %6167 = vmatprep.subr.bf16.mxu1 %v6166_v33  ;;  %v7169_v55 = vsub.f32 %v4909_v46, %v4909_v46  ;;  %vm61_vm9 = vcmp.eq.s32.totalorder %v7153_v32, %v55_v42 }
  0x18   :  { %v11023_v49 = vsel %vm7160_vm6, 4294967295, %v11022_v49  ;;  %6147 = vmatprep.subr.msk.bf16.mxu0 %vm7160_vm6, %v10566_v29  ;;  %v4892_v56 = vsel %vm60_vm5, 1.0, %v10563_v25  ;;  %v10547_v59 = vand.u32 4294901760, %v7073_v40  ;;  %v4893_v11 = vsel %vm61_vm9, 1.0, %v10563_v25  ;;  %vm7175_vm10 = vmpackc.low %vm61_vm9, %vm60_vm5 }
  0x19   :  { %11024 = vst [vmem:[#allocation25_spill] sm:$0xff] %v11023_v49  ;;  %v6168_v60 = vpack.c.bf16 %v927_v43, %v920_v38  ;;  %v11025_v14 = vmov 0  ;;  %v7179_v26 = vsub.f32 %v4892_v56, %v4892_v56  ;;  %v10548_v27 = vand.u32 4294901760, %v7075_v41  ;;  %6149 = vmatpush3.bf16.msk.msra.mxu0 %vm7175_vm10, %v10566_v29 }
  0x1a   :  { %v11026_v14 = vsel %vm7175_vm10, 4294967295, %v11025_v14  ;;  %v7185_v42 = vsub.f32 %v4893_v11, %v4893_v11  ;;  %v1045_v33 = vsub.f32 %v7073_v40, %v10547_v59  ;;  %v10550_v37 = vand.u32 4294901760, %v7106_v53 }
  0x1b   :  { %11027 = vst [vmem:[#allocation26_spill] sm:$0xff] %v11026_v14  ;;  %v10552_v38 = vand.u32 4294901760, %v7108_v54  ;;  %6169 = vmatpush3.bf16.msra.mxu1 %v6168_v60  ;;  %v1052_v43 = vsub.f32 %v7075_v41, %v10548_v27  ;;  %v7196_v46 = vadd.s32 128, %v6952_v3  ;;  %v7199_v56 = vadd.s32 136, %v6952_v3 }
  0x1c   :  { %vm116_vm11 = vcmp.eq.s32.totalorder %v6952_v3, %v6997_v17  ;;  %v1046_v11 = vand.u32 4294901760, %v1045_v33  ;;  %v933_v59 = vsub.f32 %v7106_v53, %v10550_v37  ;;  %vm117_vm12 = vcmp.eq.s32.totalorder %v6987_v13, %v6997_v17 }
  0x1d   :  { %11028 = vst [vmem:[#allocation27_spill] sm:$0xff] %v7196_v46  ;;  %11029 = vst [vmem:[#allocation28_spill] sm:$0xff] %v7199_v56  ;;  %v940_v60 = vsub.f32 %v7108_v54, %v10552_v38  ;;  %v1053_v27 = vand.u32 4294901760, %v1052_v43  ;;  %vm132_vm15 = vcmp.eq.s32.totalorder %v7196_v46, %v6997_v17  ;;  %vm133_vm0 = vcmp.eq.s32.totalorder %v7199_v56, %v6997_v17 }
  0x1e   :  { %v4894_v33 = vsel %vm116_vm11, 1.0, %v10563_v25  ;;  %vm7216_vm2 = vmpackc.low %vm117_vm12, %vm116_vm11  ;;  %v11030_v63 = vmov 0  ;;  %v934_v37 = vand.u32 4294901760, %v933_v59  ;;  %v4910_v38 = vsel %vm132_vm15, 1.0, %v10563_v25 }
  0x1f   :  { %v11031_v63 = vsel %vm7216_vm2, 4294967295, %v11030_v63  ;;  %v941_v62 = vand.u32 4294901760, %v940_v60  ;;  %v4911_v45 = vsel %vm133_vm0, 1.0, %v10563_v25  ;;  %vm7222_vm3 = vmpackc.low %vm133_vm0, %vm132_vm15  ;;  %v11033_v43 = vmov 0 }
  0x20   :  { %11032 = vst [vmem:[#allocation29_spill] sm:$0xff] %v11031_v63  ;;  %v11034_v43 = vsel %vm7222_vm3, 4294967295, %v11033_v43  ;;  %v6170_v44 = vpack.c.bf16 %v1053_v27, %v1046_v11  ;;  %6151 = vmatprep.subr.msk.bf16.mxu0 %vm7222_vm3, %v10566_v29  ;;  %v7229_v13 = vsub.f32 %v4910_v38, %v4910_v38  ;;  %v7231_v56 = vsub.f32 %v4911_v45, %v4911_v45 }
  0x21   :  { %11035 = vst [vmem:[#allocation30_spill] sm:$0xff] %v11034_v43  ;;  %v4895_v59 = vsel %vm117_vm12, 1.0, %v10563_v25  ;;  %v6172_v60 = vpack.c.bf16 %v941_v62, %v934_v37  ;;  %6153 = vmatpush3.bf16.msk.msra.mxu0 %vm7216_vm2, %v10566_v29  ;;  %v7237_v46 = vsub.f32 %v4894_v33, %v4894_v33  ;;  %v10565_v27 = vand.u32 4294901760, %v7092_v48 }
  0x22   :  { %v7239_v18 = vsub.f32 %v4895_v59, %v4895_v59  ;;  %6171 = vmatprep.subr.bf16.mxu1 %v6170_v44  ;;  %v10571_v11 = vand.u32 4294901760, %v7100_v52  ;;  %v10570_v38 = vand.u32 4294901760, %v7120_v58  ;;  %v10572_v45 = vand.u32 4294901760, %v7128_v61 }
  0x23   :  { %v7246_v25 = vadd.s32 144, %v6952_v3  ;;  %6173 = vmatpush3.bf16.msra.mxu1 %v6172_v60  ;;  %v1059_v62 = vsub.f32 %v7092_v48, %v10565_v27  ;;  %v7252_v37 = vadd.s32 152, %v6952_v3  ;;  %vm118_vm5 = vcmp.eq.s32.totalorder %v7011_v23, %v6997_v17 }
  0x24   :  { %vm119_vm9 = vcmp.eq.s32.totalorder %v7014_v24, %v6997_v17  ;;  %v1066_v44 = vsub.f32 %v7100_v52, %v10571_v11  ;;  %v947_v33 = vsub.f32 %v7120_v58, %v10570_v38  ;;  %v954_v59 = vsub.f32 %v7128_v61, %v10572_v45 }
  0x25   :  { %11036 = vst [vmem:[#allocation31_spill] sm:$0xff] %v7246_v25  ;;  %11037 = vst [vmem:[#allocation32_spill] sm:$0xff] %v7252_v37  ;;  %vm134_vm11 = vcmp.eq.s32.totalorder %v7246_v25, %v6997_v17  ;;  %v1060_v60 = vand.u32 4294901760, %v1059_v62  ;;  %vm135_vm12 = vcmp.eq.s32.totalorder %v7252_v37, %v6997_v17  ;;  %v11038_v27 = vmov 0.0  }
  0x26   :  { %v4912_v29 = vsel %vm134_vm11, 1.0, %v11038_v27  ;;  %v4896_v0 = vsel %vm118_vm5, 1.0, %v11038_v27  ;;  %vm7276_vm15 = vmpackc.low %vm119_vm9, %vm118_vm5  ;;  %v11039_v38 = vmov 0  ;;  %v1067_v11 = vand.u32 4294901760, %v1066_v44 }
  0x27   :  { %v11040_v38 = vsel %vm7276_vm15, 4294967295, %v11039_v38  ;;  %v948_v45 = vand.u32 4294901760, %v947_v33  ;;  %v955_v22 = vand.u32 4294901760, %v954_v59  ;;  %v4913_v25 = vsel %vm135_vm12, 1.0, %v11038_v27  ;;  %vm7281_vm0 = vmpackc.low %vm135_vm12, %vm134_vm11 }
  0x28   :  { %11041 = vst [vmem:[#allocation33_spill] sm:$0xff] %v11040_v38  ;;  %v11042_v62 = vmov 0  ;;  %v11045_v37 = vmov 1.0|1.0   ;;  %v7288_v19 = vsub.f32 %v4912_v29, %v4912_v29  ;;  %v7290_v16 = vsub.f32 %v4913_v25, %v4913_v25 }
  0x29   :  { %v11043_v62 = vsel %vm7281_vm0, 4294967295, %v11042_v62  ;;  %6155 = vmatprep.subr.msk.bf16.mxu0 %vm7281_vm0, %v11045_v37  ;;  %v4897_v44 = vsel %vm119_vm9, 1.0, %v11038_v27  ;;  %v7296_v33 = vsub.f32 %v4896_v0, %v4896_v0  ;;  %v6174_v59 = vpack.c.bf16 %v1067_v11, %v1060_v60 }
  0x2a   :  { %11044 = vst [vmem:[#allocation34_spill] sm:$0xff] %v11043_v62  ;;  %v6176_v15 = vpack.c.bf16 %v955_v22, %v948_v45  ;;  %6157 = vmatpush3.bf16.msk.msra.mxu0 %vm7276_vm15, %v11045_v37  ;;  %v7301_v10 = vsub.f32 %v4897_v44, %v4897_v44  ;;  %v10596_v29 = vand.u32 4294901760, %v7164_v50  ;;  %v10595_v25 = vand.u32 4294901760, %v7169_v55 }
  0x2b   :  { %v10598_v9 = vand.u32 4294901760, %v7179_v26  ;;  %v10597_v62 = vand.u32 4294901760, %v7185_v42  ;;  %v7308_v24 = vadd.s32 160, %v6952_v3  ;;  %6175 = vmatprep.subr.bf16.mxu1 %v6174_v59  ;;  %v7314_v0 = vadd.s32 168, %v6952_v3 }
  0x2c   :  { %v1073_v22 = vsub.f32 %v7164_v50, %v10596_v29  ;;  %vm120_vm5 = vcmp.eq.s32.totalorder %v7139_v21, %v6997_v17  ;;  %vm121_vm9 = vcmp.eq.s32.totalorder %v7153_v32, %v6997_v17  ;;  %6177 = vmatpush3.bf16.msra.mxu1 %v6176_v15  ;;  %v1080_v11 = vsub.f32 %v7169_v55, %v10595_v25 }
  0x2d   :  { %11046 = vst [vmem:[#allocation35_spill] sm:$0xff] %v7308_v24  ;;  %11047 = vst [vmem:[#allocation36_spill] sm:$0xff] %v7314_v0  ;;  %v961_v45 = vsub.f32 %v7179_v26, %v10598_v9  ;;  %v968_v60 = vsub.f32 %v7185_v42, %v10597_v62  ;;  %vm136_vm11 = vcmp.eq.s32.totalorder %v7308_v24, %v6997_v17  ;;  %v4898_v59 = vsel %vm120_vm5, 1.0, %v11038_v27 }
  0x2e   :  { %v1074_v44 = vand.u32 4294901760, %v1073_v22  ;;  %vm137_vm12 = vcmp.eq.s32.totalorder %v7314_v0, %v6997_v17  ;;  %v4914_v15 = vsel %vm136_vm11, 1.0, %v11038_v27  ;;  %vm7338_vm15 = vmpackc.low %vm121_vm9, %vm120_vm5  ;;  %v11048_v25 = vmov 0 }
  0x2f   :  { %v11049_v25 = vsel %vm7338_vm15, 4294967295, %v11048_v25  ;;  %v1081_v29 = vand.u32 4294901760, %v1080_v11  ;;  %v962_v62 = vand.u32 4294901760, %v961_v45  ;;  %v969_v9 = vand.u32 4294901760, %v968_v60  ;;  %vm7343_vm0 = vmpackc.low %vm137_vm12, %vm136_vm11 }
  0x30   :  { %11050 = vst [vmem:[#allocation37_spill] sm:$0xff] %v11049_v25  ;;  %v4915_v24 = vsel %vm137_vm12, 1.0, %v11038_v27  ;;  %v11051_v22 = vmov 0  ;;  %6159 = vmatprep.subr.msk.bf16.mxu0 %vm7343_vm0, %v11045_v37  ;;  %v7350_v0 = vsub.f32 %v4914_v15, %v4914_v15  ;;  %v4899_v11 = vsel %vm121_vm9, 1.0, %v11038_v27 }
  0x31   :  { %v11052_v22 = vsel %vm7343_vm0, 4294967295, %v11051_v22  ;;  %v7352_v38 = vsub.f32 %v4915_v24, %v4915_v24  ;;  %v7358_v45 = vsub.f32 %v4898_v59, %v4898_v59  ;;  %v6178_v60 = vpack.c.bf16 %v1081_v29, %v1074_v44  ;;  %6161 = vmatpush3.bf16.msk.msra.mxu0 %vm7338_vm15, %v11045_v37 }
  0x32   :  { %11053 = vst [vmem:[#allocation38_spill] sm:$0xff] %v11052_v22  ;;  %v6180_v23 = vpack.c.bf16 %v969_v9, %v962_v62  ;;  %v7363_v63 = vsub.f32 %v4899_v11, %v4899_v11  ;;  %v10617_v15 = vand.u32 4294901760, %v7229_v13  ;;  %v10618_v24 = vand.u32 4294901760, %v7231_v56 }
  0x33   :  { %v10623_v22 = vand.u32 4294901760, %v7237_v46  ;;  %v10626_v43 = vand.u32 4294901760, %v7239_v18  ;;  %v7370_v14 = vadd.s32 176, %v6952_v3  ;;  %6179 = vmatprep.subr.bf16.mxu1 %v6178_v60  ;;  %v7376_v62 = vadd.s32 184, %v6952_v3 }
  0x34   :  { %v1087_v9 = vsub.f32 %v7229_v13, %v10617_v15  ;;  %v7379_v29 = vadd.s32 48, %v6952_v3  ;;  %v7382_v44 = vadd.s32 56, %v6952_v3  ;;  %6181 = vmatpush3.bf16.msra.mxu1 %v6180_v23  ;;  %v1094_v59 = vsub.f32 %v7231_v56, %v10618_v24 }
  0x35   :  { %11054 = vst [vmem:[#allocation39_spill] sm:$0xff] %v7370_v14  ;;  %11055 = vst [vmem:[#allocation40_spill] sm:$0xff] %v7376_v62  ;;  %v975_v11 = vsub.f32 %v7237_v46, %v10623_v22  ;;  %v982_v60 = vsub.f32 %v7239_v18, %v10626_v43  ;;  %vm138_vm5 = vcmp.eq.s32.totalorder %v7370_v14, %v6997_v17  ;;  %v11058_v21 = vmov 0 }
  0x36   :  { %11056 = vst [vmem:[#allocation41_spill] sm:$0xff] %v7379_v29  ;;  %11057 = vst [vmem:[#allocation42_spill] sm:$0xff] %v7382_v44  ;;  %v1088_v15 = vand.u32 4294901760, %v1087_v9  ;;  %vm139_vm9 = vcmp.eq.s32.totalorder %v7376_v62, %v6997_v17  ;;  %v4916_v23 = vsel %vm138_vm5, 1.0, %v11038_v27  ;;  %vm122_vm11 = vcmp.eq.s32.totalorder %v7379_v29, %v6997_v17 }
  0x37   :  { %v1095_v24 = vand.u32 4294901760, %v1094_v59  ;;  %v976_v25 = vand.u32 4294901760, %v975_v11  ;;  %v983_v32 = vand.u32 4294901760, %v982_v60  ;;  %v4917_v22 = vsel %vm139_vm9, 1.0, %v11038_v27  ;;  %vm7401_vm12 = vmpackc.low %vm139_vm9, %vm138_vm5 }
  0x38   :  { %v11059_v21 = vsel %vm7401_vm12, 4294967295, %v11058_v21  ;;  %6163 = vmatprep.subr.msk.bf16.mxu0 %vm7401_vm12, %v11045_v37  ;;  %v7408_v9 = vsub.f32 %v4916_v23, %v4916_v23  ;;  %v7410_v43 = vsub.f32 %v4917_v22, %v4917_v22  ;;  %vm123_vm15 = vcmp.eq.s32.totalorder %v7382_v44, %v6997_v17 }
  0x39   :  { %11060 = vst [vmem:[#allocation43_spill] sm:$0xff] %v11059_v21  ;;  %v4900_v59 = vsel %vm122_vm11, 1.0, %v11038_v27  ;;  %v6182_v11 = vpack.c.bf16 %v1095_v24, %v1088_v15  ;;  %v6184_v60 = vpack.c.bf16 %v983_v32, %v976_v25  ;;  %v4901_v62 = vsel %vm123_vm15, 1.0, %v11038_v27  ;;  %vm7416_vm5 = vmpackc.low %vm123_vm15, %vm122_vm11 }
  0x3a   :  { %11061 = vst [vmem:[#allocation44_spill] sm:$0xff] %v7408_v9  ;;  %11062 = vst [vmem:[#allocation45_spill] sm:$0xff] %v7410_v43  ;;  %v11063_v14 = vmov 0  ;;  %v7420_v29 = vsub.f32 %v4900_v59, %v4900_v59  ;;  %6165 = vmatpush3.bf16.msk.msra.mxu0 %vm7416_vm5, %v11045_v37  ;;  %v7425_v22 = vsub.f32 %v4901_v62, %v4901_v62  ;;  %v10639_v23 = vand.u32 4294901760, %v7288_v19 }
  0x3b   :  { %v11064_v14 = vsel %vm7416_vm5, 4294967295, %v11063_v14  ;;  %v10644_v21 = vand.u32 4294901760, %v7290_v16  ;;  %v10648_v32 = vand.u32 4294901760, %v7296_v33  ;;  %6183 = vmatprep.subr.bf16.mxu1 %v6182_v11  ;;  %v7433_v15 = vsub.f32 %v6945_v1, %v6955_v4 }
  0x3c   :  { %11065 = vst [vmem:[#allocation46_spill] sm:$0xff] %v11064_v14  ;;  %v6198_v24 = vpack.c.bf16 %v7037_v31, %v7035_v30  ;;  %v7439_v62 = vsub.f32 %v6950_v2, %v6968_v7  ;;  %6185 = vmatpush3.bf16.msra.mxu1 %v6184_v60  ;;  %v1101_v59 = vsub.f32 %v7288_v19, %v10639_v23  ;;  %v11068_v4 = vand.u32 4294901760, %v7301_v10 }
  0x3d   :  { %11066 = vst [vmem:[#allocation47_spill] sm:$0xff] %v7433_v15  ;;  %v1108_v11 = vsub.f32 %v7290_v16, %v10644_v21  ;;  %v989_v1 = vsub.f32 %v7296_v33, %v10648_v32  ;;  %v6200_v25 = vpack.c.bf16 %v7050_v36, %v7048_v35  ;;  %v10653_v60 = vand.u32 4294901760, %v7433_v15 }
  0x3e   :  { %11067 = vst [vmem:[#allocation48_spill] sm:$0xff] %v7439_v62  ;;  %v996_v2 = vsub.f32 %v7301_v10, %v11068_v4  ;;  %6199 = vmatprep.subr.bf16.mxu0 %v6198_v24  ;;  %v10656_v23 = vand.u32 4294901760, %v7439_v62  ;;  %v10663_v14 = vand.u32 4294901760, %v7350_v0  ;;  %v1102_v17 = vand.u32 4294901760, %v1101_v59 }
  0x3f   :  { %v1109_v21 = vand.u32 4294901760, %v1108_v11  ;;  %v990_v27 = vand.u32 4294901760, %v989_v1  ;;  %v10660_v44 = vand.u32 4294901760, %v7352_v38  ;;  %v857_v49 = vsub.f32 %v7433_v15, %v10653_v60 }
  0x40   :  { %v997_v32 = vand.u32 4294901760, %v996_v2  ;;  %v863_v4 = vsub.f32 %v7439_v62, %v10656_v23  ;;  %v1115_v24 = vsub.f32 %v7350_v0, %v10663_v14  ;;  %v10662_v11 = vand.u32 4294901760, %v7358_v45  ;;  %v591_v2 = vld [vmem:[%s10544_s1 + $0x88] sm:$0xff] }
  0x41   :  { %v6186_v57 = vpack.c.bf16 %v1109_v21, %v1102_v17  ;;  %v1122_v59 = vsub.f32 %v7352_v38, %v10660_v44  ;;  %v10661_v1 = vand.u32 4294901760, %v7363_v63  ;;  %v858_v15 = vand.u32 4294901760, %v857_v49 }
  0x42   :  { %v6188_v60 = vpack.c.bf16 %v997_v32, %v990_v27  ;;  %v864_v23 = vand.u32 4294901760, %v863_v4  ;;  %v1116_v62 = vand.u32 4294901760, %v1115_v24  ;;  %v1003_v17 = vsub.f32 %v7358_v45, %v10662_v11  ;;  %v590_v4 = vld [vmem:[%s10544_s1 + $0x80] sm:$0xff] }
  0x43   :  { %6187 = vmatprep.subr.bf16.mxu1 %v6186_v57  ;;  %v1123_v6 = vand.u32 4294901760, %v1122_v59  ;;  %v1010_v21 = vsub.f32 %v7363_v63, %v10661_v1  ;;  %v6202_v44 = vpack.c.bf16 %v7075_v41, %v7073_v40  ;;  %859 = vmatprep.mubr.f32.mxu0 %v858_v15  ;;  %v10664_v27 = vand.u32 4294901760, %v7408_v9 }
  0x44   :  { %6189 = vmatpush3.bf16.msra.mxu1 %v6188_v60  ;;  %v10667_v49 = vand.u32 4294901760, %v7410_v43  ;;  %v10671_v57 = vand.u32 4294901760, %v7420_v29  ;;  %v7487_v32 = vand.u32 4294901760, %v591_v2  ;;  %865 = vmatmul.mubr.f32.vlgmr.msra.gmra.mrb[0].mxu0 %v864_v23  ;;  %v1004_v59 = vand.u32 4294901760, %v1003_v17 }
  0x45   :  { %v6190_v24 = vpack.c.bf16 %v1123_v6, %v1116_v62  ;;  %v1011_v1 = vand.u32 4294901760, %v1010_v21  ;;  %v10670_v11 = vand.u32 4294901760, %v7425_v22  ;;  %6201 = vmatpush3.bf16.msra.mxu0 %v6200_v25  ;;  %v6204_v15 = vpack.c.bf16 %v7108_v54, %v7106_v53 }
  0x46   :  { %11069 = vst [vmem:[#allocation49_spill] sm:$0xff] %v7487_v32  ;;  %v1129_v60 = vsub.f32 %v7408_v9, %v10664_v27  ;;  %v1136_v14 = vsub.f32 %v7410_v43, %v10667_v49  ;;  %v1017_v6 = vsub.f32 %v7420_v29, %v10671_v57  ;;  %6203 = vmatprep.subr.bf16.mxu0 %v6202_v44  ;;  %v7509_v17 = vand.u32 4294901760, %v590_v4 }
  0x47   :  { %6191 = vmatprep.subr.bf16.mxu1 %v6190_v24  ;;  %v6192_v23 = vpack.c.bf16 %v1011_v1, %v1004_v59  ;;  %v1024_v25 = vsub.f32 %v7425_v22, %v10670_v11  ;;  %v6206_v62 = vpack.c.bf16 %v7100_v52, %v7092_v48  ;;  %v6208_v1 = vpack.c.bf16 %v7128_v61, %v7120_v58  ;;  %v598_v59 = vld [vmem:[%s10544_s1 + $0xc0] sm:$0xff] }
  0x48   :  { %11070 = vst [vmem:[#allocation50_spill] sm:$0xff] %v7509_v17  ;;  %v1130_v21 = vand.u32 4294901760, %v1129_v60  ;;  %v1137_v27 = vand.u32 4294901760, %v1136_v14  ;;  %v1018_v9 = vand.u32 4294901760, %v1017_v6  ;;  %v7515_v44 = vsub.f32 %v6960_v5, %v6984_v12  ;;  %v599_v14 = vld [vmem:[%s10544_s1 + $0xc8] sm:$0xff] }
  0x49   :  { %6193 = vmatpush3.bf16.msra.mxu1 %v6192_v23  ;;  %v1025_v49 = vand.u32 4294901760, %v1024_v25  ;;  %6205 = vmatpush3.bf16.msra.mxu0 %v6204_v15  ;;  %v7519_v24 = vsub.f32 %v6973_v8, %v7004_v20  ;;  %v6210_v15 = vpack.c.bf16 %v7169_v55, %v7164_v50  ;;  %v7530_v5 = vsub.f32 %v591_v2, %v7487_v32 }
  0x4a   :  { %v6194_v43 = vpack.c.bf16 %v1137_v27, %v1130_v21  ;;  %6207 = vmatprep.subr.bf16.mxu0 %v6206_v62  ;;  %v7533_v60 = vsub.f32 %v590_v4, %v7509_v17  ;;  %v10673_v8 = vand.u32 4294901760, %v7515_v44  ;;  %v7541_v25 = vand.u32 4294901760, %v598_v59 }
  0x4b   :  { %v6196_v27 = vpack.c.bf16 %v1025_v49, %v1018_v9  ;;  %v10672_v6 = vand.u32 4294901760, %v7519_v24  ;;  %v10676_v23 = vand.u32 4294901760, %v7530_v5  ;;  %v7539_v49 = vand.u32 4294901760, %v599_v14 }
  0x4c   :  { %6195 = vmatprep.subr.bf16.mxu1 %v6194_v43  ;;  %v10675_v9 = vand.u32 4294901760, %v7533_v60  ;;  %11072 = vst [vmem:[#allocation52_spill] sm:$0xff] %v7541_v25  ;;  %v6212_v43 = vpack.c.bf16 %v7185_v42, %v7179_v26  ;;  %v872_v2 = vsub.f32 %v7515_v44, %v10673_v8  ;;  %v6214_v62 = vpack.c.bf16 %v7231_v56, %v7229_v13 }
  0x4d   :  { %6197 = vmatpush3.bf16.msra.mxu1 %v6196_v27  ;;  %11071 = vst [vmem:[#allocation51_spill] sm:$0xff] %v7539_v49  ;;  %6209 = vmatpush3.bf16.msra.mxu0 %v6208_v1  ;;  %v878_v4 = vsub.f32 %v7519_v24, %v10672_v6  ;;  %v887_v21 = vsub.f32 %v7530_v5, %v10676_v23  ;;  %v11073_v6 = vand.u32 4294901760, %v7035_v30  ;;  %v11074_v8 = vand.u32 4294901760, %v7037_v31 }
  0x4e   :  { %6231 = vmatprep.subr.msk.bf16.mxu1 %vm7026_vm4, %v11045_v37  ;;  %6211 = vmatprep.subr.bf16.mxu0 %v6210_v15  ;;  %v7560_v1 = vsub.f32 %v599_v14, %v7539_v49  ;;  %v7563_v27 = vsub.f32 %v598_v59, %v7541_v25  ;;  %v873_v11 = vand.u32 4294901760, %v872_v2  ;;  %v893_v15 = vsub.f32 %v7533_v60, %v10675_v9 }
  0x4f   :  { %v879_v57 = vand.u32 4294901760, %v878_v4  ;;  %v7573_v28 = vpack.c.bf16 %v11074_v8, %v11073_v6  ;;  %v6216_v14 = vpack.c.bf16 %v7239_v18, %v7237_v46  ;;  %v888_v59 = vand.u32 4294901760, %v887_v21 }
  0x50   :  { %1142 = vmatmul.mubr.f32.vlgmr.msra.gmra.mrb[0].mxu1 %v6968_v7  ;;  %v10682_v2 = vand.u32 4294901760, %v7560_v1  ;;  %v11075_v30 = vand.u32 4294901760, %v7048_v35  ;;  %v11076_v31 = vand.u32 4294901760, %v7050_v36  ;;  %v11077_v6 = vand.u32 4294901760, %v7073_v40  ;;  %874 = vmatprep.mubr.f32.mxu0 %v873_v11 }
  0x51   :  { %6233 = vmatpush3.bf16.msk.msra.mxu1 %vm7041_vm7, %v11045_v37  ;;  %1147 = vmatprep.mubr.f32.mxu1 %v6984_v12  ;;  %v11078_v21 = vand.u32 4294901760, %v7075_v41  ;;  %v11079_v23 = vand.u32 4294901760, %v7106_v53  ;;  %v6218_v35 = vpack.c.bf16 %v7290_v16, %v7288_v19  ;;  %v11081_v40 = vand.u32 4294901760, %v7092_v48 }
  0x52   :  { %6213 = vmatpush3.bf16.msra.mxu0 %v6212_v43  ;;  %6235 = vmatprep.subr.msk.bf16.mxu1 %vm7066_vm8, %v11045_v37  ;;  %v7590_v8 = vpack.c.bf16 %v11076_v31, %v11075_v30  ;;  %v11080_v43 = vand.u32 4294901760, %v7108_v54  ;;  %v902_v36 = vsub.f32 %v7560_v1, %v10682_v2  ;;  %v11082_v41 = vand.u32 4294901760, %v7100_v52 }
  0x53   :  { %v7596_v9 = vpack.c.bf16 %v11078_v21, %v11077_v6  ;;  %6215 = vmatprep.subr.bf16.mxu0 %v6214_v62  ;;  %880 = vmatmul.mubr.f32.gmra.mrb[2].mxu0 %v879_v57  ;;  %v894_v53 = vand.u32 4294901760, %v893_v15  ;;  %v11083_v54 = vand.u32 4294901760, %v7563_v27  ;;  %v11084_v11 = vand.u32 4294901760, %v7120_v58 }
  0x54   :  { %v7602_v4 = vpack.c.bf16 %v11080_v43, %v11079_v23  ;;  %v7613_v30 = vpack.c.bf16 %v11082_v41, %v11081_v40  ;;  %1149 = vmatmul.mubr.f32.gmra.mrb[2].mxu1 %v7004_v20  ;;  %v11085_v62 = vand.u32 4294901760, %v7128_v61  ;;  %v11086_v48 = vand.u32 4294901760, %v7179_v26  ;;  %889 = vmatprep.mubr.f32.mxu0 %v888_v59  ;;  %v11094_v41 = vld [vmem:[#allocation23_spill] sm:$0xff] }
  0x55   :  { %v908_v23 = vsub.f32 %v7563_v27, %v11083_v54  ;;  %v11087_v52 = vand.u32 4294901760, %v7185_v42  ;;  %v300_v57 = vsub.s32 3, %v6952_v3  ;;  %6237 = vmatpush3.bf16.msk.msra.mxu1 %vm7096_vm14, %v11045_v37  ;;  %v903_v15 = vand.u32 4294901760, %v902_v36  ;;  %1154 = vmatprep.mubr.f32.mxu1 %v7487_v32  ;;  %v11088_v42 = vld [vmem:[#allocation5_spill] sm:$0xff] }
  0x56   :  { %v7623_v31 = vpack.c.bf16 %v11085_v62, %v11084_v11  ;;  %6217 = vmatpush3.bf16.msra.mxu0 %v6216_v14  ;;  %6239 = vmatprep.subr.msk.bf16.mxu1 %vm7088_vm13, %v11045_v37  ;;  %v6220_v58 = vpack.c.bf16 %v7301_v10, %v7296_v33  ;;  %v6222_v61 = vpack.c.bf16 %v7352_v38, %v7350_v0  ;;  %v11093_v36 = vld [vmem:[#allocation45_spill] sm:$0xff]  ;;  %v11096_v54 = vmov 0  ;;  %v11100_v11 = vld [vmem:[#allocation47_spill] sm:$0xff]  ;;  %v11101_v62 = vld [vmem:[#allocation30_spill] sm:$0xff] }
  0x57   :  { %v7629_v6 = vpack.c.bf16 %v11087_v52, %v11086_v48  ;;  %6219 = vmatprep.subr.bf16.mxu0 %v6218_v35  ;;  %895 = vmatmul.mubr.f32.gmra.mrb[4].mxu0 %v894_v53  ;;  %v909_v26 = vand.u32 4294901760, %v908_v23  ;;  %v7645_v59 = vrot.slane %v11088_v42, %v300_v57  ;;  %v6224_v43 = vpack.c.bf16 %v7363_v63, %v7358_v45  ;;  %v11092_v35 = vld [vmem:[#allocation44_spill] sm:$0xff]  ;;  %v11099_v23 = vld [vmem:[#allocation26_spill] sm:$0xff]  ;;  %v11102_v52 = vld [vmem:[#allocation41_spill] sm:$0xff] }
  0x58   :  { %1156 = vmatmul.mubr.f32.gmra.mrb[4].mxu1 %v7509_v17  ;;  %904 = vmatprep.mubr.f32.mxu0 %v903_v15  ;;  %v6226_v40 = vpack.c.bf16 %v11093_v36, %v11092_v35  ;;  %v11095_v53 = vld [vmem:[#allocation24_spill] sm:$0xff]  ;;  %v6228_v48 = vpack.c.bf16 %v7425_v22, %v7420_v29  ;;  %v11103_v57 = vand.u32 4294901760, %v11100_v11  ;;  %v7687_v15 = vadd.s32 192, %v6952_v3  ;;  %v11123_v32 = vld [vmem:[#allocation13_spill] sm:$0xff] }
  0x59   :  { %11089 = vst [vmem:[#allocation5_spill] sm:$0xff] %v7645_v59  ;;  %6241 = vmatpush3.bf16.msk.msra.mxu1 %vm7116_vm1, %v11045_v37  ;;  %1161 = vmatprep.mubr.f32.mxu1 %v7539_v49  ;;  %vm10678_vm15 = vcmp.eq.s32.totalorder %v11094_v41, %v7645_v59  ;;  %vm10677_vm9 = vcmp.eq.s32.totalorder %v11095_v53, %v7645_v59  ;;  %v11119_v2 = vand.u32 4294901760, %v7164_v50  ;;  %v7730_v17 = vadd.s32 216, %v6952_v3 }
  0x5a   :  { %6221 = vmatpush3.bf16.msra.mxu0 %v6220_v58  ;;  %6243 = vmatprep.subr.msk.bf16.mxu1 %vm7160_vm6, %v11045_v37  ;;  %vm7669_vm11 = vmpackc.low %vm10677_vm9, %vm10678_vm15  ;;  %11104 = vst [vmem:[#allocation25_spill] sm:$0xff] %v7687_v15  ;;  %v11105_v58 = vld [vmem:[#allocation42_spill] sm:$0xff]  ;;  %vm11109_vm9 = vcmp.eq.s32.totalorder %v11095_v53, %v7645_v59  ;;  %v7718_v53 = vadd.s32 208, %v6952_v3  ;;  %v11126_v50 = vand.u32 4294901760, %v7229_v13  ;;  %v11130_v13 = vld [vmem:[#allocation33_spill] sm:$0xff]  ;;  %v7822_v12 = vadd.s32 224, %v6952_v3 }
  0x5b   :  { %6223 = vmatprep.subr.bf16.mxu0 %v6222_v61  ;;  %910 = vmatmul.mubr.f32.gmra.mrb[6].mxu0 %v909_v26  ;;  %v11097_v54 = vsel %vm7669_vm11, 4294967295, %v11096_v54  ;;  %vm10693_vm15 = vcmp.eq.s32.totalorder %v11105_v58, %v7645_v59  ;;  %v7692_v61 = vadd.s32 200, %v6952_v3  ;;  %v11107_v26 = vmov 0.0   ;;  %11121 = vst [vmem:[#allocation24_spill] sm:$0xff] %v7730_v17 }
  0x5c   :  { %1163 = vmatmul.mubr.f32.gmra.mrb[6].mxu1 %v7541_v25  ;;  %11098 = vst [vmem:[#allocation20_spill] sm:$0xff] %v11097_v54  ;;  %1298 = vmatprep.mubr.f32.mxu0 %v11100_v11  ;;  %vm11108_vm11 = vcmp.eq.s32.totalorder %v11094_v41, %v7645_v59  ;;  %v11115_v41 = vld [vmem:[#allocation17_spill] sm:$0xff]  ;;  %11116 = vst [vmem:[#allocation23_spill] sm:$0xff] %v7718_v53  ;;  %v11120_v25 = vand.u32 4294901760, %v7169_v55  ;;  %v11127_v55 = vand.u32 4294901760, %v7231_v56  ;;  %v11132_v56 = vld [vmem:[#allocation48_spill] sm:$0xff] }
  0x5d   :  { %6245 = vmatpush3.bf16.msk.msra.mxu1 %vm7175_vm10, %v11045_v37  ;;  %1432 = vmatprep.mubr.f32.mxu1 %v11103_v57  ;;  %11106 = vst [vmem:[#allocation44_spill] sm:$0xff] %v7692_v61  ;;  %v4936_v42 = vsel %vm11108_vm11, 1.0, %v11107_v26  ;;  %vm10698_vm11 = vcmp.eq.s32.totalorder %v11115_v41, %v7645_v59  ;;  %v11117_v57 = vld [vmem:[#allocation34_spill] sm:$0xff]  ;;  %11146 = vst [vmem:[#allocation30_spill] sm:$0xff] %v7822_v12  ;;  %v735_v11 = vld [vmem:[%s10545_s2 + $0x8] sm:$0xff] }
  0x5e   :  { %6225 = vmatpush3.bf16.msra.mxu0 %v6224_v43  ;;  %6247 = vmatprep.subr.msk.bf16.mxu1 %vm7222_vm3, %v11045_v37  ;;  %v4937_v43 = vsel %vm11109_vm9, 1.0, %v11107_v26  ;;  %vm11110_vm3 = vcmp.eq.s32.totalorder %v11102_v52, %v7645_v59  ;;  %vm11118_vm9 = vnez %v11117_v57  ;;  %v7727_v49 = vpack.c.bf16 %v11120_v25, %v11119_v2 }
  0x5f   :  { %6227 = vmatprep.subr.bf16.mxu0 %v6226_v40  ;;  %vm7708_vm10 = vmpackc.low %vm10693_vm15, %vm11110_vm3  ;;  %v11111_v40 = vmov 0  ;;  %v7739_v20 = vsub.f32 %v4937_v43, %v4937_v43  ;;  %v7745_v25 = vpack.c.bf16 %v11127_v55, %v11126_v50  ;;  %v11128_v2 = vand.u32 4294901760, %v7237_v46 }
  0x60   :  { %v11112_v40 = vsel %vm7708_vm10, 4294967295, %v11111_v40  ;;  %vm11131_vm3 = vnez %v11130_v13  ;;  %v11133_v46 = vand.u32 4294901760, %v7288_v19  ;;  %v11135_v50 = vand.u32 4294901760, %v7296_v33 }
  0x61   :  { %11113 = vst [vmem:[#allocation45_spill] sm:$0xff] %v11112_v40  ;;  %6249 = vmatpush3.bf16.msk.msra.mxu1 %vm7216_vm2, %v11045_v37  ;;  %v11122_v40 = vld [vmem:[#allocation18_spill] sm:$0xff]  ;;  %11125 = vst [vmem:[#allocation47_spill] sm:$0xff] %v7739_v20  ;;  %v11136_v55 = vand.u32 4294901760, %v7301_v10  ;;  %vm11137_vm15 = vcmp.eq.s32.totalorder %v11102_v52, %v7645_v59 }
  0x62   :  { %6229 = vmatpush3.bf16.msra.mxu0 %v6228_v48  ;;  %6251 = vmatprep.subr.msk.bf16.mxu1 %vm11118_vm9, %v11045_v37  ;;  %v7737_v48 = vsub.f32 %v4936_v42, %v4936_v42  ;;  %v4934_v42 = vsel %vm10698_vm11, 1.0, %v11107_v26  ;;  %vm11139_vm10 = vcmp.eq.s32.totalorder %v11122_v40, %v7645_v59  ;;  %vm11140_vm11 = vcmp.eq.s32.totalorder %v7687_v15, %v11123_v32 }
  0x63   :  { %6263 = vmatprep.subr.bf16.mxu0 %v7573_v28  ;;  %v11129_v28 = vand.u32 4294901760, %v7239_v18  ;;  %v11134_v18 = vand.u32 4294901760, %v7290_v16  ;;  %v4935_v10 = vsel %vm11139_vm10, 1.0, %v11107_v26  ;;  %v4918_v19 = vsel %vm11140_vm11, 1.0, %v11107_v26 }
  0x64   :  { %11124 = vst [vmem:[#allocation26_spill] sm:$0xff] %v7737_v48  ;;  %vm11142_vm10 = vcmp.eq.s32.totalorder %v7692_v61, %v11123_v32  ;;  %vm11145_vm11 = vcmp.eq.s32.totalorder %v7718_v53, %v11123_v32  ;;  %v7844_v53 = vsub.f32 %v4935_v10, %v4935_v10  ;;  %v7851_v16 = vadd.s32 232, %v6952_v3 }
  0x65   :  { %v7751_v54 = vpack.c.bf16 %v11129_v28, %v11128_v2  ;;  %6253 = vmatpush3.bf16.msk.msra.mxu1 %vm11131_vm3, %v11045_v37  ;;  %1301 = vmatmul.mubr.f32.vlgmr.msra.gmra.mrb[8].mxu0 %v11132_v56  ;;  %v7767_v43 = vpack.c.bf16 %v11134_v18, %v11133_v46  ;;  %v7773_v2 = vpack.c.bf16 %v11136_v55, %v11135_v50  ;;  %v4938_v28 = vsel %vm11137_vm15, 1.0, %v11107_v26  ;;  %v11147_v46 = vld [vmem:[#allocation37_spill] sm:$0xff] }
  0x66   :  { %6265 = vmatpush3.bf16.msra.mxu0 %v7590_v8  ;;  %6255 = vmatprep.subr.msk.bf16.mxu1 %vm7343_vm0, %v11045_v37  ;;  %vm10713_vm3 = vcmp.eq.s32.totalorder %v7730_v17, %v11123_v32  ;;  %vm11141_vm15 = vcmp.eq.s32.totalorder %v11105_v58, %v7645_v59  ;;  %v7801_v8 = vsub.f32 %v4934_v42, %v4934_v42  ;;  %v4919_v52 = vsel %vm11142_vm10, 1.0, %v11107_v26 }
  0x67   :  { %v4939_v33 = vsel %vm11141_vm15, 1.0, %v11107_v26  ;;  %1307 = vmatprep.mubr.f32.mxu0 %v7515_v44  ;;  %6267 = vmatprep.subr.bf16.mxu0 %v7596_v9  ;;  %v10706_v18 = vand.u32 4294901760, %v7739_v20  ;;  %v11143_v50 = vand.u32 4294901760, %v7350_v0  ;;  %v11144_v58 = vand.u32 4294901760, %v7352_v38  ;;  %11151 = vst [vmem:[#allocation41_spill] sm:$0xff] %v7851_v16 }
  0x68   :  { %v4920_v9 = vsel %vm11145_vm11, 1.0, %v11107_v26  ;;  %v7819_v42 = vsub.f32 %v4938_v28, %v4938_v28  ;;  %vm11148_vm15 = vnez %v11147_v46  ;;  %v4921_v38 = vsel %vm10713_vm3, 1.0, %v11107_v26 }
  0x69   :  { %v7813_v55 = vpack.c.bf16 %v11144_v58, %v11143_v50  ;;  %6257 = vmatpush3.bf16.msk.msra.mxu1 %vm11148_vm15, %v11045_v37  ;;  %1310 = vmatmul.mubr.f32.gmra.mrb[10].mxu0 %v7519_v24  ;;  %v7832_v0 = vsub.f32 %v4939_v33, %v4939_v33  ;;  %v11149_v50 = vand.u32 4294901760, %v7737_v48  ;;  %v2082_v58 = vsub.f32 %v7739_v20, %v10706_v18 }
  0x6a   :  { %6269 = vmatpush3.bf16.msra.mxu0 %v7602_v4  ;;  %6259 = vmatprep.subr.msk.bf16.mxu1 %vm7401_vm12, %v11045_v37  ;;  %v7846_v17 = vsub.f32 %v4918_v19, %v4918_v19  ;;  %v7848_v33 = vsub.f32 %v4919_v52, %v4919_v52  ;;  %v11153_v4 = vand.u32 4294901760, %v7363_v63  ;;  %v10714_v10 = vand.u32 4294901760, %v7801_v8 }
  0x6b   :  { %v2075_v28 = vsub.f32 %v7737_v48, %v11149_v50  ;;  %1316 = vmatprep.mubr.f32.mxu0 %v7530_v5  ;;  %6271 = vmatprep.subr.bf16.mxu0 %v7613_v30  ;;  %v11152_v50 = vand.u32 4294901760, %v7358_v45  ;;  %v2083_v19 = vand.u32 4294901760, %v2082_v58  ;;  %v11154_v52 = vand.u32 4294901760, %v11092_v35 }
  0x6c   :  { %v11155_v48 = vand.u32 4294901760, %v11093_v36  ;;  %v7868_v7 = vsub.f32 %v4920_v9, %v4920_v9  ;;  %v7870_v13 = vsub.f32 %v4921_v38, %v4921_v38  ;;  %v7873_v45 = vadd.s32 240, %v6952_v3 }
  0x6d   :  { %v7859_v18 = vpack.c.bf16 %v11153_v4, %v11152_v50  ;;  %v2076_v20 = vand.u32 4294901760, %v2075_v28  ;;  %6261 = vmatpush3.bf16.msk.msra.mxu1 %vm7416_vm5, %v11045_v37  ;;  %1319 = vmatmul.mubr.f32.gmra.mrb[12].mxu0 %v7533_v60  ;;  %vm10716_vm10 = vcmp.eq.s32.totalorder %v7822_v12, %v11123_v32  ;;  %v10717_v35 = vand.u32 4294901760, %v7819_v42 }
  0x6e   :  { %v7866_v46 = vpack.c.bf16 %v11155_v48, %v11154_v52  ;;  %11156 = vst [vmem:[#allocation42_spill] sm:$0xff] %v7868_v7  ;;  %11157 = vst [vmem:[#allocation29_spill] sm:$0xff] %v7870_v13  ;;  %v10715_v36 = vand.u32 4294901760, %v7832_v0  ;;  %6273 = vmatpush3.bf16.msra.mxu0 %v7623_v31  ;;  %6295 = vmatprep.subr.msk.bf16.mxu1 %vm7026_vm4, %v11045_v37  ;;  %v10720_v9 = vand.u32 4294901760, %v7844_v53  ;;  %v10718_v38 = vand.u32 4294901760, %v7846_v17  ;;  %v11164_v52 = vld [vmem:[#allocation8_spill] sm:$0xff] }
  0x6f   :  { %11158 = vst [vmem:[#allocation17_spill] sm:$0xff] %v7873_v45  ;;  %v7881_v30 = vpack.c.bf16 %v2083_v19, %v2076_v20  ;;  %v10719_v20 = vand.u32 4294901760, %v7848_v33  ;;  %1325 = vmatprep.mubr.f32.mxu0 %v7560_v1  ;;  %6275 = vmatprep.subr.bf16.mxu0 %v7727_v49  ;;  %v7899_v31 = vsub.f32 %v7801_v8, %v10714_v10  ;;  %v7902_v28 = vadd.s32 248, %v6952_v3  ;;  %v11163_v19 = vld [vmem:[#allocation7_spill] sm:$0xff] }
  0x70   :  { %v2089_v58 = vsub.f32 %v7819_v42, %v10717_v35  ;;  %v2096_v50 = vsub.f32 %v7832_v0, %v10715_v36  ;;  %v11162_v4 = vand.u32 4294901760, %v11132_v56  ;;  %v4922_v49 = vsel %vm10716_vm10, 1.0, %v11107_v26 }
  0x71   :  { %11161 = vst [vmem:[#allocation34_spill] sm:$0xff] %v7902_v28  ;;  %vm310_vm4 = vcmp.eq.s32.totalorder %v11163_v19, %v7645_v59  ;;  %vm311_vm3 = vcmp.eq.s32.totalorder %v11164_v52, %v7645_v59  ;;  %vm146_vm11 = vcmp.eq.s32.totalorder %v7873_v45, %v11123_v32  ;;  %1328 = vmatmul.mubr.f32.gmra.mrb[14].mxu0 %v7563_v27  ;;  %v10721_v56 = vand.u32 4294901760, %v7868_v7  ;;  %v585_v19 = vld [vmem:[%s10544_s1 + $0x58] sm:$0xff] }
  0x72   :  { %1436 = vmatmul.mubr.f32.vlgmr.msra.gmra.mrb[8].mxu1 %v11162_v4  ;;  %v2090_v4 = vand.u32 4294901760, %v2089_v58  ;;  %v2097_v10 = vand.u32 4294901760, %v2096_v50  ;;  %v11165_v36 = vand.u32 4294901760, %v7515_v44  ;;  %6277 = vmatpush3.bf16.msra.mxu0 %v7629_v6  ;;  %vm11166_vm10 = vcmp.eq.s32.totalorder %v7851_v16, %v11123_v32  ;;  %v11244_v52 = vld [vmem:[#allocation50_spill] sm:$0xff] }
  0x73   :  { %6297 = vmatpush3.bf16.msk.msra.mxu1 %vm7041_vm7, %v11045_v37  ;;  %v4923_v35 = vsel %vm11166_vm10, 1.0, %v11107_v26  ;;  %v2068_v34 = vsub.f32 %v7844_v53, %v10720_v9  ;;  %v1949_v48 = vsub.f32 %v7846_v17, %v10718_v38  ;;  %v1956_v44 = vsub.f32 %v7848_v33, %v10719_v20  ;;  %6279 = vmatprep.subr.bf16.mxu0 %v7745_v25  ;;  %v11169_v38 = vld [vmem:[#allocation4_spill] sm:$0xff]  ;;  %v11174_v9 = vld [vmem:[#allocation11_spill] sm:$0xff] }
  0x74   :  { %1443 = vmatprep.mubr.f32.mxu1 %v11165_v36  ;;  %6299 = vmatprep.subr.msk.bf16.mxu1 %vm7066_vm8, %v11045_v37  ;;  %v7948_v6 = vsub.f32 %v4922_v49, %v4922_v49  ;;  %v2062_v36 = vand.u32 4294901760, %v7899_v31  ;;  %vm10730_vm7 = vcmp.eq.s32.totalorder %v7902_v28, %v11123_v32  ;;  %v7953_v58 = vpack.c.bf16 %v2097_v10, %v2090_v4 }
  0x75   :  { %v11168_v50 = vand.u32 4294901760, %v7519_v24  ;;  %1635 = vmatprep.mubr.f32.mxu0 %v11169_v38  ;;  %v4940_v39 = vsel %vm310_vm4, 1.0, %v11107_v26  ;;  %v4941_v25 = vsel %vm311_vm3, 1.0, %v11107_v26  ;;  %v7967_v31 = vadd.s32 256, %v6952_v3 }
  0x76   :  { %11167 = vst [vmem:[#allocation18_spill] sm:$0xff] %v7948_v6  ;;  %v7970_v10 = vadd.s32 264, %v6952_v3  ;;  %v11172_v24 = vand.u32 4294901760, %v7530_v5  ;;  %v4924_v49 = vsel %vm146_vm11, 1.0, %v11107_v26  ;;  %v1963_v4 = vsub.f32 %v7868_v7, %v10721_v56  ;;  %6281 = vmatpush3.bf16.msra.mxu0 %v7751_v54 }
  0x77   :  { %1447 = vmatmul.mubr.f32.gmra.mrb[10].mxu1 %v11168_v50  ;;  %11170 = vst [vmem:[#allocation13_spill] sm:$0xff] %v7967_v31  ;;  %v11173_v50 = vand.u32 4294901760, %v7870_v13  ;;  %vm10729_vm8 = vcmp.eq.s32.totalorder %v11174_v9, %v7645_v59  ;;  %v2069_v51 = vand.u32 4294901760, %v2068_v34  ;;  %v1950_v5 = vand.u32 4294901760, %v1949_v48  ;;  %6283 = vmatprep.subr.bf16.mxu0 %v7767_v43  ;;  %v11179_v48 = vld [vmem:[#allocation12_spill] sm:$0xff] }
  0x78   :  { %11171 = vst [vmem:[#allocation48_spill] sm:$0xff] %v7970_v10  ;;  %6301 = vmatpush3.bf16.msk.msra.mxu1 %vm7096_vm14, %v11045_v37  ;;  %1454 = vmatprep.mubr.f32.mxu1 %v11172_v24  ;;  %v1957_v24 = vand.u32 4294901760, %v1956_v44  ;;  %v4925_v56 = vsel %vm10730_vm7, 1.0, %v11107_v26  ;;  %v8004_v54 = vsub.f32 %v4923_v35, %v4923_v35  ;;  %v8006_v47 = vsub.f32 %v4940_v39, %v4940_v39 }
  0x79   :  { %v1970_v20 = vsub.f32 %v7870_v13, %v11173_v50  ;;  %6303 = vmatprep.subr.msk.bf16.mxu1 %vm7088_vm13, %v11045_v37  ;;  %v11175_v50 = vand.u32 4294901760, %v7420_v29  ;;  %v11176_v13 = vand.u32 4294901760, %v7425_v22  ;;  %vm10728_vm13 = vcmp.eq.s32.totalorder %v11179_v48, %v7645_v59 }
  0x7a   :  { %11177 = vst [vmem:[#allocation46_spill] sm:$0xff] %v8004_v54  ;;  %11178 = vst [vmem:[#allocation19_spill] sm:$0xff] %v8006_v47  ;;  %v11180_v34 = vand.u32 4294901760, %v7533_v60  ;;  %v8012_v44 = vsub.f32 %v4941_v25, %v4941_v25  ;;  %v4942_v29 = vsel %vm10729_vm8, 1.0, %v11107_v26  ;;  %vm10727_vm14 = vcmp.eq.s32.totalorder %v7967_v31, %v11123_v32  ;;  %6285 = vmatpush3.bf16.msra.mxu0 %v7773_v2 }
  0x7b   :  { %v8002_v7 = vpack.c.bf16 %v11176_v13, %v11175_v50  ;;  %vm10726_vm10 = vcmp.eq.s32.totalorder %v7970_v10, %v11123_v32  ;;  %v11182_v22 = vand.u32 4294901760, %v7560_v1  ;;  %v8027_v60 = vsub.f32 %v4924_v49, %v4924_v49  ;;  %6287 = vmatprep.subr.bf16.mxu0 %v7813_v55  ;;  %v11187_v49 = vld [vmem:[#allocation14_spill] sm:$0xff] }
  0x7c   :  { %1458 = vmatmul.mubr.f32.gmra.mrb[12].mxu1 %v11180_v34  ;;  %11181 = vst [vmem:[#allocation7_spill] sm:$0xff] %v8012_v44  ;;  %v8029_v13 = vsub.f32 %v4925_v56, %v4925_v56  ;;  %v1964_v43 = vand.u32 4294901760, %v1963_v4  ;;  %v1971_v35 = vand.u32 4294901760, %v1970_v20  ;;  %v8035_v39 = vpack.c.bf16 %v2069_v51, %v2062_v36  ;;  %v734_v34 = vld [vmem:[%s10545_s2] sm:$0xff] }
  0x7d   :  { %6305 = vmatpush3.bf16.msk.msra.mxu1 %vm7116_vm1, %v11045_v37  ;;  %1465 = vmatprep.mubr.f32.mxu1 %v11182_v22  ;;  %11183 = vst [vmem:[#allocation8_spill] sm:$0xff] %v8027_v60  ;;  %v8037_v25 = vpack.c.bf16 %v1957_v24, %v1950_v5  ;;  %v4943_v1 = vsel %vm10728_vm13, 1.0, %v11107_v26  ;;  %v10737_v14 = vand.u32 4294901760, %v7948_v6  ;;  %v8045_v20 = vsub.f32 %v4942_v29, %v4942_v29  ;;  %v736_v22 = vld [vmem:[%s10545_s2 + $0x10] sm:$0xff] }
  0x7e   :  { %11184 = vst [vmem:[#allocation4_spill] sm:$0xff] %v8029_v13  ;;  %6307 = vmatprep.subr.msk.bf16.mxu1 %vm7160_vm6, %v11045_v37  ;;  %v4926_v21 = vsel %vm10727_vm14, 1.0, %v11107_v26  ;;  %v4927_v2 = vsel %vm10726_vm10, 1.0, %v11107_v26  ;;  %v10734_v56 = vand.u32 4294901760, %v8004_v54  ;;  %v11186_v36 = vand.u32 4294901760, %v7563_v27  ;;  %6289 = vmatpush3.bf16.msra.mxu0 %v7859_v18  ;;  %v11193_v18 = vld [vmem:[#allocation16_spill] sm:$0xff] }
  0x7f   :  { %11185 = vst [vmem:[#allocation11_spill] sm:$0xff] %v8045_v20  ;;  %vm314_vm1 = vcmp.eq.s32.totalorder %v11187_v49, %v7645_v59  ;;  %v8061_v55 = vadd.s32 272, %v6952_v3  ;;  %v8064_v4 = vadd.s32 280, %v6952_v3  ;;  %v10731_v51 = vand.u32 4294901760, %v8006_v47  ;;  %6291 = vmatprep.subr.bf16.mxu0 %v7866_v46 }
  0x80   :  { %1469 = vmatmul.mubr.f32.gmra.mrb[14].mxu1 %v11186_v36  ;;  %vm11188_vm6 = vnez %v11099_v23  ;;  %v8071_v5 = vpack.c.bf16 %v1971_v35, %v1964_v43  ;;  %v8073_v27 = vsub.f32 %v4943_v1, %v4943_v1  ;;  %v10733_v24 = vand.u32 4294901760, %v8012_v44  ;;  %v11199_v36 = vld [vmem:[#allocation21_spill] sm:$0xff] }
  0x81   :  { %6309 = vmatpush3.bf16.msk.msra.mxu1 %vm11188_vm6, %v11045_v37  ;;  %1760 = vmatprep.mubr.f32.mxu1 %v11169_v38  ;;  %v10732_v50 = vand.u32 4294901760, %v8027_v60  ;;  %vm11190_vm10 = vnez %v11101_v62  ;;  %v8084_v23 = vsub.f32 %v4926_v21, %v4926_v21  ;;  %v1977_v38 = vsub.f32 %v7948_v6, %v10737_v14 }
  0x82   :  { %11189 = vst [vmem:[#allocation12_spill] sm:$0xff] %v8073_v27  ;;  %6311 = vmatprep.subr.msk.bf16.mxu1 %vm11190_vm10, %v11045_v37  ;;  %v10736_v29 = vand.u32 4294901760, %v8029_v13  ;;  %v8094_v43 = vsub.f32 %v4927_v2, %v4927_v2  ;;  %v1984_v62 = vsub.f32 %v8004_v54, %v10734_v56  ;;  %vm10735_vm10 = vcmp.eq.s32.totalorder %v11193_v18, %v7645_v59 }
  0x83   :  { %11191 = vst [vmem:[#allocation14_spill] sm:$0xff] %v8084_v23  ;;  %v4944_v35 = vsel %vm314_vm1, 1.0, %v11107_v26  ;;  %v6920_v1 = vmov 0   ;;  %vm11194_vm6 = vcmp.eq.s32.totalorder %v11115_v41, %v7645_v59  ;;  %vm11195_vm14 = vcmp.eq.s32.totalorder %v11122_v40, %v7645_v59  ;;  %6293 = vmatpush3.bf16.msra.mxu0 %v8002_v7 }
  0x84   :  { %11192 = vst [vmem:[#allocation53_spill] sm:$0xff] %v8094_v43  ;;  %6916 = vset.pattern.permute.xlu0 %v6920_v1  ;;  %vm8111_vm13 = vmpackc.low %vm11195_vm14, %vm11194_vm6  ;;  %v11196_v46 = vmov 0  ;;  %vm10756_vm8 = vcmp.eq.s32.totalorder %v8061_v55, %v11123_v32  ;;  %vm10746_vm7 = vcmp.eq.s32.totalorder %v8064_v4, %v11123_v32  ;;  %v2103_v21 = vsub.f32 %v8006_v47, %v10731_v51  ;;  %v11217_v47 = vld [vmem:[#allocation23_spill] sm:$0xff] }
  0x85   :  { %v11197_v46 = vsel %vm8111_vm13, 4294967295, %v11196_v46  ;;  %v8123_v2 = vadd.s32 288, %v6952_v3  ;;  %740 = vperm.xlu0 %6916, %v734_v34   ;;  %6917 = vset.pattern.permute.xlu1 %v6920_v1  ;;  %v2110_v40 = vsub.f32 %v8012_v44, %v10733_v24  ;;  %v1991_v41 = vsub.f32 %v8027_v60, %v10732_v50  ;;  %v577_v34 = vld [vmem:[%s10544_s1 + $0x18] sm:$0xff]  ;;  %v11214_v44 = vld [vmem:[#allocation9_spill] sm:$0xff] }
  0x86   :  { %11198 = vst [vmem:[#allocation16_spill] sm:$0xff] %v11197_v46  ;;  %6313 = vmatpush3.bf16.msk.msra.mxu1 %vm7216_vm2, %v11045_v37  ;;  %vm10755_vm14 = vcmp.eq.s32.totalorder %v11199_v36, %v7645_v59  ;;  %v8137_v51 = vadd.s32 296, %v6952_v3  ;;  %750 = vperm.xlu1 %6917, %v736_v22   ;;  %v1978_v1 = vand.u32 4294901760, %v1977_v38  ;;  %v4945_v50 = vsel %vm10735_vm10, 1.0, %v11107_v26  ;;  %v737_v46 = vld [vmem:[%s10545_s2 + $0x18] sm:$0xff] }
  0x87   :  { %6315 = vmatprep.subr.msk.bf16.mxu1 %vm11118_vm9, %v11045_v37  ;;  %v8153_v24 = vsub.f32 %v4944_v35, %v4944_v35  ;;  %v1998_v56 = vsub.f32 %v8029_v13, %v10736_v29  ;;  %6327 = vmatprep.subr.msk.bf16.mxu0 %vm8111_vm13, %v11045_v37  ;;  %vm11202_vm2 = vcmp.eq.s32.totalorder %v7687_v15, %v11123_v32  ;;  %v11204_v7 = vmov 0  ;;  %v11207_v35 = vld [vmem:[#allocation22_spill] sm:$0xff] }
  0x88   :  { %11200 = vst [vmem:[#allocation21_spill] sm:$0xff] %v8137_v51  ;;  %vm11203_vm9 = vcmp.eq.s32.totalorder %v7692_v61, %v11123_v32  ;;  %v1985_v57 = vand.u32 4294901760, %v1984_v62  ;;  %v4928_v38 = vsel %vm10756_vm8, 1.0, %v11107_v26  ;;  %v4929_v22 = vsel %vm10746_vm7, 1.0, %v11107_v26  ;;  %v11209_v61 = vld [vmem:[#allocation33_spill] sm:$0xff]  ;;  %v11211_v15 = vld [vmem:[#allocation6_spill] sm:$0xff] }
  0x89   :  { %11201 = vst [vmem:[#allocation54_spill] sm:$0xff] %v8153_v24  ;;  %vm8167_vm6 = vmpackc.low %vm11203_vm9, %vm11202_vm2  ;;  %vm317_vm10 = vcmp.eq.s32.totalorder %v11207_v35, %v7645_v59  ;;  %v2104_v29 = vand.u32 4294901760, %v2103_v21  ;;  %v4946_v14 = vsel %vm10755_vm14, 1.0, %v11107_v26  ;;  %vm10768_vm2 = vcmp.eq.s32.totalorder %v8123_v2, %v11123_v32  ;;  %745 = vperm.xlu0 %6916, %v735_v11   ;;  %1637 = vmatmul.mubr.f32.vlgmr.msra.gmra.mrb[16].mxu0 %v11211_v15 }
  0x8a   :  { %v11205_v7 = vsel %vm8167_vm6, 4294967295, %v11204_v7  ;;  %v8187_v62 = vand.u32 4294901760, %v577_v34  ;;  %vm11210_vm9 = vnez %v11209_v61  ;;  %v2111_v13 = vand.u32 4294901760, %v2110_v40  ;;  %6329 = vmatpush3.bf16.msk.msra.mxu0 %vm8167_vm6, %v11045_v37  ;;  %1642 = vmatprep.mubr.f32.mxu0 %v11214_v44 }
  0x8b   :  { %11206 = vst [vmem:[#allocation55_spill] sm:$0xff] %v11205_v7  ;;  %6317 = vmatpush3.bf16.msk.msra.mxu1 %vm11210_vm9, %v11045_v37  ;;  %v1992_v60 = vand.u32 4294901760, %v1991_v41  ;;  %vm10767_vm7 = vcmp.eq.s32.totalorder %v8137_v51, %v11123_v32  ;;  %v1999_v11 = vand.u32 4294901760, %v1998_v56  ;;  %v4947_v40 = vsel %vm317_vm10, 1.0, %v11107_v26  ;;  %v11215_v7 = vld [vmem:[#allocation20_spill] sm:$0xff]  ;;  %755 = vperm.xlu1 %6917, %v737_v46   ;;  %v576_v51 = vld [vmem:[%s10544_s1 + $0x10] sm:$0xff] }
  0x8c   :  { %11208 = vst [vmem:[#allocation22_spill] sm:$0xff] %v8187_v62  ;;  %6319 = vmatprep.subr.msk.bf16.mxu1 %vm7343_vm0, %v11045_v37  ;;  %v8211_v21 = vsub.f32 %v577_v34, %v8187_v62  ;;  %vm11216_vm9 = vnez %v11215_v7  ;;  %vm11218_vm0 = vcmp.eq.s32.totalorder %v11217_v47, %v11123_v32  ;;  %v11219_v56 = vld [vmem:[#allocation24_spill] sm:$0xff]  ;;  %v11221_v61 = vmov 0 }
  0x8d   :  { %6331 = vmatprep.subr.msk.bf16.mxu0 %vm11216_vm9, %v11045_v37  ;;  %vm11220_vm14 = vcmp.eq.s32.totalorder %v11219_v56, %v11123_v32  ;;  %v8227_v41 = vpack.c.bf16 %v1985_v57, %v1978_v1  ;;  %v8229_v34 = vsub.f32 %v4945_v50, %v4945_v50  ;;  %v8231_v54 = vsub.f32 %v4928_v38, %v4928_v38  ;;  %v11225_v57 = vld [vmem:[#allocation15_spill] sm:$0xff]  ;;  %v11230_v1 = vld [vmem:[#allocation49_spill] sm:$0xff]  ;;  %v11239_v46 = vld [vmem:[#allocation28_spill] sm:$0xff] }
  0x8e   :  { %11213 = vst [vmem:[#allocation33_spill] sm:$0xff] %v8211_v21  ;;  %vm8223_vm8 = vmpackc.low %vm11220_vm14, %vm11218_vm0  ;;  %v4930_v7 = vsel %vm10768_vm2, 1.0, %v11107_v26  ;;  %v8237_v6 = vsub.f32 %v4929_v22, %v4929_v22  ;;  %v8239_v47 = vsub.f32 %v4946_v14, %v4946_v14  ;;  %v4931_v56 = vsel %vm10767_vm7, 1.0, %v11107_v26  ;;  %1644 = vmatmul.mubr.f32.gmra.mrb[18].mxu0 %v11225_v57 }
  0x8f   :  { %v11222_v61 = vsel %vm8223_vm8, 4294967295, %v11221_v61  ;;  %6321 = vmatpush3.bf16.msk.msra.mxu1 %vm11148_vm15, %v11045_v37  ;;  %v8250_v38 = vpack.c.bf16 %v2111_v13, %v2104_v29  ;;  %v8252_v22 = vsub.f32 %v4947_v40, %v4947_v40  ;;  %v11226_v14 = vand.u32 4294901760, %v8045_v20  ;;  %6333 = vmatpush3.bf16.msk.msra.mxu0 %vm8223_vm8, %v11045_v37 }
  0x90   :  { %11223 = vst [vmem:[#allocation6_spill] sm:$0xff] %v11222_v61  ;;  %6323 = vmatprep.subr.msk.bf16.mxu1 %vm7401_vm12, %v11045_v37  ;;  %v8264_v50 = vpack.c.bf16 %v1999_v11, %v1992_v60  ;;  %v8266_v13 = vsub.f32 %v4930_v7, %v4930_v7  ;;  %v11229_v29 = vand.u32 4294901760, %v8073_v27  ;;  %1649 = vmatprep.mubr.f32.mxu0 %v11230_v1  ;;  %v11231_v61 = vld [vmem:[#allocation45_spill] sm:$0xff]  ;;  %v11235_v60 = vmov 0  ;;  %v11238_v11 = vld [vmem:[#allocation27_spill] sm:$0xff] }
  0x91   :  { %v2117_v62 = vsub.f32 %v8045_v20, %v11226_v14  ;;  %vm11232_vm15 = vnez %v11231_v61  ;;  %vm11233_vm12 = vcmp.eq.s32.totalorder %v7822_v12, %v11123_v32  ;;  %vm11234_vm14 = vcmp.eq.s32.totalorder %v7851_v16, %v11123_v32 }
  0x92   :  { %11228 = vst [vmem:[#allocation38_spill] sm:$0xff] %v8264_v50  ;;  %v2124_v40 = vsub.f32 %v8073_v27, %v11229_v29  ;;  %6335 = vmatprep.subr.msk.bf16.mxu0 %vm11232_vm15, %v11045_v37  ;;  %vm8285_vm0 = vmpackc.low %vm11234_vm14, %vm11233_vm12  ;;  %v8289_v7 = vsub.f32 %v4931_v56, %v4931_v56  ;;  %vm10785_vm7 = vcmp.eq.s32.totalorder %v11238_v11, %v7645_v59  ;;  %v11240_v14 = vmov 0  ;;  %v11250_v29 = vld [vmem:[#allocation51_spill] sm:$0xff] }
  0x93   :  { %v11236_v60 = vsel %vm8285_vm0, 4294967295, %v11235_v60  ;;  %vm10796_vm2 = vcmp.eq.s32.totalorder %v11239_v46, %v7645_v59  ;;  %vm8302_vm12 = vmpackc.low %vm311_vm3, %vm310_vm4  ;;  %v11243_v16 = vand.u32 4294901760, %v8211_v21  ;;  %6325 = vmatpush3.bf16.msk.msra.mxu1 %vm7416_vm5, %v11045_v37  ;;  %1651 = vmatmul.mubr.f32.gmra.mrb[20].mxu0 %v11244_v52  ;;  %v2118_v27 = vand.u32 4294901760, %v2117_v62 }
  0x94   :  { %11237 = vst [vmem:[#allocation9_spill] sm:$0xff] %v11236_v60  ;;  %v11241_v14 = vsel %vm8302_vm12, 4294967295, %v11240_v14  ;;  %v11245_v56 = vand.u32 4294901760, %v8084_v23  ;;  %6337 = vmatpush3.bf16.msk.msra.mxu0 %vm8285_vm0, %v11045_v37  ;;  %6359 = vmatprep.subr.bf16.mxu1 %v8035_v39  ;;  %v2125_v63 = vand.u32 4294901760, %v2124_v40  ;;  %v11249_v50 = vand.u32 4294901760, %v8094_v43  ;;  %v11254_v40 = vld [vmem:[#allocation10_spill] sm:$0xff] }
  0x95   :  { %11242 = vst [vmem:[#allocation37_spill] sm:$0xff] %v11241_v14  ;;  %v1887_v12 = vsub.f32 %v8211_v21, %v11243_v16  ;;  %v8322_v16 = vand.u32 4294901760, %v576_v51  ;;  %vm10802_vm5 = vcmp.eq.s32.totalorder %v6952_v3, %v7645_v59  ;;  %1656 = vmatprep.mubr.f32.mxu0 %v11250_v29  ;;  %6339 = vmatprep.subr.msk.bf16.mxu0 %vm8302_vm12, %v11045_v37  ;;  %v11255_v14 = vand.u32 4294901760, %v8153_v24 }
  0x96   :  { %v2005_v20 = vsub.f32 %v8084_v23, %v11245_v56  ;;  %v2012_v62 = vsub.f32 %v8094_v43, %v11249_v50  ;;  %v4948_v56 = vsel %vm10785_vm7, 1.0, %v11107_v26  ;;  %vm11251_vm3 = vcmp.eq.s32.totalorder %v7902_v28, %v11123_v32  ;;  %1762 = vmatmul.mubr.f32.vlgmr.msra.gmra.mrb[16].mxu1 %v11211_v15 }
  0x97   :  { %11246 = vst [vmem:[#allocation15_spill] sm:$0xff] %v8322_v16  ;;  %vm8349_vm4 = vmpackc.low %vm11251_vm3, %vm146_vm11  ;;  %v4949_v50 = vsel %vm10796_vm2, 1.0, %v11107_v26  ;;  %vm10801_vm14 = vcmp.eq.s32.totalorder %v11254_v40, %v7645_v59  ;;  %v2131_v60 = vsub.f32 %v8153_v24, %v11255_v14  ;;  %v8362_v45 = vand.u32 4294901760, %v585_v19  ;;  %6361 = vmatpush3.bf16.msra.mxu1 %v8037_v25  ;;  %1767 = vmatprep.mubr.f32.mxu1 %v11214_v44 }
  0x98   :  { %vm11257_vm11 = vcmp.eq.s32.totalorder %v11174_v9, %v7645_v59  ;;  %vm11258_vm3 = vcmp.eq.s32.totalorder %v11179_v48, %v7645_v59  ;;  %v11259_v28 = vmov 0  ;;  %v11262_v43 = vand.u32 4294901760, %v8229_v34  ;;  %v11265_v48 = vld [vmem:[#allocation52_spill] sm:$0xff]  ;;  %6341 = vmatpush3.bf16.msk.msra.mxu0 %vm8349_vm4, %v11045_v37  ;;  %6363 = vmatprep.subr.bf16.mxu1 %v7881_v30 }
  0x99   :  { %11256 = vst [vmem:[#allocation43_spill] sm:$0xff] %v8362_v45  ;;  %vm8371_vm7 = vmpackc.low %vm11258_vm3, %vm11257_vm11  ;;  %v1888_v21 = vand.u32 4294901760, %v1887_v12  ;;  %v11263_v14 = vand.u32 4294901760, %v8231_v54  ;;  %v11264_v15 = vand.u32 4294901760, %v8237_v6  ;;  %1658 = vmatmul.mubr.f32.gmra.mrb[22].mxu0 %v11265_v48  ;;  %v2006_v61 = vand.u32 4294901760, %v2005_v20  ;;  %v584_v20 = vld [vmem:[%s10544_s1 + $0x50] sm:$0xff] }
  0x9a   :  { %v11260_v28 = vsel %vm8371_vm7, 4294967295, %v11259_v28  ;;  %v2138_v23 = vsub.f32 %v8229_v34, %v11262_v43  ;;  %v8387_v46 = vsub.f32 %v576_v51, %v8322_v16  ;;  %v8395_v43 = vpack.c.bf16 %v2125_v63, %v2118_v27  ;;  %6343 = vmatprep.subr.msk.bf16.mxu0 %vm8371_vm7, %v11045_v37  ;;  %v593_v63 = vld [vmem:[%s10544_s1 + $0x98] sm:$0xff]  ;;  %1769 = vmatmul.mubr.f32.gmra.mrb[18].mxu1 %v11225_v57 }
  0x9b   :  { %11261 = vst [vmem:[#allocation49_spill] sm:$0xff] %v11260_v28  ;;  %v2019_v24 = vsub.f32 %v8231_v54, %v11263_v14  ;;  %v2026_v9 = vsub.f32 %v8237_v6, %v11264_v15  ;;  %v2013_v14 = vand.u32 4294901760, %v2012_v62  ;;  %v8397_v25 = vsub.f32 %v4948_v56, %v4948_v56  ;;  %1889 = vmatprep.mubr.f32.mxu0 %v1888_v21 }
  0x9c   :  { %11266 = vst [vmem:[#allocation50_spill] sm:$0xff] %v8387_v46  ;;  %v8399_v15 = vsub.f32 %v4949_v50, %v4949_v50  ;;  %vm11267_vm11 = vcmp.eq.s32.totalorder %v7967_v31, %v11123_v32  ;;  %vm11268_vm3 = vcmp.eq.s32.totalorder %v7970_v10, %v11123_v32  ;;  %v11269_v44 = vmov 0  ;;  %6365 = vmatpush3.bf16.msra.mxu1 %v8071_v5 }
  0x9d   :  { %vm8414_vm2 = vmpackc.low %vm11268_vm3, %vm11267_vm11  ;;  %v4932_v51 = vsel %vm10802_vm5, 1.0, %v11107_v26  ;;  %v4933_v30 = vsel %vm10801_vm14, 1.0, %v11107_v26  ;;  %v8427_v27 = vsub.f32 %v585_v19, %v8362_v45  ;;  %vm11273_vm11 = vcmp.eq.s32.totalorder %v11193_v18, %v7645_v59  ;;  %1774 = vmatprep.mubr.f32.mxu1 %v11230_v1  ;;  %6367 = vmatprep.subr.bf16.mxu1 %v7953_v58 }
  0x9e   :  { %v11270_v44 = vsel %vm8414_vm2, 4294967295, %v11269_v44  ;;  %vm8441_vm3 = vmpackc.low %vm11273_vm11, %vm314_vm1  ;;  %v11274_v56 = vmov 0  ;;  %v2132_v19 = vand.u32 4294901760, %v2131_v60  ;;  %v2139_v50 = vand.u32 4294901760, %v2138_v23  ;;  %6345 = vmatpush3.bf16.msk.msra.mxu0 %vm8414_vm2, %v11045_v37  ;;  %1776 = vmatmul.mubr.f32.gmra.mrb[20].mxu1 %v11244_v52 }
  0x9f   :  { %11271 = vst [vmem:[#allocation51_spill] sm:$0xff] %v11270_v44  ;;  %11272 = vst [vmem:[#allocation10_spill] sm:$0xff] %v8427_v27  ;;  %v11275_v56 = vsel %vm8441_vm3, 4294967295, %v11274_v56  ;;  %v2020_v12 = vand.u32 4294901760, %v2019_v24  ;;  %v2027_v11 = vand.u32 4294901760, %v2026_v9  ;;  %v10803_v57 = vand.u32 4294901760, %v8387_v46  ;;  %6347 = vmatprep.subr.msk.bf16.mxu0 %vm8441_vm3, %v11045_v37  ;;  %1781 = vmatprep.mubr.f32.mxu1 %v11250_v29 }
  0xa0   :  { %11276 = vst [vmem:[#allocation52_spill] sm:$0xff] %v11275_v56  ;;  %v11277_v49 = vand.u32 4294901760, %v8239_v47  ;;  %v11278_v18 = vand.u32 4294901760, %v8252_v22  ;;  %v8454_v31 = vand.u32 4294901760, %v584_v20  ;;  %v592_v24 = vld [vmem:[%s10544_s1 + $0x90] sm:$0xff]  ;;  %v8463_v5 = vpack.c.bf16 %v2013_v14, %v2006_v61  ;;  %6369 = vmatpush3.bf16.msra.mxu1 %v8227_v41  ;;  %v11307_v61 = vld [vmem:[#allocation47_spill] sm:$0xff] }
  0xa1   :  { %v8465_v23 = vsub.f32 %v4932_v51, %v4932_v51  ;;  %v8467_v21 = vsub.f32 %v4933_v30, %v4933_v30  ;;  %v8469_v1 = vand.u32 4294901760, %v593_v63  ;;  %vm11281_vm1 = vcmp.eq.s32.totalorder %v8061_v55, %v11123_v32  ;;  %v601_v51 = vld [vmem:[%s10544_s1 + $0xd8] sm:$0xff]  ;;  %6371 = vmatprep.subr.bf16.mxu1 %v8250_v38  ;;  %v11293_v38 = vld [vmem:[#allocation21_spill] sm:$0xff] }
  0xa2   :  { %v2145_v62 = vsub.f32 %v8239_v47, %v11277_v49  ;;  %v2152_v10 = vsub.f32 %v8252_v22, %v11278_v18  ;;  %11279 = vst [vmem:[#allocation56_spill] sm:$0xff] %v8454_v31  ;;  %vm11282_vm11 = vcmp.eq.s32.totalorder %v8064_v4, %v11123_v32  ;;  %v11283_v58 = vmov 0  ;;  %1783 = vmatmul.mubr.f32.gmra.mrb[22].mxu1 %v11265_v48  ;;  %v11313_v44 = vld [vmem:[#allocation22_spill] sm:$0xff] }
  0xa3   :  { %11280 = vst [vmem:[#allocation57_spill] sm:$0xff] %v8469_v1  ;;  %vm8480_vm14 = vmpackc.low %vm11282_vm11, %vm11281_vm1  ;;  %v10806_v60 = vand.u32 4294901760, %v8427_v27  ;;  %v10807_v9 = vand.u32 4294901760, %v8266_v13  ;;  %vm11286_vm1 = vcmp.eq.s32.totalorder %v11199_v36, %v7645_v59  ;;  %v11287_v30 = vmov 0  ;;  %2170 = vmatprep.mubr.f32.mxu1 %v11313_v44 }
  0xa4   :  { %v11284_v58 = vsel %vm8480_vm14, 4294967295, %v11283_v58  ;;  %vm8499_vm11 = vmpackc.low %vm317_vm10, %vm11286_vm1  ;;  %v6378_v49 = vpack.c.bf16 %v2139_v50, %v2132_v19  ;;  %v8503_v18 = vpack.c.bf16 %v2027_v11, %v2020_v12  ;;  %v8507_v14 = vand.u32 4294901760, %v592_v24  ;;  %6349 = vmatpush3.bf16.msk.msra.mxu0 %vm8480_vm14, %v11045_v37  ;;  %v11300_v11 = vld [vmem:[#allocation28_spill] sm:$0xff] }
  0xa5   :  { %11285 = vst [vmem:[#allocation58_spill] sm:$0xff] %v11284_v58  ;;  %v11288_v30 = vsel %vm8499_vm11, 4294967295, %v11287_v30  ;;  %v8514_v36 = vsub.f32 %v8387_v46, %v10803_v57  ;;  %v2146_v35 = vand.u32 4294901760, %v2145_v62  ;;  %v2153_v52 = vand.u32 4294901760, %v2152_v10  ;;  %v600_v10 = vld [vmem:[%s10544_s1 + $0xd0] sm:$0xff]  ;;  %6351 = vmatprep.subr.msk.bf16.mxu0 %vm8499_vm11, %v11045_v37  ;;  %v11312_v58 = vld [vmem:[#allocation38_spill] sm:$0xff] }
  0xa6   :  { %11289 = vst [vmem:[#allocation59_spill] sm:$0xff] %v11288_v30  ;;  %11290 = vst [vmem:[#allocation60_spill] sm:$0xff] %v8507_v14  ;;  %v8517_v19 = vsub.f32 %v584_v20, %v8454_v31  ;;  %v8526_v29 = vsub.f32 %v593_v63, %v8469_v1  ;;  %v8528_v12 = vand.u32 4294901760, %v601_v51  ;;  %vm11292_vm10 = vcmp.eq.s32.totalorder %v8123_v2, %v11123_v32 }
  0xa7   :  { %vm11294_vm1 = vcmp.eq.s32.totalorder %v11293_v38, %v11123_v32  ;;  %v11295_v20 = vmov 0  ;;  %v1902_v63 = vsub.f32 %v8427_v27, %v10806_v60  ;;  %v2033_v62 = vsub.f32 %v8266_v13, %v10807_v9  ;;  %v11298_v32 = vld [vmem:[#allocation27_spill] sm:$0xff]  ;;  %6373 = vmatpush3.bf16.msra.mxu1 %v11312_v58 }
  0xa8   :  { %11291 = vst [vmem:[#allocation61_spill] sm:$0xff] %v8528_v12  ;;  %vm8542_vm5 = vmpackc.low %vm11294_vm1, %vm11292_vm10  ;;  %v11297_v50 = vand.u32 4294901760, %v8289_v7  ;;  %vm11299_vm10 = vcmp.eq.s32.totalorder %v11298_v32, %v7645_v59  ;;  %vm11301_vm1 = vcmp.eq.s32.totalorder %v11300_v11, %v7645_v59  ;;  %v11302_v60 = vmov 0  ;;  %6375 = vmatprep.subr.bf16.mxu1 %v8395_v43 }
  0xa9   :  { %v11296_v20 = vsel %vm8542_vm5, 4294967295, %v11295_v20  ;;  %vm8563_vm11 = vmpackc.low %vm11301_vm1, %vm11299_vm10  ;;  %v8569_v41 = vsub.f32 %v592_v24, %v8507_v14  ;;  %v11308_v30 = vand.u32 4294901760, %v11307_v61  ;;  %v11309_v32 = vand.u32 4294901760, %v7819_v42  ;;  %6353 = vmatpush3.bf16.msk.msra.mxu0 %vm8542_vm5, %v11045_v37 }
  0xaa   :  { %v2040_v57 = vsub.f32 %v8289_v7, %v11297_v50  ;;  %v11303_v60 = vsel %vm8563_vm11, 4294967295, %v11302_v60  ;;  %v11305_v50 = vld [vmem:[#allocation26_spill] sm:$0xff]  ;;  %v11310_v46 = vand.u32 4294901760, %v7832_v0  ;;  %v1894_v56 = vand.u32 4294901760, %v8514_v36  ;;  %6355 = vmatprep.subr.msk.bf16.mxu0 %vm8563_vm11, %v11045_v37 }
  0xab   :  { %11304 = vst [vmem:[#allocation21_spill] sm:$0xff] %v8569_v41  ;;  %v11306_v27 = vand.u32 4294901760, %v11305_v50  ;;  %v6382_v9 = vpack.c.bf16 %v2153_v52, %v2146_v35  ;;  %v8587_v28 = vand.u32 4294901760, %v600_v10  ;;  %v11316_v58 = vand.u32 4294901760, %v8399_v15  ;;  %6377 = vmatpush3.bf16.msra.mxu1 %v8463_v5 }
  0xac   :  { %v8581_v11 = vpack.c.bf16 %v11310_v46, %v11309_v32  ;;  %v11315_v46 = vand.u32 4294901760, %v8397_v25  ;;  %v8601_v35 = vsub.f32 %v601_v51, %v8528_v12  ;;  %vm11317_vm10 = vcmp.eq.s32.totalorder %v6952_v3, %v7645_v59  ;;  %6379 = vmatprep.subr.bf16.mxu1 %v6378_v49 }
  0xad   :  { %v8575_v48 = vpack.c.bf16 %v11308_v30, %v11306_v27  ;;  %11314 = vst [vmem:[#allocation28_spill] sm:$0xff] %v8587_v28  ;;  %v2166_v30 = vsub.f32 %v8399_v15, %v11316_v58  ;;  %vm11318_vm1 = vcmp.eq.s32.totalorder %v11254_v40, %v7645_v59  ;;  %v11319_v43 = vmov 0 }
  0xae   :  { %11311 = vst [vmem:[#allocation27_spill] sm:$0xff] %v8581_v11  ;;  %v2159_v27 = vsub.f32 %v8397_v25, %v11315_v46  ;;  %vm8612_vm5 = vmpackc.low %vm11318_vm1, %vm11317_vm10  ;;  %v1903_v52 = vand.u32 4294901760, %v1902_v63  ;;  %v2034_v32 = vand.u32 4294901760, %v2033_v62  ;;  %v2041_v46 = vand.u32 4294901760, %v2040_v57 }
  0xaf   :  { %v11320_v43 = vsel %vm8612_vm5, 4294967295, %v11319_v43  ;;  %v11322_v51 = vand.u32 4294901760, %v8465_v23  ;;  %v11323_v36 = vand.u32 4294901760, %v8467_v21  ;;  %vm336_vm11 = vcmp.eq.s32.totalorder %v8061_v55, %v7645_v59  ;;  %6357 = vmatpush3.bf16.msk.msra.mxu0 %vm8612_vm5, %v11045_v37  ;;  %6381 = vmatpush3.bf16.msra.mxu1 %v8503_v18 }
  0xb0   :  { %11321 = vst [vmem:[#allocation26_spill] sm:$0xff] %v11320_v43  ;;  %vm337_vm10 = vcmp.eq.s32.totalorder %v8064_v4, %v7645_v59  ;;  %v11324_v40 = vand.u32 4294901760, %v8517_v19  ;;  %v8632_v63 = vsub.f32 %v600_v10, %v8587_v28  ;;  %v4966_v62 = vsel %vm336_vm11, 1.0, %v11107_v26  ;;  %6383 = vmatprep.subr.bf16.mxu1 %v6382_v9 }
  0xb1   :  { %v2047_v58 = vsub.f32 %v8465_v23, %v11322_v51  ;;  %v2054_v24 = vsub.f32 %v8467_v21, %v11323_v36  ;;  %v4967_v36 = vsel %vm337_vm10, 1.0, %v11107_v26  ;;  %vm8636_vm1 = vmpackc.low %vm337_vm10, %vm336_vm11  ;;  %v11325_v51 = vmov 0 }
  0xb2   :  { %v1908_v57 = vsub.f32 %v8517_v19, %v11324_v40  ;;  %v11326_v51 = vsel %vm8636_vm1, 4294967295, %v11325_v51  ;;  %v2160_v55 = vand.u32 4294901760, %v2159_v27  ;;  %v2167_v4 = vand.u32 4294901760, %v2166_v30  ;;  %1895 = vmatmul.mubr.f32.vlgmr.msra.gmra.mrb[24].mxu0 %v1894_v56  ;;  %v11336_v40 = vld [vmem:[#allocation29_spill] sm:$0xff] }
  0xb3   :  { %11327 = vst [vmem:[#allocation47_spill] sm:$0xff] %v11326_v51  ;;  %v11328_v5 = vand.u32 4294901760, %v8526_v29  ;;  %v11329_v44 = vpack.c.bf16 %v7844_v53, %v7801_v8  ;;  %v8650_v11 = vsub.f32 %v4966_v62, %v4966_v62  ;;  %v8652_v51 = vsub.f32 %v4967_v36, %v4967_v36  ;;  %1904 = vmatprep.mubr.f32.mxu0 %v1903_v52 }
  0xb4   :  { %vm338_vm11 = vcmp.eq.s32.totalorder %v8123_v2, %v7645_v59  ;;  %vm339_vm10 = vcmp.eq.s32.totalorder %v11293_v38, %v7645_v59  ;;  %v2048_v49 = vand.u32 4294901760, %v2047_v58  ;;  %v2055_v27 = vand.u32 4294901760, %v2054_v24 }
  0xb5   :  { %v1917_v10 = vsub.f32 %v8526_v29, %v11328_v5  ;;  %6391 = vmatprep.subr.bf16.mxu0 %v11329_v44  ;;  %v11330_v30 = vand.u32 4294901760, %v8569_v41  ;;  %vm8667_vm1 = vmpackc.low %vm339_vm10, %vm338_vm11  ;;  %v11331_v44 = vmov 0  ;;  %v6384_v62 = vpack.c.bf16 %v2041_v46, %v2034_v32 }
  0xb6   :  { %v11332_v44 = vsel %vm8667_vm1, 4294967295, %v11331_v44  ;;  %v1909_v58 = vand.u32 4294901760, %v1908_v57  ;;  %v10837_v24 = vand.u32 4294901760, %v8632_v63  ;;  %v11334_v36 = vpack.c.bf16 %v7848_v33, %v7846_v17 }
  0xb7   :  { %v1923_v5 = vsub.f32 %v8569_v41, %v11330_v30  ;;  %11333 = vst [vmem:[#allocation38_spill] sm:$0xff] %v11332_v44  ;;  %v11335_v30 = vld [vmem:[#allocation42_spill] sm:$0xff]  ;;  %v6386_v43 = vpack.c.bf16 %v2167_v4, %v2160_v55  ;;  %v11337_v44 = vpack.c.bf16 %v11307_v61, %v11305_v50  ;;  %v1918_v18 = vand.u32 4294901760, %v1917_v10  ;;  %6385 = vmatpush3.bf16.msra.mxu1 %v6384_v62 }
  0xb8   :  { %6393 = vmatpush3.bf16.msra.mxu0 %v11334_v36  ;;  %v6396_v41 = vpack.c.bf16 %v11336_v40, %v11335_v30  ;;  %v11338_v56 = vand.u32 4294901760, %v8601_v35  ;;  %v10835_v46 = vand.u32 4294901760, %v8650_v11  ;;  %v10836_v57 = vand.u32 4294901760, %v8652_v51  ;;  %v11339_v4 = vld [vmem:[#allocation18_spill] sm:$0xff] }
  0xb9   :  { %6395 = vmatprep.subr.bf16.mxu0 %v11337_v44  ;;  %v6388_v36 = vpack.c.bf16 %v2055_v27, %v2048_v49  ;;  %v1924_v9 = vand.u32 4294901760, %v1923_v5  ;;  %1910 = vmatmul.mubr.f32.gmra.mrb[26].mxu0 %v1909_v58  ;;  %v1938_v52 = vsub.f32 %v8632_v63, %v10837_v24  ;;  %v4968_v61 = vsel %vm338_vm11, 1.0, %v11107_v26  ;;  %v11340_v10 = vld [vmem:[#allocation46_spill] sm:$0xff]  ;;  %v11342_v5 = vld [vmem:[#allocation19_spill] sm:$0xff] }
  0xba   :  { %v1932_v32 = vsub.f32 %v8601_v35, %v11338_v56  ;;  %v4969_v50 = vsel %vm339_vm10, 1.0, %v11107_v26  ;;  %v3091_v55 = vsub.f32 %v8650_v11, %v10835_v46  ;;  %6387 = vmatprep.subr.bf16.mxu1 %v6386_v43  ;;  %v6400_v49 = vpack.c.bf16 %v11340_v10, %v11339_v4  ;;  %1919 = vmatprep.mubr.f32.mxu0 %v1918_v18  ;;  %v11343_v44 = vld [vmem:[#allocation7_spill] sm:$0xff] }
  0xbb   :  { %v3098_v27 = vsub.f32 %v8652_v51, %v10836_v57  ;;  %v11341_v2 = vpack.c.bf16 %v7832_v0, %v7819_v42  ;;  %v6402_v62 = vpack.c.bf16 %v11343_v44, %v11342_v5  ;;  %v8710_v56 = vsub.f32 %v4968_v61, %v4968_v61  ;;  %6389 = vmatpush3.bf16.msra.mxu1 %v6388_v36  ;;  %v11345_v42 = vld [vmem:[#allocation8_spill] sm:$0xff]  ;;  %v11348_v61 = vld [vmem:[#allocation11_spill] sm:$0xff] }
  0xbc   :  { %6397 = vmatpush3.bf16.msra.mxu0 %v6396_v41  ;;  %v1933_v38 = vand.u32 4294901760, %v1932_v32  ;;  %v3092_v58 = vand.u32 4294901760, %v3091_v55  ;;  %v8712_v41 = vsub.f32 %v4969_v50, %v4969_v50  ;;  %v1939_v46 = vand.u32 4294901760, %v1938_v52  ;;  %6423 = vmatprep.subr.msk.bf16.mxu1 %vm8111_vm13, %v11045_v37  ;;  %v11346_v0 = vld [vmem:[#allocation4_spill] sm:$0xff] }
  0xbd   :  { %6399 = vmatprep.subr.bf16.mxu0 %v11341_v2  ;;  %v3099_v43 = vand.u32 4294901760, %v3098_v27  ;;  %1925 = vmatmul.mubr.f32.gmra.mrb[28].mxu0 %v1924_v9  ;;  %v6404_v32 = vpack.c.bf16 %v11346_v0, %v11345_v42  ;;  %v11349_v55 = vld [vmem:[#allocation12_spill] sm:$0xff]  ;;  %v10838_v36 = vand.u32 4294901760, %v8710_v56  ;;  %v11352_v27 = vld [vmem:[#allocation53_spill] sm:$0xff]  ;;  %v11407_v18 = vand.u32 4294901760, %v8289_v7 }
  0xbe   :  { %1934 = vmatprep.mubr.f32.mxu0 %v1933_v38  ;;  %v6406_v50 = vpack.c.bf16 %v11349_v55, %v11348_v61  ;;  %2172 = vmatmul.mubr.f32.vlgmr.msra.gmra.mrb[24].mxu1 %v8322_v16  ;;  %v10839_v9 = vand.u32 4294901760, %v8712_v41 }
  0xbf   :  { %v8719_v2 = vpack.c.bf16 %v3099_v43, %v3092_v58  ;;  %6425 = vmatpush3.bf16.msk.msra.mxu1 %vm8167_vm6, %v11045_v37  ;;  %2177 = vmatprep.mubr.f32.mxu1 %v8362_v45 }
  0xc0   :  { %6401 = vmatpush3.bf16.msra.mxu0 %v6400_v49  ;;  %v11351_v49 = vld [vmem:[#allocation14_spill] sm:$0xff]  ;;  %v3112_v58 = vsub.f32 %v8712_v41, %v10839_v9  ;;  %6427 = vmatprep.subr.msk.bf16.mxu1 %vm11216_vm9, %v11045_v37 }
  0xc1   :  { %11347 = vst [vmem:[#allocation42_spill] sm:$0xff] %v8719_v2  ;;  %6403 = vmatprep.subr.bf16.mxu0 %v6402_v62  ;;  %1940 = vmatmul.mubr.f32.gmra.mrb[30].mxu0 %v1939_v46  ;;  %v6408_v38 = vpack.c.bf16 %v11352_v27, %v11351_v49  ;;  %v3105_v62 = vsub.f32 %v8710_v56, %v10838_v36  ;;  %v11354_v46 = vld [vmem:[#allocation54_spill] sm:$0xff] }
  0xc2   :  { %v6410_v57 = vpack.c.bf16 %v8229_v34, %v11354_v46  ;;  %2179 = vmatmul.mubr.f32.gmra.mrb[26].mxu1 %v8454_v31  ;;  %v3113_v2 = vand.u32 4294901760, %v3112_v58  ;;  %v11380_v31 = vand.u32 4294901760, %v11342_v5  ;;  %v11390_v5 = vand.u32 4294901760, %v11351_v49 }
  0xc3   :  { %v3106_v24 = vand.u32 4294901760, %v3105_v62  ;;  %6429 = vmatpush3.bf16.msk.msra.mxu1 %vm8223_vm8, %v11045_v37  ;;  %2184 = vmatprep.mubr.f32.mxu1 %v8469_v1  ;;  %v6414_v62 = vpack.c.bf16 %v8252_v22, %v8239_v47  ;;  %v11395_v49 = vand.u32 4294901760, %v8231_v54 }
  0xc4   :  { %6405 = vmatpush3.bf16.msra.mxu0 %v6404_v32  ;;  %v11355_v32 = vld [vmem:[#allocation33_spill] sm:$0xff]  ;;  %6431 = vmatprep.subr.msk.bf16.mxu1 %vm11232_vm15, %v11045_v37 }
  0xc5   :  { %6407 = vmatprep.subr.bf16.mxu0 %v6406_v50  ;;  %2328 = vmatprep.mubr.f32.mxu0 %v11355_v32  ;;  %v6412_v50 = vpack.c.bf16 %v8237_v6, %v8231_v54  ;;  %v8754_v45 = vpack.c.bf16 %v3113_v2, %v3106_v24  ;;  %v6416_v24 = vpack.c.bf16 %v8289_v7, %v8266_v13  ;;  %v11361_v2 = vand.u32 4294901760, %v11355_v32 }
  0xc6   :  { %2186 = vmatmul.mubr.f32.gmra.mrb[28].mxu1 %v8507_v14  ;;  %v11385_v32 = vand.u32 4294901760, %v11349_v55  ;;  %v11393_v55 = vand.u32 4294901760, %v11354_v46  ;;  %v8894_v54 = vadd.s32 320, %v6952_v3  ;;  %v11400_v46 = vld [vmem:[#allocation26_spill] sm:$0xff] }
  0xc7   :  { %11358 = vst [vmem:[#allocation29_spill] sm:$0xff] %v8754_v45  ;;  %6433 = vmatpush3.bf16.msk.msra.mxu1 %vm8285_vm0, %v11045_v37  ;;  %2191 = vmatprep.mubr.f32.mxu1 %v8528_v12  ;;  %v11363_v45 = vand.u32 4294901760, %v7801_v8  ;;  %v11369_v8 = vld [vmem:[#allocation31_spill] sm:$0xff] }
  0xc8   :  { %6409 = vmatpush3.bf16.msra.mxu0 %v6408_v38  ;;  %6435 = vmatprep.subr.msk.bf16.mxu1 %vm8302_vm12, %v11045_v37  ;;  %vm10858_vm11 = vcmp.eq.s32.totalorder %v11369_v8, %v7645_v59 }
  0xc9   :  { %6411 = vmatprep.subr.bf16.mxu0 %v6410_v57  ;;  %v6418_v57 = vpack.c.bf16 %v8399_v15, %v8397_v25 }
  0xca   :  { %2193 = vmatmul.mubr.f32.gmra.mrb[30].mxu1 %v8587_v28  ;;  %v11364_v28 = vand.u32 4294901760, %v7844_v53  ;;  %v11370_v53 = vld [vmem:[#allocation32_spill] sm:$0xff] }
  0xcb   :  { %6437 = vmatpush3.bf16.msk.msra.mxu1 %vm8349_vm4, %v11045_v37  ;;  %2462 = vmatprep.mubr.f32.mxu1 %v11361_v2  ;;  %v11368_v2 = vand.u32 4294901760, %v7848_v33  ;;  %vm10857_vm10 = vcmp.eq.s32.totalorder %v11370_v53, %v7645_v59  ;;  %v11376_v33 = vand.u32 4294901760, %v11336_v40  ;;  %v8824_v40 = vadd.s32 312, %v6952_v3 }
  0xcc   :  { %6413 = vmatpush3.bf16.msra.mxu0 %v6412_v50  ;;  %6439 = vmatprep.subr.msk.bf16.mxu1 %vm8371_vm7, %v11045_v37  ;;  %v6454_v12 = vpack.c.bf16 %v11364_v28, %v11363_v45  ;;  %v11372_v28 = vld [vmem:[#allocation50_spill] sm:$0xff]  ;;  %v11383_v45 = vand.u32 4294901760, %v11346_v0  ;;  %v11384_v53 = vand.u32 4294901760, %v11348_v61  ;;  %v11392_v61 = vld [vmem:[#allocation27_spill] sm:$0xff] }
  0xcd   :  { %6415 = vmatprep.subr.bf16.mxu0 %v6414_v62  ;;  %v6420_v62 = vpack.c.bf16 %v8467_v21, %v8465_v23 }
  0xce   :  { %v6470_v14 = vpack.c.bf16 %v11385_v32, %v11384_v53  ;;  %v11394_v32 = vand.u32 4294901760, %v8229_v34 }
  0xcf   :  { %6441 = vmatpush3.bf16.msk.msra.mxu1 %vm8414_vm2, %v11045_v37 }
  0xd0   :  { %6417 = vmatpush3.bf16.msra.mxu0 %v6416_v24  ;;  %6443 = vmatprep.subr.msk.bf16.mxu1 %vm8441_vm3, %v11045_v37  ;;  %v11367_v24 = vand.u32 4294901760, %v7846_v17  ;;  %v11375_v17 = vand.u32 4294901760, %v11335_v30  ;;  %v11378_v30 = vand.u32 4294901760, %v11339_v4  ;;  %v8869_v53 = vpack.c.bf16 %v11394_v32, %v11393_v55 }
  0xd1   :  { %6419 = vmatprep.subr.bf16.mxu0 %v6418_v57  ;;  %v11373_v57 = vld [vmem:[#allocation59_spill] sm:$0xff] }
  0xd2   :  { %v6456_v1 = vpack.c.bf16 %v11368_v2, %v11367_v24  ;;  %vm11374_vm1 = vnez %v11373_v57  ;;  %v8815_v24 = vadd.s32 304, %v6952_v3  ;;  %v11377_v2 = vld [vmem:[#allocation10_spill] sm:$0xff]  ;;  %v11381_v57 = vand.u32 4294901760, %v11343_v44 }
  0xd3   :  { %6445 = vmatpush3.bf16.msk.msra.mxu1 %vm8480_vm14, %v11045_v37  ;;  %vm11389_vm14 = vnez %v11303_v60  ;;  %v11391_v44 = vand.u32 4294901760, %v11352_v27  ;;  %v11396_v27 = vand.u32 4294901760, %v8237_v6  ;;  %v11484_v60 = vmov 0 }
  0xd4   :  { %6421 = vmatpush3.bf16.msra.mxu0 %v6420_v62  ;;  %6447 = vmatprep.subr.msk.bf16.mxu1 %vm11374_vm1, %v11045_v37  ;;  %v4950_v62 = vsel %vm10858_vm11, 1.0, %v11107_v26  ;;  %v6466_v16 = vpack.c.bf16 %v11381_v57, %v11380_v31  ;;  %v11387_v31 = vld [vmem:[#allocation35_spill] sm:$0xff]  ;;  %v11397_v57 = vand.u32 4294901760, %v8239_v47  ;;  %v11401_v47 = vld [vmem:[#allocation21_spill] sm:$0xff]  ;;  %vm11402_vm1 = vcmp.eq.s32.totalorder %v8815_v24, %v7645_v59 }
  0xd5   :  { %6455 = vmatprep.subr.bf16.mxu0 %v6454_v12  ;;  %v6460_v12 = vpack.c.bf16 %v11376_v33, %v11375_v17  ;;  %v11379_v17 = vand.u32 4294901760, %v11340_v10  ;;  %v8846_v4 = vsub.f32 %v4950_v62, %v4950_v62  ;;  %vm10860_vm11 = vcmp.eq.s32.totalorder %v11387_v31, %v7645_v59  ;;  %v11388_v10 = vld [vmem:[#allocation36_spill] sm:$0xff] }
  0xd6   :  { %v4952_v34 = vsel %vm10860_vm11, 1.0, %v11107_v26 }
  0xd7   :  { %2331 = vmatmul.mubr.f32.vlgmr.msra.gmra.mrb[32].mxu0 %v11372_v28  ;;  %v6464_v33 = vpack.c.bf16 %v11379_v17, %v11378_v30  ;;  %v11404_v30 = vld [vmem:[#allocation40_spill] sm:$0xff]  ;;  %v10870_v17 = vand.u32 4294901760, %v8846_v4  ;;  %v8929_v32 = vsub.f32 %v4952_v34, %v4952_v34 }
  0xd8   :  { %6457 = vmatpush3.bf16.msra.mxu0 %v6456_v1  ;;  %2337 = vmatprep.mubr.f32.mxu0 %v11377_v2  ;;  %v4951_v1 = vsel %vm10857_vm10, 1.0, %v11107_v26  ;;  %vm11386_vm10 = vnez %v11296_v20 }
  0xd9   :  { %6459 = vmatprep.subr.bf16.mxu0 %v8575_v48  ;;  %v11382_v48 = vand.u32 4294901760, %v11345_v42  ;;  %6449 = vmatpush3.bf16.msk.msra.mxu1 %vm11386_vm10, %v11045_v37  ;;  %v6472_v42 = vpack.c.bf16 %v11391_v44, %v11390_v5  ;;  %v8859_v0 = vsub.f32 %v4951_v1, %v4951_v1  ;;  %vm11399_vm10 = vcmp.eq.s32.totalorder %v11388_v10, %v7645_v59  ;;  %v11403_v1 = vld [vmem:[#allocation39_spill] sm:$0xff] }
  0xda   :  { %6451 = vmatprep.subr.msk.bf16.mxu1 %vm11389_vm14, %v11045_v37  ;;  %v4953_v6 = vsel %vm11399_vm10, 1.0, %v11107_v26  ;;  %vm324_vm11 = vcmp.eq.s32.totalorder %v11403_v1, %v7645_v59  ;;  %vm325_vm10 = vcmp.eq.s32.totalorder %v11404_v30, %v7645_v59  ;;  %v8918_v44 = vadd.s32 328, %v6952_v3 }
  0xdb   :  { %v6468_v8 = vpack.c.bf16 %v11383_v45, %v11382_v48  ;;  %2340 = vmatmul.mubr.f32.gmra.mrb[34].mxu0 %v8517_v19  ;;  %v8875_v45 = vpack.c.bf16 %v11396_v27, %v11395_v49  ;;  %v10866_v5 = vand.u32 4294901760, %v8859_v0  ;;  %v8931_v49 = vsub.f32 %v4953_v6, %v4953_v6  ;;  %v11417_v6 = vld [vmem:[#allocation25_spill] sm:$0xff] }
  0xdc   :  { %6461 = vmatpush3.bf16.msra.mxu0 %v6460_v12  ;;  %2346 = vmatprep.mubr.f32.mxu0 %v8526_v29  ;;  %v11398_v12 = vand.u32 4294901760, %v8252_v22  ;;  %v4970_v22 = vsel %vm11402_vm1, 1.0, %v11107_v26  ;;  %v11409_v27 = vand.u32 4294901760, %v11372_v28  ;;  %v4954_v34 = vsel %vm324_vm11, 1.0, %v11107_v26 }
  0xdd   :  { %6463 = vmatprep.subr.bf16.mxu0 %v11392_v61  ;;  %6453 = vmatpush3.bf16.msk.msra.mxu1 %vm8612_vm5, %v11045_v37  ;;  %vm11405_vm5 = vcmp.eq.s32.totalorder %v8824_v40, %v7645_v59  ;;  %11408 = vst [vmem:[#allocation18_spill] sm:$0xff] %v8931_v49  ;;  %v11416_v28 = vand.u32 4294901760, %v11377_v2  ;;  %v2986_v52 = vsub.f32 %v8859_v0, %v10866_v5  ;;  %v10863_v2 = vand.u32 4294901760, %v8929_v32 }
  0xde   :  { %v8883_v62 = vpack.c.bf16 %v11398_v12, %v11397_v57  ;;  %6487 = vmatprep.subr.msk.bf16.mxu1 %vm8111_vm13, %v11045_v37  ;;  %v4971_v48 = vsel %vm11405_vm5, 1.0, %v11107_v26  ;;  %v11410_v57 = vand.u32 4294901760, %v8397_v25  ;;  %v11411_v12 = vand.u32 4294901760, %v8399_v15 }
  0xdf   :  { %2349 = vmatmul.mubr.f32.gmra.mrb[36].mxu0 %v11401_v47  ;;  %vm342_vm13 = vcmp.eq.s32.totalorder %v8894_v54, %v7645_v59  ;;  %v8957_v25 = vsub.f32 %v4970_v22, %v4970_v22  ;;  %v8959_v15 = vsub.f32 %v4971_v48, %v4971_v48  ;;  %vm10889_vm5 = vcmp.eq.s32.totalorder %v11417_v6, %v7645_v59 }
  0xe0   :  { %6465 = vmatpush3.bf16.msra.mxu0 %v6464_v33  ;;  %2355 = vmatprep.mubr.f32.mxu0 %v8601_v35  ;;  %v11406_v33 = vand.u32 4294901760, %v8266_v13  ;;  %v8939_v61 = vpack.c.bf16 %v11411_v12, %v11410_v57  ;;  %v11413_v13 = vand.u32 4294901760, %v8467_v21  ;;  %v8968_v21 = vsub.f32 %v8846_v4, %v10870_v17  ;;  %v11442_v17 = vld [vmem:[#allocation47_spill] sm:$0xff] }
  0xe1   :  { %6467 = vmatprep.subr.bf16.mxu0 %v6466_v16  ;;  %2466 = vmatmul.mubr.f32.vlgmr.msra.gmra.mrb[32].mxu1 %v11409_v27  ;;  %v11412_v16 = vand.u32 4294901760, %v8465_v23  ;;  %11414 = vst [vmem:[#allocation46_spill] sm:$0xff] %v8957_v25  ;;  %11415 = vst [vmem:[#allocation19_spill] sm:$0xff] %v8959_v15  ;;  %v4955_v23 = vsel %vm325_vm10, 1.0, %v11107_v26  ;;  %v10862_v22 = vand.u32 4294901760, %v8931_v49  ;;  %v8989_v48 = vadd.s32 336, %v6952_v3 }
  0xe2   :  { %v8927_v55 = vpack.c.bf16 %v11407_v18, %v11406_v33  ;;  %6489 = vmatpush3.bf16.msk.msra.mxu1 %vm8167_vm6, %v11045_v37  ;;  %2473 = vmatprep.mubr.f32.mxu1 %v11416_v28  ;;  %vm10891_vm6 = vcmp.eq.s32.totalorder %v8918_v44, %v7645_v59  ;;  %v11418_v33 = vand.u32 4294901760, %v8517_v19  ;;  %v11419_v18 = vld [vmem:[#allocation22_spill] sm:$0xff]  ;;  %v8994_v43 = vsub.f32 %v4954_v34, %v4954_v34  ;;  %v11422_v27 = vld [vmem:[#allocation44_spill] sm:$0xff] }
  0xe3   :  { %v8945_v7 = vpack.c.bf16 %v11413_v13, %v11412_v16  ;;  %2358 = vmatmul.mubr.f32.gmra.mrb[38].mxu0 %v8632_v63  ;;  %6491 = vmatprep.subr.msk.bf16.mxu1 %vm11216_vm9, %v11045_v37  ;;  %vm10888_vm9 = vcmp.eq.s32.totalorder %v11422_v27, %v7645_v59  ;;  %v9001_v57 = vadd.s32 344, %v6952_v3  ;;  %v11423_v12 = vand.u32 4294901760, %v8526_v29 }
  0xe4   :  { %6469 = vmatpush3.bf16.msra.mxu0 %v6468_v8  ;;  %v4972_v8 = vsel %vm342_vm13, 1.0, %v11107_v26  ;;  %2665 = vmatprep.mubr.f32.mxu0 %v11419_v18  ;;  %11420 = vst [vmem:[#allocation7_spill] sm:$0xff] %v8994_v43  ;;  %v2980_v19 = vand.u32 4294901760, %v8968_v21  ;;  %v4956_v16 = vsel %vm10889_vm5, 1.0, %v11107_v26  ;;  %v10865_v13 = vand.u32 4294901760, %v8957_v25 }
  0xe5   :  { %6471 = vmatprep.subr.bf16.mxu0 %v6470_v14  ;;  %2477 = vmatmul.mubr.f32.gmra.mrb[34].mxu1 %v11418_v33  ;;  %v8996_v14 = vsub.f32 %v4955_v23, %v4955_v23  ;;  %v10864_v34 = vand.u32 4294901760, %v8959_v15  ;;  %v2987_v36 = vand.u32 4294901760, %v2986_v52  ;;  %v4973_v29 = vsel %vm10891_vm6, 1.0, %v11107_v26 }
  0xe6   :  { %6493 = vmatpush3.bf16.msk.msra.mxu1 %vm8223_vm8, %v11045_v37  ;;  %2484 = vmatprep.mubr.f32.mxu1 %v11423_v12  ;;  %v9022_v23 = vsub.f32 %v4972_v8, %v4972_v8  ;;  %v2993_v9 = vsub.f32 %v8929_v32, %v10863_v2  ;;  %v3000_v28 = vsub.f32 %v8931_v49, %v10862_v22  ;;  %v11425_v52 = vand.u32 4294901760, %v11401_v47  ;;  %v11427_v47 = vld [vmem:[#allocation23_spill] sm:$0xff] }
  0xe7   :  { %11421 = vst [vmem:[#allocation16_spill] sm:$0xff] %v8996_v14  ;;  %6495 = vmatprep.subr.msk.bf16.mxu1 %vm11232_vm15, %v11045_v37  ;;  %vm10887_vm8 = vcmp.eq.s32.totalorder %v8989_v48, %v7645_v59  ;;  %vm10886_vm15 = vcmp.eq.s32.totalorder %v9001_v57, %v7645_v59  ;;  %v10868_v8 = vand.u32 4294901760, %v8996_v14  ;;  %v9046_v33 = vadd.s32 352, %v6952_v3 }
  0xe8   :  { %6473 = vmatpush3.bf16.msra.mxu0 %v6472_v42  ;;  %11424 = vst [vmem:[#allocation8_spill] sm:$0xff] %v9022_v23  ;;  %v4957_v42 = vsel %vm10888_vm9, 1.0, %v11107_v26  ;;  %v11426_v12 = vand.u32 4294901760, %v8601_v35  ;;  %vm10867_vm1 = vcmp.eq.s32.totalorder %v11427_v47, %v7645_v59  ;;  %v3126_v22 = vsub.f32 %v8959_v15, %v10864_v34 }
  0xe9   :  { %6475 = vmatprep.subr.bf16.mxu0 %v8869_v53  ;;  %2488 = vmatmul.mubr.f32.gmra.mrb[36].mxu1 %v11425_v52  ;;  %v10869_v53 = vand.u32 4294901760, %v8994_v43  ;;  %v3119_v52 = vsub.f32 %v8957_v25, %v10865_v13  ;;  %v9062_v2 = vadd.s32 360, %v6952_v3  ;;  %v9068_v35 = vsub.f32 %v4973_v29, %v4973_v29 }
  0xea   :  { %6497 = vmatpush3.bf16.msk.msra.mxu1 %vm8285_vm0, %v11045_v37  ;;  %2495 = vmatprep.mubr.f32.mxu1 %v11426_v12  ;;  %v9070_v58 = vsub.f32 %v4956_v16, %v4956_v16  ;;  %v9072_v12 = vsub.f32 %v4957_v42, %v4957_v42  ;;  %v4974_v34 = vsel %vm10887_vm8, 1.0, %v11107_v26  ;;  %v2994_v13 = vand.u32 4294901760, %v2993_v9 }
  0xeb   :  { %6499 = vmatprep.subr.msk.bf16.mxu1 %vm8302_vm12, %v11045_v37  ;;  %11428 = vst [vmem:[#allocation4_spill] sm:$0xff] %v9068_v35  ;;  %v3001_v5 = vand.u32 4294901760, %v3000_v28  ;;  %v4975_v38 = vsel %vm10886_vm15, 1.0, %v11107_v26  ;;  %v11432_v16 = vand.u32 4294901760, %v8632_v63  ;;  %v4958_v29 = vsel %vm10867_vm1, 1.0, %v11107_v26 }
  0xec   :  { %6477 = vmatpush3.bf16.msra.mxu0 %v8875_v45  ;;  %11429 = vst [vmem:[#allocation11_spill] sm:$0xff] %v9070_v58  ;;  %11430 = vst [vmem:[#allocation12_spill] sm:$0xff] %v9072_v12  ;;  %v11431_v45 = vld [vmem:[#allocation24_spill] sm:$0xff]  ;;  %v3014_v42 = vsub.f32 %v8996_v14, %v10868_v8  ;;  %vm10884_vm12 = vcmp.eq.s32.totalorder %v9046_v33, %v7645_v59  ;;  %v9103_v63 = vpack.c.bf16 %v2987_v36, %v2980_v19  ;;  %v11435_v19 = vld [vmem:[#allocation30_spill] sm:$0xff]  ;;  %v11488_v1 = vmov 0 }
  0xed   :  { %6479 = vmatprep.subr.bf16.mxu0 %v8883_v62  ;;  %vm10885_vm0 = vcmp.eq.s32.totalorder %v11431_v45, %v7645_v59  ;;  %2499 = vmatmul.mubr.f32.gmra.mrb[38].mxu1 %v11432_v16  ;;  %v3007_v62 = vsub.f32 %v8994_v43, %v10869_v53  ;;  %v3120_v9 = vand.u32 4294901760, %v3119_v52  ;;  %v3127_v28 = vand.u32 4294901760, %v3126_v22  ;;  %v579_v16 = vld [vmem:[%s10544_s1 + $0x28] sm:$0xff]  ;;  %v11457_v14 = vld [vmem:[#allocation15_spill] sm:$0xff] }
  0xee   :  { %6501 = vmatpush3.bf16.msk.msra.mxu1 %vm8349_vm4, %v11045_v37  ;;  %2790 = vmatprep.mubr.f32.mxu1 %v11419_v18  ;;  %vm10872_vm1 = vcmp.eq.s32.totalorder %v9062_v2, %v7645_v59  ;;  %v9114_v39 = vsub.f32 %v4974_v34, %v4974_v34  ;;  %v9116_v18 = vsub.f32 %v4975_v38, %v4975_v38  ;;  %v4959_v22 = vsel %vm10885_vm0, 1.0, %v11107_v26  ;;  %v11437_v34 = vld [vmem:[#allocation41_spill] sm:$0xff]  ;;  %v11446_v53 = vld [vmem:[#allocation32_spill] sm:$0xff] }
  0xef   :  { %6503 = vmatprep.subr.msk.bf16.mxu1 %vm8371_vm7, %v11045_v37  ;;  %vm10871_vm4 = vcmp.eq.s32.totalorder %v11435_v19, %v7645_v59  ;;  %v9125_v36 = vpack.c.bf16 %v3001_v5, %v2994_v13  ;;  %v4976_v50 = vsel %vm10884_vm12, 1.0, %v11107_v26  ;;  %vm10883_vm7 = vcmp.eq.s32.totalorder %v11437_v34, %v7645_v59 }
  0xf0   :  { %6481 = vmatpush3.bf16.msra.mxu0 %v8927_v55  ;;  %11433 = vst [vmem:[#allocation55_spill] sm:$0xff] %v9114_v39  ;;  %11434 = vst [vmem:[#allocation14_spill] sm:$0xff] %v9116_v18  ;;  %v9127_v55 = vsub.f32 %v4958_v29, %v4958_v29  ;;  %v3008_v52 = vand.u32 4294901760, %v3007_v62  ;;  %v3015_v38 = vand.u32 4294901760, %v3014_v42  ;;  %v4977_v8 = vsel %vm10872_vm1, 1.0, %v11107_v26 }
  0xf1   :  { %6483 = vmatprep.subr.bf16.mxu0 %v8939_v61  ;;  %v9139_v61 = vand.u32 4294901760, %v579_v16  ;;  %v9144_v13 = vsub.f32 %v4959_v22, %v4959_v22  ;;  %v9146_v29 = vpack.c.bf16 %v3127_v28, %v3120_v9  ;;  %v4960_v62 = vsel %vm10871_vm4, 1.0, %v11107_v26 }
  0xf2   :  { %11436 = vst [vmem:[#allocation53_spill] sm:$0xff] %v9127_v55  ;;  %6505 = vmatpush3.bf16.msk.msra.mxu1 %vm8414_vm2, %v11045_v37  ;;  %v9153_v42 = vadd.s32 368, %v6952_v3  ;;  %v9159_v5 = vsub.f32 %v4976_v50, %v4976_v50  ;;  %v4961_v9 = vsel %vm10883_vm7, 1.0, %v11107_v26  ;;  %v9167_v22 = vadd.s32 376, %v6952_v3 }
  0xf3   :  { %11438 = vst [vmem:[#allocation20_spill] sm:$0xff] %v9139_v61  ;;  %11440 = vst [vmem:[#allocation54_spill] sm:$0xff] %v9144_v13  ;;  %6507 = vmatprep.subr.msk.bf16.mxu1 %vm8441_vm3, %v11045_v37  ;;  %vm11443_vm2 = vnez %v11442_v17  ;;  %vm11447_vm3 = vcmp.eq.s32.totalorder %v11446_v53, %v7645_v59  ;;  %v11448_v50 = vmov 0  ;;  %v9182_v21 = vsub.f32 %v4977_v8, %v4977_v8  ;;  %v11455_v8 = vld [vmem:[#allocation58_spill] sm:$0xff] }
  0xf4   :  { %6485 = vmatpush3.bf16.msra.mxu0 %v8945_v7  ;;  %v11444_v7 = vld [vmem:[#allocation31_spill] sm:$0xff]  ;;  %v10890_v28 = vand.u32 4294901760, %v9068_v35  ;;  %v9187_v17 = vpack.c.bf16 %v3015_v38, %v3008_v52  ;;  %v9189_v15 = vsub.f32 %v4960_v62, %v4960_v62  ;;  %v11452_v53 = vand.u32 4294901760, %v8650_v11 }
  0xf5   :  { %6519 = vmatprep.subr.msk.bf16.mxu0 %vm11443_vm2, %v11045_v37  ;;  %vm11445_vm4 = vcmp.eq.s32.totalorder %v11444_v7, %v7645_v59  ;;  %v9192_v7 = vsub.f32 %v579_v16, %v9139_v61  ;;  %v11453_v25 = vand.u32 4294901760, %v8652_v51  ;;  %v9204_v43 = vsub.f32 %v4961_v9, %v4961_v9 }
  0xf6   :  { %vm9178_vm1 = vmpackc.low %vm11447_vm3, %vm11445_vm4  ;;  %vm11456_vm4 = vnez %v11455_v8  ;;  %vm348_vm3 = vcmp.eq.s32.totalorder %v9153_v42, %v7645_v59  ;;  %v11458_v16 = vand.u32 4294901760, %v8710_v56  ;;  %v11459_v52 = vand.u32 4294901760, %v8712_v41  ;;  %v11465_v8 = vld [vmem:[#allocation43_spill] sm:$0xff]  ;;  %v603_v42 = vld [vmem:[%s10544_s1 + $0xe8] sm:$0xff] }
  0xf7   :  { %v11449_v50 = vsel %vm9178_vm1, 4294967295, %v11448_v50  ;;  %11451 = vst [vmem:[#allocation6_spill] sm:$0xff] %v9192_v7  ;;  %v9198_v49 = vpack.c.bf16 %v11453_v25, %v11452_v53  ;;  %6509 = vmatpush3.bf16.msk.msra.mxu1 %vm11456_vm4, %v11045_v37  ;;  %2667 = vmatmul.mubr.f32.vlgmr.msra.gmra.mrb[40].mxu0 %v11457_v14  ;;  %v11461_v25 = vld [vmem:[#allocation59_spill] sm:$0xff]  ;;  %v11463_v62 = vand.u32 4294901760, %v9022_v23  ;;  %vm10918_vm7 = vcmp.eq.s32.totalorder %v9167_v22, %v7645_v59  ;;  %v11464_v53 = vld [vmem:[#allocation17_spill] sm:$0xff] }
  0xf8   :  { %11450 = vst [vmem:[#allocation33_spill] sm:$0xff] %v11449_v50  ;;  %v9212_v38 = vpack.c.bf16 %v11459_v52, %v11458_v16  ;;  %6521 = vmatpush3.bf16.msk.msra.mxu0 %vm9178_vm1, %v11045_v37  ;;  %vm11462_vm4 = vnez %v11461_v25  ;;  %vm10917_vm12 = vcmp.eq.s32.totalorder %v11464_v53, %v7645_v59  ;;  %2672 = vmatprep.mubr.f32.mxu0 %v11465_v8  ;;  %v11466_v16 = vld [vmem:[#allocation38_spill] sm:$0xff]  ;;  %v11470_v52 = vmov 0 }
  0xf9   :  { %11454 = vst [vmem:[#allocation45_spill] sm:$0xff] %v9198_v49  ;;  %6511 = vmatprep.subr.msk.bf16.mxu1 %vm11462_vm4, %v11045_v37  ;;  %v3133_v9 = vsub.f32 %v9022_v23, %v11463_v62  ;;  %vm11467_vm0 = vnez %v11466_v16  ;;  %vm11468_vm15 = vcmp.eq.s32.totalorder %v11387_v31, %v7645_v59  ;;  %vm11469_vm4 = vcmp.eq.s32.totalorder %v11388_v10, %v7645_v59  ;;  %v11511_v23 = vld [vmem:[#allocation29_spill] sm:$0xff] }
  0xfa   :  { %11460 = vst [vmem:[#allocation9_spill] sm:$0xff] %v9212_v38  ;;  %6523 = vmatprep.subr.msk.bf16.mxu0 %vm11467_vm0, %v11045_v37  ;;  %vm9237_vm8 = vmpackc.low %vm11469_vm4, %vm11468_vm15  ;;  %v3140_v25 = vsub.f32 %v9068_v35, %v10890_v28  ;;  %v11473_v62 = vand.u32 4294901760, %v9070_v58  ;;  %v11474_v49 = vand.u32 4294901760, %v9072_v12  ;;  %vm11475_vm9 = vcmp.eq.s32.totalorder %v8815_v24, %v7645_v59  ;;  %v11482_v24 = vld [vmem:[#allocation56_spill] sm:$0xff] }
  0xfb   :  { %v11471_v52 = vsel %vm9237_vm8, 4294967295, %v11470_v52  ;;  %vm11476_vm15 = vcmp.eq.s32.totalorder %v8824_v40, %v7645_v59  ;;  %v11477_v31 = vmov 0  ;;  %v4978_v10 = vsel %vm348_vm3, 1.0, %v11107_v26  ;;  %2674 = vmatmul.mubr.f32.gmra.mrb[42].mxu0 %v11482_v24 }
  0xfc   :  { %11472 = vst [vmem:[#allocation37_spill] sm:$0xff] %v11471_v52  ;;  %v3021_v38 = vsub.f32 %v9070_v58, %v11473_v62  ;;  %v3028_v16 = vsub.f32 %v9072_v12, %v11474_v49  ;;  %vm9256_vm4 = vmpackc.low %vm11476_vm15, %vm11475_vm9  ;;  %v11480_v62 = vld [vmem:[#allocation34_spill] sm:$0xff]  ;;  %vm11481_vm6 = vnez %v11296_v20  ;;  %v4979_v40 = vsel %vm10918_vm7, 1.0, %v11107_v26  ;;  %6525 = vmatpush3.bf16.msk.msra.mxu0 %vm9237_vm8, %v11045_v37  ;;  %v11483_v49 = vld [vmem:[#allocation57_spill] sm:$0xff] }
  0xfd   :  { %v11478_v31 = vsel %vm9256_vm4, 4294967295, %v11477_v31  ;;  %vm10910_vm5 = vcmp.eq.s32.totalorder %v11480_v62, %v7645_v59  ;;  %6513 = vmatpush3.bf16.msk.msra.mxu1 %vm11481_vm6, %v11045_v37  ;;  %v4962_v50 = vsel %vm10917_vm12, 1.0, %v11107_v26  ;;  %v3134_v20 = vand.u32 4294901760, %v3133_v9  ;;  %2679 = vmatprep.mubr.f32.mxu0 %v11483_v49 }
  0xfe   :  { %11479 = vst [vmem:[#allocation49_spill] sm:$0xff] %v11478_v31  ;;  %6515 = vmatprep.subr.msk.bf16.mxu1 %vm11389_vm14, %v11045_v37  ;;  %v9290_v58 = vadd.s32 384, %v6952_v3  ;;  %v9293_v35 = vadd.s32 392, %v6952_v3  ;;  %6527 = vmatprep.subr.msk.bf16.mxu0 %vm9256_vm4, %v11045_v37  ;;  %vm9305_vm14 = vmpackc.low %vm325_vm10, %vm324_vm11  ;;  %v3141_v9 = vand.u32 4294901760, %v3140_v25  ;;  %v3022_v12 = vand.u32 4294901760, %v3021_v38 }
  0xff   :  { %v11485_v60 = vsel %vm9305_vm14, 4294967295, %v11484_v60  ;;  %v3029_v28 = vand.u32 4294901760, %v3028_v16  ;;  %v9309_v3 = vsub.f32 %v4978_v10, %v4978_v10  ;;  %vm11487_vm6 = vcmp.eq.s32.totalorder %v8918_v44, %v7645_v59  ;;  %v11494_v44 = vld [vmem:[#allocation60_spill] sm:$0xff] }
 0x100   :  { %11486 = vst [vmem:[#allocation50_spill] sm:$0xff] %v11485_v60  ;;  %vm9317_vm9 = vmpackc.low %vm11487_vm6, %vm342_vm13  ;;  %v9321_v30 = vsub.f32 %v4979_v40, %v4979_v40  ;;  %v9323_v31 = vsub.f32 %v4962_v50, %v4962_v50  ;;  %v11491_v25 = vand.u32 4294901760, %v9114_v39  ;;  %v11492_v16 = vand.u32 4294901760, %v9192_v7  ;;  %2681 = vmatmul.mubr.f32.gmra.mrb[44].mxu0 %v11494_v44 }
 0x101   :  { %v11489_v1 = vsel %vm9317_vm9, 4294967295, %v11488_v1  ;;  %vm11493_vm11 = vnez %v11400_v46  ;;  %v11495_v10 = vand.u32 4294901760, %v9116_v18  ;;  %v11496_v40 = vand.u32 4294901760, %v9127_v55  ;;  %6529 = vmatpush3.bf16.msk.msra.mxu0 %vm9305_vm14, %v11045_v37  ;;  %v11498_v46 = vld [vmem:[#allocation42_spill] sm:$0xff] }
 0x102   :  { %11490 = vst [vmem:[#allocation10_spill] sm:$0xff] %v11489_v1  ;;  %v9328_v38 = vsub.f32 %v9114_v39, %v11491_v25  ;;  %v2917_v54 = vsub.f32 %v9192_v7, %v11492_v16  ;;  %6517 = vmatpush3.bf16.msk.msra.mxu1 %vm11493_vm11, %v11045_v37  ;;  %v11497_v25 = vld [vmem:[#allocation13_spill] sm:$0xff]  ;;  %v578_v16 = vld [vmem:[%s10544_s1 + $0x20] sm:$0xff]  ;;  %vm10929_vm13 = vcmp.eq.s32.totalorder %v9290_v58, %v7645_v59 }
 0x103   :  { %v3154_v50 = vsub.f32 %v9116_v18, %v11495_v10  ;;  %v3035_v52 = vsub.f32 %v9127_v55, %v11496_v40  ;;  %vm10925_vm10 = vcmp.eq.s32.totalorder %v11497_v25, %v7645_v59  ;;  %6551 = vmatprep.subr.bf16.mxu1 %v11498_v46  ;;  %v4963_v10 = vsel %vm10910_vm5, 1.0, %v11107_v26  ;;  %v11500_v55 = vld [vmem:[#allocation61_spill] sm:$0xff]  ;;  %6531 = vmatprep.subr.msk.bf16.mxu0 %vm9317_vm9, %v11045_v37 }
 0x104   :  { %v11499_v40 = vand.u32 4294901760, %v9144_v13  ;;  %vm10926_vm15 = vcmp.eq.s32.totalorder %v9293_v35, %v7645_v59  ;;  %2686 = vmatprep.mubr.f32.mxu0 %v11500_v55  ;;  %vm11501_vm6 = vcmp.eq.s32.totalorder %v11417_v6, %v7645_v59  ;;  %vm11502_vm11 = vcmp.eq.s32.totalorder %v11422_v27, %v7645_v59 }
 0x105   :  { %vm9373_vm5 = vmpackc.low %vm11502_vm11, %vm11501_vm6  ;;  %v9379_v60 = vpack.c.bf16 %v3029_v28, %v3022_v12  ;;  %2792 = vmatmul.mubr.f32.vlgmr.msra.gmra.mrb[40].mxu1 %v11457_v14  ;;  %vm11505_vm12 = vcmp.eq.s32.totalorder %v8989_v48, %v7645_v59  ;;  %vm11506_vm7 = vcmp.eq.s32.totalorder %v9001_v57, %v7645_v59  ;;  %v3148_v27 = vand.u32 4294901760, %v9328_v38  ;;  %v11509_v12 = vld [vmem:[#allocation48_spill] sm:$0xff] }
 0x106   :  { %v3042_v7 = vsub.f32 %v9144_v13, %v11499_v40  ;;  %v9377_v40 = vpack.c.bf16 %v3141_v9, %v3134_v20  ;;  %vm9390_vm6 = vmpackc.low %vm11506_vm7, %vm11505_vm12  ;;  %vm10928_vm11 = vcmp.eq.s32.totalorder %v11509_v12, %v7645_v59  ;;  %v2918_v28 = vand.u32 4294901760, %v2917_v54  ;;  %v587_v14 = vld [vmem:[%s10544_s1 + $0x68] sm:$0xff]  ;;  %6553 = vmatpush3.bf16.msra.mxu1 %v9103_v63  ;;  %v586_v63 = vld [vmem:[%s10544_s1 + $0x60] sm:$0xff]  ;;  %2797 = vmatprep.mubr.f32.mxu1 %v11465_v8 }
 0x107   :  { %v9397_v20 = vand.u32 4294901760, %v578_v16  ;;  %v11510_v48 = vld [vmem:[#allocation28_spill] sm:$0xff]  ;;  %v4980_v57 = vsel %vm10929_vm13, 1.0, %v11107_v26  ;;  %v4981_v9 = vsel %vm10926_vm15, 1.0, %v11107_v26  ;;  %v4964_v38 = vsel %vm10925_vm10, 1.0, %v11107_v26  ;;  %6533 = vmatpush3.bf16.msk.msra.mxu0 %vm9373_vm5, %v11045_v37  ;;  %6555 = vmatprep.subr.bf16.mxu1 %v11511_v23 }
 0x108   :  { %2688 = vmatmul.mubr.f32.gmra.mrb[46].mxu0 %v11510_v48  ;;  %v3155_v18 = vand.u32 4294901760, %v3154_v50  ;;  %v3036_v13 = vand.u32 4294901760, %v3035_v52  ;;  %v3043_v1 = vand.u32 4294901760, %v3042_v7  ;;  %6535 = vmatprep.subr.msk.bf16.mxu0 %vm9390_vm6, %v11045_v37  ;;  %vm11512_vm12 = vcmp.eq.s32.totalorder %v11427_v47, %v7645_v59 }
 0x109   :  { %vm11513_vm7 = vcmp.eq.s32.totalorder %v11431_v45, %v7645_v59  ;;  %v9439_v52 = vsub.f32 %v4963_v10, %v4963_v10  ;;  %v11516_v7 = vand.u32 4294901760, %v9159_v5  ;;  %v11517_v50 = vand.u32 4294901760, %v9182_v21  ;;  %2799 = vmatmul.mubr.f32.gmra.mrb[42].mxu1 %v11482_v24  ;;  %2919 = vmatprep.mubr.f32.mxu0 %v2918_v28 }
 0x10a   :  { %vm9435_vm10 = vmpackc.low %vm11513_vm7, %vm11512_vm12  ;;  %v9447_v54 = vand.u32 4294901760, %v587_v14  ;;  %vm11518_vm12 = vcmp.eq.s32.totalorder %v9046_v33, %v7645_v59  ;;  %vm11519_vm7 = vcmp.eq.s32.totalorder %v9062_v2, %v7645_v59  ;;  %v11520_v47 = vmov 0  ;;  %v595_v33 = vld [vmem:[%s10544_s1 + $0xa8] sm:$0xff]  ;;  %6557 = vmatpush3.bf16.msra.mxu1 %v9125_v36  ;;  %2804 = vmatprep.mubr.f32.mxu1 %v11483_v49 }
 0x10b   :  { %v3161_v23 = vsub.f32 %v9159_v5, %v11516_v7  ;;  %v3168_v39 = vsub.f32 %v9182_v21, %v11517_v50  ;;  %vm9456_vm15 = vmpackc.low %vm11519_vm7, %vm11518_vm12  ;;  %v9460_v45 = vsub.f32 %v4980_v57, %v4980_v57  ;;  %v9462_v10 = vsub.f32 %v4981_v9, %v4981_v9  ;;  %6537 = vmatpush3.bf16.msk.msra.mxu0 %vm9435_vm10, %v11045_v37 }
 0x10c   :  { %v11521_v47 = vsel %vm9456_vm15, 4294967295, %v11520_v47  ;;  %v9465_v7 = vsub.f32 %v578_v16, %v9397_v20  ;;  %v9467_v50 = vand.u32 4294901760, %v586_v63  ;;  %v4965_v2 = vsel %vm10928_vm11, 1.0, %v11107_v26  ;;  %6559 = vmatprep.subr.bf16.mxu1 %v9146_v29  ;;  %6539 = vmatprep.subr.msk.bf16.mxu0 %vm9456_vm15, %v11045_v37 }
 0x10d   :  { %v9478_v24 = vsub.f32 %v4964_v38, %v4964_v38  ;;  %v11523_v16 = vand.u32 4294901760, %v9189_v15  ;;  %v10933_v57 = vand.u32 4294901760, %v9309_v3  ;;  %v6566_v36 = vpack.c.bf16 %v3155_v18, %v3148_v27  ;;  %2806 = vmatmul.mubr.f32.gmra.mrb[44].mxu1 %v11494_v44 }
 0x10e   :  { %11522 = vst [vmem:[#allocation35_spill] sm:$0xff] %v9467_v50  ;;  %v9488_v49 = vpack.c.bf16 %v3043_v1, %v3036_v13  ;;  %v11524_v9 = vand.u32 4294901760, %v9204_v43  ;;  %v10932_v26 = vand.u32 4294901760, %v9321_v30  ;;  %vm11525_vm12 = vcmp.eq.s32.totalorder %v11435_v19, %v7645_v59  ;;  %6561 = vmatpush3.bf16.msra.mxu1 %v9187_v17  ;;  %2811 = vmatprep.mubr.f32.mxu1 %v11500_v55 }
 0x10f   :  { %v3049_v28 = vsub.f32 %v9189_v15, %v11523_v16  ;;  %v594_v16 = vld [vmem:[%s10544_s1 + $0xa0] sm:$0xff]  ;;  %vm11526_vm7 = vcmp.eq.s32.totalorder %v11437_v34, %v7645_v59  ;;  %v3162_v13 = vand.u32 4294901760, %v3161_v23  ;;  %v3169_v29 = vand.u32 4294901760, %v3168_v39  ;;  %6563 = vmatprep.subr.bf16.mxu1 %v9377_v40 }
 0x110   :  { %v3056_v38 = vsub.f32 %v9204_v43, %v11524_v9  ;;  %vm9506_vm11 = vmpackc.low %vm11526_vm7, %vm11525_vm12  ;;  %v9511_v1 = vsub.f32 %v587_v14, %v9447_v54  ;;  %v9513_v27 = vand.u32 4294901760, %v595_v33  ;;  %vm11530_vm13 = vcmp.eq.s32.totalorder %v9167_v22, %v7645_v59 }
 0x111   :  { %vm9522_vm15 = vmpackc.low %vm11530_vm13, %vm348_vm3  ;;  %v11531_v19 = vmov 0  ;;  %v10936_v34 = vand.u32 4294901760, %v9465_v7  ;;  %v10937_v14 = vand.u32 4294901760, %v9439_v52  ;;  %v9530_v23 = vsub.f32 %v586_v63, %v9467_v50  ;;  %6541 = vmatpush3.bf16.msk.msra.mxu0 %vm9506_vm11, %v11045_v37  ;;  %2813 = vmatmul.mubr.f32.gmra.mrb[46].mxu1 %v11510_v48 }
 0x112   :  { %11529 = vst [vmem:[#allocation36_spill] sm:$0xff] %v9513_v27  ;;  %v11532_v19 = vsel %vm9522_vm15, 4294967295, %v11531_v19  ;;  %v9537_v22 = vsub.f32 %v4965_v2, %v4965_v2  ;;  %v3050_v44 = vand.u32 4294901760, %v3049_v28  ;;  %v3175_v9 = vsub.f32 %v9309_v3, %v10933_v57  ;;  %v602_v28 = vld [vmem:[%s10544_s1 + $0xe0] sm:$0xff]  ;;  %6543 = vmatprep.subr.msk.bf16.mxu0 %vm9522_vm15, %v11045_v37  ;;  %6565 = vmatpush3.bf16.msra.mxu1 %v9379_v60 }
 0x113   :  { %11533 = vst [vmem:[#allocation27_spill] sm:$0xff] %v9530_v23  ;;  %v9542_v39 = vand.u32 4294901760, %v594_v16  ;;  %v3057_v63 = vand.u32 4294901760, %v3056_v38  ;;  %v3182_v17 = vsub.f32 %v9321_v30, %v10932_v26  ;;  %v10938_v55 = vand.u32 4294901760, %v9460_v45  ;;  %3200 = vmatprep.mubr.f32.mxu1 %v9139_v61  ;;  %6567 = vmatprep.subr.bf16.mxu1 %v6566_v36 }
 0x114   :  { %vm11535_vm3 = vcmp.eq.s32.totalorder %v11464_v53, %v7645_v59  ;;  %vm11536_vm13 = vcmp.eq.s32.totalorder %v11480_v62, %v7645_v59  ;;  %v11537_v40 = vmov 0  ;;  %v6570_v38 = vpack.c.bf16 %v3169_v29, %v3162_v13 }
 0x115   :  { %11534 = vst [vmem:[#allocation26_spill] sm:$0xff] %v9542_v39  ;;  %vm9565_vm12 = vmpackc.low %vm11536_vm13, %vm11535_vm3  ;;  %v9571_v57 = vsub.f32 %v595_v33, %v9513_v27  ;;  %v9573_v2 = vand.u32 4294901760, %v603_v42  ;;  %vm11541_vm7 = vcmp.eq.s32.totalorder %v9290_v58, %v7645_v59  ;;  %vm11542_vm15 = vcmp.eq.s32.totalorder %v9293_v35, %v7645_v59 }
 0x116   :  { %v11538_v40 = vsel %vm9565_vm12, 4294967295, %v11537_v40  ;;  %vm9582_vm3 = vmpackc.low %vm11542_vm15, %vm11541_vm7  ;;  %v11543_v53 = vmov 0  ;;  %v2923_v62 = vsub.f32 %v9465_v7, %v10936_v34  ;;  %v11546_v33 = vand.u32 4294901760, %v9323_v31  ;;  %6545 = vmatpush3.bf16.msk.msra.mxu0 %vm9565_vm12, %v11045_v37  ;;  %6569 = vmatpush3.bf16.msra.mxu1 %v9488_v49 }
 0x117   :  { %11539 = vst [vmem:[#allocation21_spill] sm:$0xff] %v11538_v40  ;;  %11540 = vst [vmem:[#allocation39_spill] sm:$0xff] %v9573_v2  ;;  %v11544_v53 = vsel %vm9582_vm3, 4294967295, %v11543_v53  ;;  %v3070_v48 = vsub.f32 %v9439_v52, %v10937_v14  ;;  %v9600_v26 = vsub.f32 %v594_v16, %v9542_v39  ;;  %v9603_v34 = vand.u32 4294901760, %v602_v28  ;;  %6547 = vmatprep.subr.msk.bf16.mxu0 %vm9582_vm3, %v11045_v37 }
 0x118   :  { %11545 = vst [vmem:[#allocation40_spill] sm:$0xff] %v11544_v53  ;;  %v3063_v13 = vsub.f32 %v9323_v31, %v11546_v33  ;;  %v3176_v33 = vand.u32 4294901760, %v3175_v9  ;;  %v3183_v14 = vand.u32 4294901760, %v3182_v17  ;;  %v3189_v60 = vsub.f32 %v9460_v45, %v10938_v55  ;;  %6571 = vmatprep.subr.bf16.mxu1 %v6570_v38 }
 0x119   :  { %11547 = vst [vmem:[#allocation25_spill] sm:$0xff] %v9603_v34  ;;  %v11548_v29 = vand.u32 4294901760, %v9462_v10  ;;  %vm11549_vm15 = vcmp.eq.s32.totalorder %v11497_v25, %v7645_v59  ;;  %vm11550_vm13 = vcmp.eq.s32.totalorder %v11509_v12, %v7645_v59  ;;  %v11551_v36 = vmov 0 }
 0x11a   :  { %vm9623_vm7 = vmpackc.low %vm11550_vm13, %vm11549_vm15  ;;  %v6572_v9 = vpack.c.bf16 %v3057_v63, %v3050_v44  ;;  %v11554_v17 = vand.u32 4294901760, %v9511_v1  ;;  %v9632_v35 = vsub.f32 %v603_v42, %v9573_v2  ;;  %v2924_v58 = vand.u32 4294901760, %v2923_v62 }
 0x11b   :  { %v3196_v16 = vsub.f32 %v9462_v10, %v11548_v29  ;;  %v11552_v36 = vsel %vm9623_vm7, 4294967295, %v11551_v36  ;;  %v3064_v61 = vand.u32 4294901760, %v3063_v13  ;;  %v3071_v25 = vand.u32 4294901760, %v3070_v48  ;;  %6549 = vmatpush3.bf16.msk.msra.mxu0 %vm9623_vm7, %v11045_v37 }
 0x11c   :  { %11553 = vst [vmem:[#allocation22_spill] sm:$0xff] %v11552_v36  ;;  %v2932_v55 = vsub.f32 %v9511_v1, %v11554_v17  ;;  %v11555_v53 = vand.u32 4294901760, %v9530_v23  ;;  %v11556_v44 = vand.u32 4294901760, %v9478_v24  ;;  %v11557_v17 = vand.u32 4294901760, %v9537_v22  ;;  %6573 = vmatpush3.bf16.msra.mxu1 %v6572_v9  ;;  %v11564_v9 = vld [vmem:[#allocation19_spill] sm:$0xff] }
 0x11d   :  { %v9646_v62 = vsub.f32 %v602_v28, %v9603_v34  ;;  %v6584_v49 = vpack.c.bf16 %v8859_v0, %v8846_v4  ;;  %v3190_v13 = vand.u32 4294901760, %v3189_v60  ;;  %v3197_v48 = vand.u32 4294901760, %v3196_v16  ;;  %v11563_v16 = vld [vmem:[#allocation46_spill] sm:$0xff] }
 0x11e   :  { %v2938_v12 = vsub.f32 %v9530_v23, %v11555_v53  ;;  %v3077_v63 = vsub.f32 %v9478_v24, %v11556_v44  ;;  %v3084_v29 = vsub.f32 %v9537_v22, %v11557_v17  ;;  %v6574_v53 = vpack.c.bf16 %v3183_v14, %v3176_v33  ;;  %2925 = vmatmul.mubr.f32.vlgmr.msra.gmra.mrb[48].mxu0 %v2924_v58 }
 0x11f   :  { %v11558_v44 = vpack.c.bf16 %v8652_v51, %v8650_v11  ;;  %v2933_v17 = vand.u32 4294901760, %v2932_v55  ;;  %v11559_v42 = vand.u32 4294901760, %v9571_v57  ;;  %v10952_v59 = vand.u32 4294901760, %v9632_v35  ;;  %v11561_v51 = vld [vmem:[#allocation18_spill] sm:$0xff] }
 0x120   :  { %v6576_v36 = vpack.c.bf16 %v3071_v25, %v3064_v61  ;;  %v2939_v23 = vand.u32 4294901760, %v2938_v12  ;;  %v3078_v38 = vand.u32 4294901760, %v3077_v63  ;;  %v3085_v40 = vand.u32 4294901760, %v3084_v29  ;;  %6575 = vmatprep.subr.bf16.mxu1 %v6574_v53 }
 0x121   :  { %6583 = vmatprep.subr.bf16.mxu0 %v11558_v44  ;;  %v2947_v28 = vsub.f32 %v9571_v57, %v11559_v42  ;;  %v11560_v14 = vand.u32 4294901760, %v9600_v26  ;;  %v10951_v11 = vand.u32 4294901760, %v9646_v62  ;;  %v6588_v55 = vpack.c.bf16 %v11561_v51, %v8929_v32  ;;  %2934 = vmatprep.mubr.f32.mxu0 %v2933_v17  ;;  %v11571_v17 = vld [vmem:[#allocation12_spill] sm:$0xff] }
 0x122   :  { %6585 = vmatpush3.bf16.msra.mxu0 %v6584_v49  ;;  %v6578_v60 = vpack.c.bf16 %v3197_v48, %v3190_v13  ;;  %v11562_v61 = vpack.c.bf16 %v8712_v41, %v8710_v56  ;;  %v6590_v29 = vpack.c.bf16 %v11564_v9, %v11563_v16  ;;  %v2962_v25 = vsub.f32 %v9632_v35, %v10952_v59  ;;  %v11565_v56 = vld [vmem:[#allocation7_spill] sm:$0xff]  ;;  %v11566_v41 = vld [vmem:[#allocation16_spill] sm:$0xff] }
 0x123   :  { %v2953_v33 = vsub.f32 %v9600_v26, %v11560_v14  ;;  %v2948_v58 = vand.u32 4294901760, %v2947_v28  ;;  %6577 = vmatpush3.bf16.msra.mxu1 %v6576_v36  ;;  %2940 = vmatmul.mubr.f32.gmra.mrb[50].mxu0 %v2939_v23  ;;  %v6580_v12 = vpack.c.bf16 %v3085_v40, %v3078_v38  ;;  %v2968_v42 = vsub.f32 %v9646_v62, %v10951_v11  ;;  %v11567_v13 = vld [vmem:[#allocation8_spill] sm:$0xff]  ;;  %v11570_v36 = vld [vmem:[#allocation11_spill] sm:$0xff]  ;;  %v11573_v14 = vld [vmem:[#allocation14_spill] sm:$0xff] }
 0x124   :  { %6587 = vmatprep.subr.bf16.mxu0 %v11562_v61  ;;  %6579 = vmatprep.subr.bf16.mxu1 %v6578_v60  ;;  %v6592_v49 = vpack.c.bf16 %v11566_v41, %v11565_v56  ;;  %v2963_v53 = vand.u32 4294901760, %v2962_v25  ;;  %v11568_v48 = vld [vmem:[#allocation4_spill] sm:$0xff]  ;;  %v6596_v28 = vpack.c.bf16 %v11571_v17, %v11570_v36  ;;  %v11572_v38 = vld [vmem:[#allocation55_spill] sm:$0xff]  ;;  %v11575_v60 = vld [vmem:[#allocation53_spill] sm:$0xff]  ;;  %v6602_v25 = vpack.c.bf16 %v9182_v21, %v9159_v5 }
 0x125   :  { %v2954_v63 = vand.u32 4294901760, %v2953_v33  ;;  %2949 = vmatprep.mubr.f32.mxu0 %v2948_v58  ;;  %v6594_v44 = vpack.c.bf16 %v11568_v48, %v11567_v13  ;;  %v2969_v23 = vand.u32 4294901760, %v2968_v42  ;;  %v6598_v33 = vpack.c.bf16 %v11573_v14, %v11572_v38  ;;  %v11576_v61 = vld [vmem:[#allocation54_spill] sm:$0xff] }
 0x126   :  { %6589 = vmatpush3.bf16.msra.mxu0 %v6588_v55  ;;  %v6600_v58 = vpack.c.bf16 %v11576_v61, %v11575_v60  ;;  %v6610_v11 = vpack.c.bf16 %v9462_v10, %v9460_v45  ;;  %vm11584_vm15 = vnez %v11521_v47  ;;  %vm11588_vm13 = vnez %v11532_v19 }
 0x127   :  { %6591 = vmatprep.subr.bf16.mxu0 %v6590_v29  ;;  %6581 = vmatpush3.bf16.msra.mxu1 %v6580_v12  ;;  %v11578_v12 = vld [vmem:[#allocation6_spill] sm:$0xff]  ;;  %v11606_v40 = vand.u32 4294901760, %v9465_v7  ;;  %v11610_v55 = vand.u32 4294901760, %v9159_v5  ;;  %v11616_v5 = vand.u32 4294901760, %v9204_v43 }
 0x128   :  { %2955 = vmatmul.mubr.f32.gmra.mrb[52].mxu0 %v2954_v63  ;;  %6615 = vmatprep.subr.msk.bf16.mxu1 %vm11443_vm2, %v11045_v37  ;;  %v11618_v63 = vand.u32 4294901760, %v9321_v30 }
 0x129   :  { %2964 = vmatprep.mubr.f32.mxu0 %v2963_v53  ;;  %v6606_v53 = vpack.c.bf16 %v9321_v30, %v9309_v3 }
 0x12a   :  { %6593 = vmatpush3.bf16.msra.mxu0 %v6592_v49  ;;  %3202 = vmatmul.mubr.f32.vlgmr.msra.gmra.mrb[48].mxu1 %v9397_v20  ;;  %v6604_v49 = vpack.c.bf16 %v9204_v43, %v9189_v15 }
 0x12b   :  { %6595 = vmatprep.subr.bf16.mxu0 %v6594_v44  ;;  %6617 = vmatpush3.bf16.msk.msra.mxu1 %vm9178_vm1, %v11045_v37  ;;  %v5374_v44 = vpop.f32.mrb[0].mxu0 }
 0x12c   :  { %2970 = vmatmul.mubr.f32.gmra.mrb[54].mxu0 %v2969_v23  ;;  %3207 = vmatprep.mubr.f32.mxu1 %v9447_v54  ;;  %v11624_v23 = vand.u32 4294901760, %v9462_v10  ;;  %v11627_v10 = vand.u32 4294901760, %v9478_v24 }
 0x12d   :  { %6619 = vmatprep.subr.msk.bf16.mxu1 %vm11467_vm0, %v11045_v37  ;;  %3358 = vmatprep.mubr.f32.mxu0 %v11578_v12 }
 0x12e   :  { %6597 = vmatpush3.bf16.msra.mxu0 %v6596_v28  ;;  %3209 = vmatmul.mubr.f32.gmra.mrb[50].mxu1 %v9467_v50  ;;  %v5375_v28 = vpop.f32.mrb[1].mxu0 }
 0x12f   :  { %6599 = vmatprep.subr.bf16.mxu0 %v6598_v33  ;;  %6621 = vmatpush3.bf16.msk.msra.mxu1 %vm9237_vm8, %v11045_v37 }
 0x130   :  { %3214 = vmatprep.mubr.f32.mxu1 %v9513_v27  ;;  %6623 = vmatprep.subr.msk.bf16.mxu1 %vm9256_vm4, %v11045_v37 }
 0x132   :  { %6601 = vmatpush3.bf16.msra.mxu0 %v6600_v58  ;;  %3216 = vmatmul.mubr.f32.gmra.mrb[52].mxu1 %v9542_v39  ;;  %v6608_v58 = vpack.c.bf16 %v9439_v52, %v9323_v31 }
 0x133   :  { %6603 = vmatprep.subr.bf16.mxu0 %v6602_v25  ;;  %6625 = vmatpush3.bf16.msk.msra.mxu1 %vm9305_vm14, %v11045_v37  ;;  %v5376_v25 = vadd.f32 %v5375_v28, %v5374_v44  ;;  %v741_v44 = vpop.permute.xlu0 %740  ;;  %v11586_v28 = vand.u32 4294901760, %v8859_v0  ;;  %v11590_v0 = vand.u32 4294901760, %v11561_v51  ;;  %v11637_v51 = vmov 0 }
 0x134   :  { %3221 = vmatprep.mubr.f32.mxu1 %v9573_v2  ;;  %6627 = vmatprep.subr.msk.bf16.mxu1 %vm9317_vm9, %v11045_v37 }
 0x135   :  { %v867_v59 = vadd.f32 %v5376_v25, %v741_v44 }
 0x136   :  { %6605 = vmatpush3.bf16.msra.mxu0 %v6604_v49  ;;  %3223 = vmatmul.mubr.f32.gmra.mrb[54].mxu1 %v9603_v34  ;;  %v11583_v49 = vand.u32 4294901760, %v11578_v12  ;;  %v11585_v12 = vand.u32 4294901760, %v8846_v4  ;;  %v11587_v34 = vld [vmem:[#allocation45_spill] sm:$0xff]  ;;  %v11589_v4 = vand.u32 4294901760, %v8929_v32 }
 0x137   :  { %6607 = vmatprep.subr.bf16.mxu0 %v6606_v53  ;;  %6629 = vmatpush3.bf16.msk.msra.mxu1 %vm9373_vm5, %v11045_v37  ;;  %v6612_v53 = vpack.c.bf16 %v9537_v22, %v9478_v24 }
 0x138   :  { %3492 = vmatprep.mubr.f32.mxu1 %v11583_v49  ;;  %6631 = vmatprep.subr.msk.bf16.mxu1 %vm9390_vm6, %v11045_v37  ;;  %v5418_v49 = vpop.f32.mrb[0].mxu1  ;;  %v6652_v25 = vpack.c.bf16 %v11590_v0, %v11589_v4  ;;  %v11595_v4 = vld [vmem:[#allocation27_spill] sm:$0xff]  ;;  %v11643_v0 = vmov 0 }
 0x13a   :  { %6609 = vmatpush3.bf16.msra.mxu0 %v6608_v58  ;;  %v6648_v58 = vpack.c.bf16 %v11586_v28, %v11585_v12  ;;  %v11591_v12 = vld [vmem:[#allocation9_spill] sm:$0xff]  ;;  %v11592_v28 = vand.u32 4294901760, %v11563_v16  ;;  %v11597_v16 = vand.u32 4294901760, %v11565_v56 }
 0x13b   :  { %6611 = vmatprep.subr.bf16.mxu0 %v6610_v11  ;;  %6633 = vmatpush3.bf16.msk.msra.mxu1 %vm9435_vm10, %v11045_v37  ;;  %v5419_v11 = vpop.f32.mrb[1].mxu1 }
 0x13c   :  { %6635 = vmatprep.subr.msk.bf16.mxu1 %vm11584_vm15, %v11045_v37  ;;  %v5420_v2 = vadd.f32 %v5419_v11, %v5418_v49  ;;  %v5377_v11 = vpop.f32.mrb[2].mxu0  ;;  %v5421_v39 = vpop.f32.mrb[2].mxu1 }
 0x13d   :  { %v5378_v27 = vpop.f32.mrb[3].mxu0  ;;  %v5422_v32 = vpop.f32.mrb[3].mxu1 }
 0x13e   :  { %6613 = vmatpush3.bf16.msra.mxu0 %v6612_v53  ;;  %v746_v53 = vpop.permute.xlu0 %745  ;;  %v9758_v44 = vadd.f32 %v5420_v2, %v867_v59  ;;  %v5379_v59 = vadd.f32 %v5378_v27, %v5377_v11  ;;  %v5423_v2 = vadd.f32 %v5422_v32, %v5421_v39  ;;  %v5380_v27 = vpop.f32.mrb[4].mxu0 }
 0x13f   :  { %6647 = vmatprep.subr.bf16.mxu0 %v11587_v34  ;;  %6637 = vmatpush3.bf16.msk.msra.mxu1 %vm9506_vm11, %v11045_v37  ;;  %v751_v34 = vpop.permute.xlu1 %750  ;;  %v5381_v11 = vpop.f32.mrb[5].mxu0 }
 0x140   :  { %6639 = vmatprep.subr.msk.bf16.mxu1 %vm11588_vm13, %v11045_v37  ;;  %v882_v39 = vadd.f32 %v5379_v59, %v746_v53  ;;  %v5382_v56 = vadd.f32 %v5381_v11, %v5380_v27  ;;  %v11604_v59 = vand.u32 4294901760, %v11572_v38 }
 0x141   :  { %3361 = vmatmul.mubr.f32.vlgmr.msra.gmra.mrb[56].mxu0 %v9465_v7  ;;  %v11609_v7 = vand.u32 4294901760, %v11576_v61 }
 0x142   :  { %6649 = vmatpush3.bf16.msra.mxu0 %v6648_v58  ;;  %3367 = vmatprep.mubr.f32.mxu0 %v9511_v1  ;;  %v11593_v58 = vand.u32 4294901760, %v11564_v9  ;;  %v11598_v9 = vand.u32 4294901760, %v11566_v41  ;;  %v1151_v41 = vadd.f32 %v5423_v2, %v882_v39 }
 0x143   :  { %6651 = vmatprep.subr.bf16.mxu0 %v11591_v12  ;;  %6641 = vmatpush3.bf16.msk.msra.mxu1 %vm9565_vm12, %v11045_v37 }
 0x144   :  { %v6654_v49 = vpack.c.bf16 %v11593_v58, %v11592_v28  ;;  %6643 = vmatprep.subr.msk.bf16.mxu1 %vm9582_vm3, %v11045_v37  ;;  %v6656_v12 = vpack.c.bf16 %v11598_v9, %v11597_v16  ;;  %v11599_v28 = vand.u32 4294901760, %v11567_v13  ;;  %v11600_v58 = vand.u32 4294901760, %v11568_v48 }
 0x145   :  { %3370 = vmatmul.mubr.f32.gmra.mrb[58].mxu0 %v11595_v4  ;;  %v11602_v13 = vand.u32 4294901760, %v11570_v36  ;;  %v11603_v48 = vand.u32 4294901760, %v11571_v17  ;;  %v11605_v9 = vand.u32 4294901760, %v11573_v14  ;;  %v11607_v14 = vand.u32 4294901760, %v9511_v1 }
 0x146   :  { %6653 = vmatpush3.bf16.msra.mxu0 %v6652_v25  ;;  %3376 = vmatprep.mubr.f32.mxu0 %v9571_v57  ;;  %v6658_v50 = vpack.c.bf16 %v11600_v58, %v11599_v28  ;;  %v5424_v25 = vpop.f32.mrb[4].mxu1  ;;  %v5383_v28 = vpop.f32.mrb[6].mxu0  ;;  %v11612_v1 = vand.u32 4294901760, %v11595_v4  ;;  %v11617_v4 = vand.u32 4294901760, %v9309_v3  ;;  %v11621_v3 = vand.u32 4294901760, %v9323_v31 }
 0x147   :  { %6655 = vmatprep.subr.bf16.mxu0 %v6654_v49  ;;  %v5425_v32 = vpop.f32.mrb[5].mxu1  ;;  %6645 = vmatpush3.bf16.msk.msra.mxu1 %vm9623_vm7, %v11045_v37  ;;  %v6660_v53 = vpack.c.bf16 %v11603_v48, %v11602_v13  ;;  %v756_v49 = vpop.permute.xlu1 %755  ;;  %v6662_v2 = vpack.c.bf16 %v11605_v9, %v11604_v59  ;;  %v11623_v48 = vand.u32 4294901760, %v9460_v45  ;;  %v11626_v9 = vld [vmem:[#allocation3_spill] sm:$0xff] }
 0x148   :  { %v5426_v16 = vadd.f32 %v5425_v32, %v5424_v25  ;;  %6679 = vmatprep.subr.msk.bf16.mxu1 %vm11443_vm2, %v11045_v37  ;;  %v5427_v58 = vpop.f32.mrb[6].mxu1  ;;  %v5384_v27 = vpop.f32.mrb[7].mxu0  ;;  %v11611_v25 = vand.u32 4294901760, %v9182_v21  ;;  %v11615_v21 = vand.u32 4294901760, %v9189_v15  ;;  %v11620_v15 = vand.u32 4294901760, %v9632_v35 }
 0x149   :  { %3379 = vmatmul.mubr.f32.gmra.mrb[60].mxu0 %v9600_v26  ;;  %v5428_v36 = vpop.f32.mrb[7].mxu1  ;;  %v5462_v13 = vpop.f32.mrb[8].mxu0  ;;  %v9860_v33 = vadd.s32 400, %v11626_v9  ;;  %v9863_v31 = vadd.s32 408, %v11626_v9  ;;  %v9884_v6 = vadd.s32 424, %v11626_v9  ;;  %v9941_v19 = vadd.s32 448, %v11626_v9 }
 0x14a   :  { %6657 = vmatpush3.bf16.msra.mxu0 %v6656_v12  ;;  %3385 = vmatprep.mubr.f32.mxu0 %v9632_v35  ;;  %v897_v12 = vadd.f32 %v5382_v56, %v751_v34  ;;  %v5429_v38 = vadd.f32 %v5428_v36, %v5427_v58  ;;  %v11608_v34 = vand.u32 4294901760, %v11575_v60  ;;  %v6666_v11 = vpack.c.bf16 %v11611_v25, %v11610_v55  ;;  %v11613_v56 = vld [vmem:[#allocation20_spill] sm:$0xff]  ;;  %v5463_v42 = vpop.f32.mrb[9].mxu0 }
 0x14b   :  { %6659 = vmatprep.subr.bf16.mxu0 %v6658_v50  ;;  %3496 = vmatmul.mubr.f32.vlgmr.msra.gmra.mrb[56].mxu1 %v11606_v40  ;;  %v5385_v50 = vadd.f32 %v5384_v27, %v5383_v28  ;;  %v11614_v60 = vand.u32 4294901760, %v9571_v57  ;;  %v6668_v29 = vpack.c.bf16 %v11616_v5, %v11615_v21  ;;  %v11619_v57 = vand.u32 4294901760, %v9600_v26  ;;  %v5465_v59 = vpop.f32.mrb[10].mxu0  ;;  %v11636_v5 = vld [vmem:[#allocation36_spill] sm:$0xff] }
 0x14c   :  { %6681 = vmatpush3.bf16.msk.msra.mxu1 %vm9178_vm1, %v11045_v37  ;;  %v1158_v17 = vadd.f32 %v5426_v16, %v897_v12  ;;  %3503 = vmatprep.mubr.f32.mxu1 %v11607_v14  ;;  %v6664_v39 = vpack.c.bf16 %v11609_v7, %v11608_v34  ;;  %v6670_v16 = vpack.c.bf16 %v11618_v63, %v11617_v4  ;;  %v11622_v26 = vand.u32 4294901760, %v9439_v52  ;;  %v5466_v52 = vpop.f32.mrb[11].mxu0  ;;  %v11629_v12 = vld [vmem:[#allocation5_spill] sm:$0xff] }
 0x14d   :  { %3388 = vmatmul.mubr.f32.gmra.mrb[62].mxu0 %v9646_v62  ;;  %6683 = vmatprep.subr.msk.bf16.mxu1 %vm11467_vm0, %v11045_v37  ;;  %v912_v32 = vadd.f32 %v5385_v50, %v756_v49  ;;  %v5464_v43 = vadd.f32 %v5463_v42, %v5462_v13  ;;  %v11625_v49 = vand.u32 4294901760, %v9646_v62  ;;  %v5467_v45 = vadd.f32 %v5466_v52, %v5465_v59  ;;  %v5468_v28 = vpop.f32.mrb[12].mxu0  ;;  %v11641_v13 = vld [vmem:[#allocation26_spill] sm:$0xff] }
 0x14e   :  { %6661 = vmatpush3.bf16.msra.mxu0 %v6660_v53  ;;  %3695 = vmatprep.mubr.f32.mxu0 %v11613_v56  ;;  %v6672_v30 = vpack.c.bf16 %v11622_v26, %v11621_v3  ;;  %v6674_v53 = vpack.c.bf16 %v11624_v23, %v11623_v48  ;;  %v11628_v62 = vand.u32 4294901760, %v9537_v22  ;;  %v5469_v24 = vpop.f32.mrb[13].mxu0  ;;  %v10968_v58 = vmov 0.0|0.0  }
 0x14f   :  { %6663 = vmatprep.subr.bf16.mxu0 %v6662_v2  ;;  %3507 = vmatmul.mubr.f32.gmra.mrb[58].mxu1 %v11612_v1  ;;  %v9825_v61 = vadd.f32 %v5429_v38, %v912_v32  ;;  %v1303_v35 = vadd.f32 %v5464_v43, %v9758_v44  ;;  %v9877_v2 = vadd.s32 416, %v11626_v9  ;;  %v1312_v46 = vadd.f32 %v5467_v45, %v1151_v41  ;;  %v5506_v41 = vpop.f32.mrb[8].mxu1  ;;  %v5471_v36 = vpop.f32.mrb[14].mxu0  ;;  %v11642_v43 = vld [vmem:[#allocation39_spill] sm:$0xff] }
 0x150   :  { %6685 = vmatpush3.bf16.msk.msra.mxu1 %vm9237_vm8, %v11045_v37  ;;  %3514 = vmatprep.mubr.f32.mxu1 %v11614_v60  ;;  %v6676_v44 = vpack.c.bf16 %v11628_v62, %v11627_v10  ;;  %vm353_vm8 = vcmp.eq.s32.totalorder %v9863_v31, %v11629_v12  ;;  %v5470_v22 = vadd.f32 %v5469_v24, %v5468_v28  ;;  %v9904_v40 = vadd.s32 432, %v11626_v9  ;;  %v5507_v47 = vpop.f32.mrb[9].mxu1  ;;  %v5472_v14 = vpop.f32.mrb[15].mxu0  ;;  %v588_v60 = vld [vmem:[%s10544_s1 + $0x70] sm:$0xff] }
 0x151   :  { %6687 = vmatprep.subr.msk.bf16.mxu1 %vm9256_vm4, %v11045_v37  ;;  %vm354_vm0 = vcmp.eq.s32.totalorder %v9877_v2, %v11629_v12  ;;  %vm355_vm2 = vcmp.eq.s32.totalorder %v9884_v6, %v11629_v12  ;;  %v9911_v50 = vadd.s32 440, %v11626_v9  ;;  %v5508_v38 = vadd.f32 %v5507_v47, %v5506_v41  ;;  %v5509_v18 = vpop.f32.mrb[10].mxu1 }
 0x152   :  { %6665 = vmatpush3.bf16.msra.mxu0 %v6664_v39  ;;  %v1321_v27 = vadd.f32 %v5470_v22, %v1158_v17  ;;  %v581_v17 = vld [vmem:[%s10544_s1 + $0x38] sm:$0xff]  ;;  %v5473_v34 = vadd.f32 %v5472_v14, %v5471_v36  ;;  %vm9936_vm4 = vmpackc.low %vm355_vm2, %vm354_vm0  ;;  %v9944_v55 = vadd.s32 456, %v11626_v9  ;;  %v9985_v63 = vadd.s32 472, %v11626_v9 }
 0x153   :  { %6667 = vmatprep.subr.bf16.mxu0 %v6666_v11  ;;  %3518 = vmatmul.mubr.f32.gmra.mrb[60].mxu1 %v11619_v57  ;;  %v9926_v7 = vadd.f32 %v5508_v38, %v1303_v35  ;;  %v5510_v11 = vpop.f32.mrb[11].mxu1  ;;  %v9951_v32 = vand.u32 4294901760, %v581_v17  ;;  %v10018_v26 = vadd.s32 480, %v11626_v9  ;;  %v11647_v35 = vmov 0  ;;  %v589_v14 = vld [vmem:[%s10544_s1 + $0x78] sm:$0xff] }
 0x154   :  { %6689 = vmatpush3.bf16.msk.msra.mxu1 %vm9305_vm14, %v11045_v37  ;;  %3525 = vmatprep.mubr.f32.mxu1 %v11620_v15  ;;  %v1330_v25 = vadd.f32 %v5473_v34, %v9825_v61  ;;  %vm356_vm14 = vcmp.eq.s32.totalorder %v9904_v40, %v11629_v12  ;;  %v5511_v1 = vadd.f32 %v5510_v11, %v5509_v18  ;;  %v5512_v21 = vpop.f32.mrb[12].mxu1  ;;  %v11650_v52 = vmov 0 }
 0x155   :  { %6691 = vmatprep.subr.msk.bf16.mxu1 %vm9317_vm9, %v11045_v37  ;;  %vm357_vm9 = vcmp.eq.s32.totalorder %v9911_v50, %v11629_v12  ;;  %v5513_v4 = vpop.f32.mrb[13].mxu1  ;;  %v10078_v45 = vadd.s32 512, %v11626_v9  ;;  %v10086_v62 = vadd.s32 520, %v11626_v9  ;;  %v11653_v28 = vmov 0.0  }
 0x156   :  { %6669 = vmatpush3.bf16.msra.mxu0 %v6668_v29  ;;  %v9963_v61 = vadd.f32 %v5511_v1, %v1312_v46  ;;  %v9978_v29 = vadd.s32 464, %v11626_v9  ;;  %v5514_v57 = vadd.f32 %v5513_v4, %v5512_v21  ;;  %v5515_v15 = vpop.f32.mrb[14].mxu1  ;;  %v4983_v22 = vsel %vm353_vm8, 1.0, %v11653_v28 }
 0x157   :  { %6671 = vmatprep.subr.bf16.mxu0 %v6670_v16  ;;  %3529 = vmatmul.mubr.f32.gmra.mrb[62].mxu1 %v11625_v49  ;;  %v9988_v16 = vsub.f32 %v581_v17, %v9951_v32  ;;  %v5516_v3 = vpop.f32.mrb[15].mxu1  ;;  %v10055_v49 = vadd.s32 504, %v11626_v9  ;;  %v4984_v41 = vsel %vm354_vm0, 1.0, %v11653_v28  ;;  %v4985_v31 = vsel %vm355_vm2, 1.0, %v11653_v28 }
 0x158   :  { %6693 = vmatpush3.bf16.msk.msra.mxu1 %vm9373_vm5, %v11045_v37  ;;  %3820 = vmatprep.mubr.f32.mxu1 %v11613_v56  ;;  %vm352_vm5 = vcmp.eq.s32.totalorder %v9860_v33, %v11629_v12  ;;  %v11634_v56 = vld [vmem:[#allocation35_spill] sm:$0xff]  ;;  %v9998_v42 = vadd.f32 %v5514_v57, %v1321_v27  ;;  %v5517_v23 = vadd.f32 %v5516_v3, %v5515_v15  ;;  %v580_v33 = vld [vmem:[%s10544_s1 + $0x30] sm:$0xff]  ;;  %v4986_v2 = vsel %vm356_vm14, 1.0, %v11653_v28  ;;  %v597_v15 = vld [vmem:[%s10544_s1 + $0xb8] sm:$0xff] }
 0x159   :  { %6695 = vmatprep.subr.msk.bf16.mxu1 %vm9390_vm6, %v11045_v37  ;;  %vm9899_vm1 = vmpackc.low %vm353_vm8, %vm352_vm5  ;;  %vm10966_vm6 = vcmp.eq.s32.totalorder %v9941_v19, %v11629_v12  ;;  %11640 = vst [vmem:[#allocation23_spill] sm:$0xff] %v9988_v16  ;;  %v3946_v48 = vand.u32 4294901760, %v9988_v16  ;;  %v4982_v24 = vsel %vm352_vm5, 1.0, %v11653_v28  ;;  %v4987_v47 = vsel %vm357_vm9, 1.0, %v11653_v28 }
 0x15a   :  { %6673 = vmatpush3.bf16.msra.mxu0 %v6672_v30  ;;  %v10021_v30 = vadd.s32 488, %v11626_v9  ;;  %v11654_v6 = vmov 0  ;;  %vm366_vm8 = vcmp.eq.s32.totalorder %v10078_v45, %v11629_v12  ;;  %vm10967_vm0 = vcmp.eq.s32.totalorder %v10086_v62, %v11629_v12 }
 0x15b   :  { %6675 = vmatprep.subr.bf16.mxu0 %v6674_v53  ;;  %v11646_v53 = vld [vmem:[#allocation25_spill] sm:$0xff]  ;;  %v3947_v59 = vsub.f32 %v9988_v16, %v3946_v48  ;;  %v10143_v50 = vadd.s32 528, %v11626_v9  ;;  %v10146_v38 = vadd.s32 536, %v11626_v9  ;;  %v10151_v17 = vsub.f32 %v4982_v24, %v4982_v24 }
 0x15c   :  { %6697 = vmatpush3.bf16.msk.msra.mxu1 %vm9435_vm10, %v11045_v37  ;;  %vm9973_vm10 = vmpackc.low %vm357_vm9, %vm356_vm14  ;;  %v5550_v10 = vpop.f32.mrb[16].mxu0  ;;  %v10153_v34 = vsub.f32 %v4983_v22, %v4983_v22  ;;  %v10164_v11 = vsub.f32 %v4986_v2, %v4986_v2  ;;  %vm11659_vm2 = vcmp.eq.s32.totalorder %v9941_v19, %v11629_v12  ;;  %v10177_v21 = vsub.f32 %v4987_v47, %v4987_v47 }
 0x15d   :  { %6699 = vmatprep.subr.msk.bf16.mxu1 %vm11584_vm15, %v11045_v37  ;;  %v11638_v51 = vsel %vm9973_vm10, 4294967295, %v11637_v51  ;;  %v3948_v46 = vand.u32 4294901760, %v3947_v59  ;;  %v4988_v1 = vsel %vm11659_vm2, 1.0, %v11653_v28  ;;  %vm11660_vm14 = vcmp.eq.s32.totalorder %v9944_v55, %v11629_v12  ;;  %vm10194_vm2 = vmpackc.low %vm10967_vm0, %vm366_vm8  ;;  %v596_v59 = vld [vmem:[%s10544_s1 + $0xb0] sm:$0xff] }
 0x15e   :  { %6677 = vmatpush3.bf16.msra.mxu0 %v6676_v44  ;;  %11639 = vst [vmem:[#allocation44_spill] sm:$0xff] %v11638_v51  ;;  %v5551_v44 = vpop.f32.mrb[17].mxu0  ;;  %vm11661_vm9 = vcmp.eq.s32.totalorder %v9978_v29, %v11629_v12  ;;  %v11662_v4 = vmov 0  ;;  %v10198_v57 = vand.u32 4294901760, %v589_v14  ;;  %vm369_vm0 = vcmp.eq.s32.totalorder %v10146_v38, %v11629_v12 }
 0x15f   :  { %6791 = vmatprep.subr.bf16.mxu0 %v10968_v58  ;;  %v5552_v27 = vadd.f32 %v5551_v44, %v5550_v10  ;;  %v4990_v19 = vsel %vm11661_vm9, 1.0, %v11653_v28  ;;  %v11663_v4 = vsel %vm10194_vm2, 4294967295, %v11662_v4  ;;  %vm368_vm9 = vcmp.eq.s32.totalorder %v10143_v50, %v11629_v12 }
 0x160   :  { %6701 = vmatpush3.bf16.msk.msra.mxu1 %vm9506_vm11, %v11045_v37  ;;  %vm10963_vm11 = vcmp.eq.s32.totalorder %v9944_v55, %v11629_v12  ;;  %11664 = vst [vmem:[#allocation32_spill] sm:$0xff] %v11663_v4  ;;  %v10243_v44 = vsub.f32 %v4990_v19, %v4990_v19  ;;  %v10257_v22 = vsub.f32 %v589_v14, %v10198_v57  ;;  %v10280_v19 = vand.u32 4294901760, %v596_v59 }
 0x161   :  { %3697 = vmatmul.mubr.f32.vlgmr.msra.gmra.mrb[64].mxu0 %v9397_v20  ;;  %6703 = vmatprep.subr.msk.bf16.mxu1 %vm11588_vm13, %v11045_v37  ;;  %vm362_vm13 = vcmp.eq.s32.totalorder %v10018_v26, %v11629_v12  ;;  %v10137_v40 = vadd.f32 %v5552_v27, %v9926_v7  ;;  %v5553_v36 = vpop.f32.mrb[18].mxu0  ;;  %v10155_v7 = vsub.f32 %v4984_v41, %v4984_v41  ;;  %v4008_v26 = vand.u32 4294901760, %v10151_v17 }
 0x162   :  { %6793 = vmatpush1.bf16.msk.msra.mxu0 %vm9899_vm1, %v11045_v37  ;;  %3702 = vmatprep.mubr.f32.mxu0 %v9447_v54  ;;  %v5554_v18 = vpop.f32.mrb[19].mxu0  ;;  %v10259_v41 = vand.u32 4294901760, %v597_v15  ;;  %11670 = vst [vmem:[#allocation59_spill] sm:$0xff] %v10280_v19 }
 0x163   :  { %6794 = vmatprep.subr.bf16.mxu0 %v10968_v58  ;;  %11657 = vst [vmem:[#allocation52_spill] sm:$0xff] %v10155_v7 }
 0x164   :  { %6705 = vmatpush3.bf16.msk.msra.mxu1 %vm9565_vm12, %v11045_v37  ;;  %vm10008_vm12 = vmpackc.low %vm10963_vm11, %vm10966_vm6  ;;  %vm363_vm11 = vcmp.eq.s32.totalorder %v10021_v30, %v11629_v12  ;;  %vm365_vm6 = vcmp.eq.s32.totalorder %v10055_v49, %v11629_v12  ;;  %v4015_v30 = vand.u32 4294901760, %v10153_v34 }
 0x165   :  { %3704 = vmatmul.mubr.f32.gmra.mrb[66].mxu0 %v11634_v56  ;;  %6707 = vmatprep.subr.msk.bf16.mxu1 %vm9582_vm3, %v11045_v37  ;;  %v11644_v0 = vsel %vm10008_vm12, 4294967295, %v11643_v0  ;;  %vm10965_vm3 = vcmp.eq.s32.totalorder %v9978_v29, %v11629_v12 }
 0x166   :  { %6796 = vmatpush1.bf16.msk.msra.mxu0 %vm9936_vm4, %v11045_v37  ;;  %3709 = vmatprep.mubr.f32.mxu0 %v11636_v5  ;;  %11645 = vst [vmem:[#allocation24_spill] sm:$0xff] %v11644_v0  ;;  %v4995_v0 = vsel %vm365_vm6, 1.0, %v11653_v28 }
 0x167   :  { %6797 = vmatprep.subr.bf16.mxu0 %v10968_v58 }
 0x168   :  { %6709 = vmatpush3.bf16.msk.msra.mxu1 %vm9623_vm7, %v11045_v37  ;;  %vm10964_vm7 = vcmp.eq.s32.totalorder %v9985_v63, %v11629_v12 }
 0x169   :  { %3711 = vmatmul.mubr.f32.gmra.mrb[68].mxu0 %v11641_v13  ;;  %6710 = vmatprep.subr.bf16.mxu1 %v10968_v58  ;;  %vm10042_vm15 = vmpackc.low %vm10964_vm7, %vm10965_vm3 }
 0x16a   :  { %6799 = vmatpush1.bf16.msk.msra.mxu0 %vm9973_vm10, %v11045_v37  ;;  %3716 = vmatprep.mubr.f32.mxu0 %v11642_v43  ;;  %v11648_v35 = vsel %vm10042_vm15, 4294967295, %v11647_v35  ;;  %vm10073_vm7 = vmpackc.low %vm363_vm11, %vm362_vm13 }
 0x16b   :  { %6800 = vmatprep.subr.bf16.mxu0 %v10968_v58  ;;  %3822 = vmatmul.mubr.f32.vlgmr.msra.gmra.mrb[64].mxu1 %v9397_v20  ;;  %v10032_v20 = vadd.f32 %v5517_v23, %v1330_v25  ;;  %11649 = vst [vmem:[#allocation30_spill] sm:$0xff] %v11648_v35  ;;  %v11651_v52 = vsel %vm10073_vm7, 4294967295, %v11650_v52  ;;  %v10160_v25 = vand.u32 4294901760, %v580_v33  ;;  %v10230_v23 = vsub.f32 %v4988_v1, %v4988_v1 }
 0x16c   :  { %6712 = vmatpush1.bf16.msk.msra.mxu1 %vm9899_vm1, %v11045_v37  ;;  %3827 = vmatprep.mubr.f32.mxu1 %v9447_v54  ;;  %v10052_v54 = vadd.s32 496, %v11626_v9  ;;  %11652 = vst [vmem:[#allocation41_spill] sm:$0xff] %v11651_v52  ;;  %v10162_v9 = vsub.f32 %v4985_v31, %v4985_v31  ;;  %v10315_v52 = vsub.f32 %v596_v59, %v10280_v19 }
 0x16d   :  { %3718 = vmatmul.mubr.f32.gmra.mrb[70].mxu0 %v11646_v53  ;;  %6713 = vmatprep.subr.bf16.mxu1 %v10968_v58  ;;  %v10226_v3 = vsub.f32 %v580_v33, %v10160_v25 }
 0x16e   :  { %6802 = vmatpush1.bf16.msk.msra.mxu0 %vm10008_vm12, %v11045_v37  ;;  %4522 = vmatprep.mubr.f32.mxu0 %v3946_v48  ;;  %vm364_vm3 = vcmp.eq.s32.totalorder %v10052_v54, %v11629_v12  ;;  %11658 = vst [vmem:[#allocation31_spill] sm:$0xff] %v10162_v9  ;;  %v10228_v48 = vand.u32 4294901760, %v588_v60 }
 0x16f   :  { %6803 = vmatprep.subr.bf16.mxu0 %v10968_v58  ;;  %3829 = vmatmul.mubr.f32.gmra.mrb[66].mxu1 %v11634_v56  ;;  %vm10130_vm5 = vmpackc.low %vm365_vm6, %vm364_vm3  ;;  %v5555_v56 = vadd.f32 %v5554_v18, %v5553_v36  ;;  %11666 = vst [vmem:[#allocation58_spill] sm:$0xff] %v10226_v3  ;;  %v605_v18 = vld [vmem:[%s10544_s1 + $0xf8] sm:$0xff]  ;;  %vm11675_vm6 = vcmp.eq.s32.totalorder %v10086_v62, %v11629_v12 }
 0x170   :  { %6715 = vmatpush1.bf16.msk.msra.mxu1 %vm9936_vm4, %v11045_v37  ;;  %3834 = vmatprep.mubr.f32.mxu1 %v11636_v5  ;;  %v11655_v6 = vsel %vm10130_vm5, 4294967295, %v11654_v6  ;;  %v4989_v5 = vsel %vm11660_vm14, 1.0, %v11653_v28  ;;  %vm11665_vm14 = vcmp.eq.s32.totalorder %v9985_v63, %v11629_v12  ;;  %v4992_v63 = vsel %vm362_vm13, 1.0, %v11653_v28 }
 0x171   :  { %6716 = vmatprep.subr.bf16.mxu1 %v10968_v58  ;;  %11656 = vst [vmem:[#allocation51_spill] sm:$0xff] %v11655_v6  ;;  %v4991_v55 = vsel %vm11665_vm14, 1.0, %v11653_v28  ;;  %v10205_v29 = vadd.f32 %v5555_v56, %v9963_v61  ;;  %v4993_v61 = vsel %vm363_vm11, 1.0, %v11653_v28  ;;  %v10241_v10 = vsub.f32 %v4989_v5, %v4989_v5  ;;  %vm10252_vm11 = vmpackc.low %vm369_vm0, %vm368_vm9 }
 0x172   :  { %6805 = vmatpush1.bf16.msk.msra.mxu0 %vm10042_vm15, %v11045_v37  ;;  %v10261_v27 = vsub.f32 %v4991_v55, %v4991_v55  ;;  %v10263_v33 = vsub.f32 %v4992_v63, %v4992_v63  ;;  %v10265_v31 = vsub.f32 %v4993_v61, %v4993_v61  ;;  %v3952_v56 = vand.u32 4294901760, %v10226_v3  ;;  %v604_v61 = vld [vmem:[%s10544_s1 + $0xf0] sm:$0xff] }
 0x173   :  { %6806 = vmatprep.subr.bf16.mxu0 %v10968_v58  ;;  %3836 = vmatmul.mubr.f32.gmra.mrb[68].mxu1 %v11641_v13  ;;  %v5556_v13 = vpop.f32.mrb[20].mxu0  ;;  %v10278_v5 = vsub.f32 %v588_v60, %v10228_v48  ;;  %v6819_v55 = vpack.c.bf16 %v4015_v30, %v4008_v26  ;;  %v4029_v63 = vand.u32 4294901760, %v10162_v9  ;;  %v10317_v54 = vand.u32 4294901760, %v604_v61 }
 0x174   :  { %6718 = vmatpush1.bf16.msk.msra.mxu1 %vm9973_vm10, %v11045_v37  ;;  %3841 = vmatprep.mubr.f32.mxu1 %v11642_v43  ;;  %v5557_v43 = vpop.f32.mrb[21].mxu0 }
 0x175   :  { %6719 = vmatprep.subr.bf16.mxu1 %v10968_v58  ;;  %v5559_v36 = vpop.f32.mrb[22].mxu0  ;;  %11669 = vst [vmem:[#allocation15_spill] sm:$0xff] %v10278_v5  ;;  %11673 = vst [vmem:[#allocation34_spill] sm:$0xff] %v10317_v54  ;;  %v4030_v59 = vsub.f32 %v10162_v9, %v4029_v63 }
 0x176   :  { %6808 = vmatpush1.bf16.msk.msra.mxu0 %vm10073_vm7, %v11045_v37  ;;  %v5560_v14 = vpop.f32.mrb[23].mxu0 }
 0x177   :  { %6809 = vmatprep.subr.bf16.mxu0 %v10968_v58  ;;  %3843 = vmatmul.mubr.f32.gmra.mrb[70].mxu1 %v11646_v53  ;;  %v5558_v53 = vadd.f32 %v5557_v43, %v5556_v13  ;;  %v4022_v13 = vand.u32 4294901760, %v10155_v7 }
 0x178   :  { %6721 = vmatpush1.bf16.msk.msra.mxu1 %vm10008_vm12, %v11045_v37  ;;  %3949 = vmatprep.mubr.f32.mxu1 %v3948_v46  ;;  %v5594_v46 = vpop.f32.mrb[16].mxu1 }
 0x179   :  { %6722 = vmatprep.subr.bf16.mxu1 %v10968_v58  ;;  %v10268_v2 = vadd.f32 %v5558_v53, %v9998_v42  ;;  %v5595_v47 = vpop.f32.mrb[17].mxu1  ;;  %v5561_v42 = vadd.f32 %v5560_v14, %v5559_v36  ;;  %v3961_v53 = vand.u32 4294901760, %v10257_v22  ;;  %v4994_v36 = vsel %vm364_vm3, 1.0, %v11653_v28 }
 0x17a   :  { %6811 = vmatpush1.bf16.msk.msra.mxu0 %vm10130_vm5, %v11045_v37  ;;  %v5596_v1 = vadd.f32 %v5595_v47, %v5594_v46  ;;  %v5597_v43 = vpop.f32.mrb[18].mxu1  ;;  %v10297_v46 = vsub.f32 %v597_v15, %v10259_v41  ;;  %v10299_v47 = vand.u32 4294901760, %v605_v18  ;;  %v3967_v15 = vand.u32 4294901760, %v10278_v5 }
 0x17b   :  { %6812 = vmatprep.subr.bf16.mxu0 %v10968_v58  ;;  %v10306_v14 = vadd.f32 %v5561_v42, %v10032_v20  ;;  %v11674_v20 = vmov 0.0|0.0   ;;  %v6822_v42 = vpack.c.bf16 %v4029_v63, %v4022_v13  ;;  %v10337_v51 = vsub.f32 %v4994_v36, %v4994_v36 }
 0x17c   :  { %6724 = vmatpush1.bf16.msk.msra.mxu1 %vm10042_vm15, %v11045_v37  ;;  %v10292_v60 = vadd.f32 %v5596_v1, %v10137_v40  ;;  %11671 = vst [vmem:[#allocation17_spill] sm:$0xff] %v10297_v46  ;;  %11672 = vst [vmem:[#allocation43_spill] sm:$0xff] %v10299_v47  ;;  %v5598_v40 = vpop.f32.mrb[19].mxu1  ;;  %v4009_v1 = vsub.f32 %v10151_v17, %v4008_v26  ;;  %v4036_v26 = vand.u32 4294901760, %v10164_v11 }
 0x17d   :  { %6725 = vmatprep.subr.bf16.mxu1 %v10968_v58  ;;  %v5599_v16 = vadd.f32 %v5598_v40, %v5597_v43  ;;  %v4023_v43 = vsub.f32 %v10155_v7, %v4022_v13  ;;  %v5600_v6 = vpop.f32.mrb[20].mxu1  ;;  %v10330_v35 = vsub.f32 %v605_v18, %v10299_v47  ;;  %v3982_v18 = vand.u32 4294901760, %v10315_v52 }
 0x17e   :  { %6814 = vmatpush1.bf16.msk.msra.mxu0 %vm10194_vm2, %v11045_v37  ;;  %v5601_v13 = vpop.f32.mrb[21].mxu1  ;;  %v10344_v63 = vsub.f32 %v604_v61, %v10317_v54  ;;  %v4037_v9 = vsub.f32 %v10164_v11, %v4036_v26  ;;  %v3968_v47 = vsub.f32 %v10278_v5, %v3967_v15 }
 0x17f   :  { %6815 = vmatprep.subr.bf16.mxu0 %v10968_v58  ;;  %v10324_v40 = vadd.f32 %v5599_v16, %v10205_v29  ;;  %v3953_v16 = vsub.f32 %v10226_v3, %v3952_v56  ;;  %v4010_v29 = vand.u32 4294901760, %v4009_v1  ;;  %v5602_v19 = vadd.f32 %v5601_v13, %v5600_v6  ;;  %v5603_v1 = vpop.f32.mrb[22].mxu1 }
 0x180   :  { %6727 = vmatpush1.bf16.msk.msra.mxu1 %vm10073_vm7, %v11045_v37  ;;  %v4024_v36 = vand.u32 4294901760, %v4023_v43  ;;  %v4031_v13 = vand.u32 4294901760, %v4030_v59  ;;  %v3991_v61 = vand.u32 4294901760, %v10330_v35  ;;  %v5604_v3 = vpop.f32.mrb[23].mxu1 }
 0x181   :  { %6728 = vmatprep.subr.bf16.mxu1 %v10968_v58  ;;  %v10350_v6 = vadd.f32 %v5602_v19, %v10268_v2  ;;  %v3954_v4 = vand.u32 4294901760, %v3953_v16  ;;  %v5605_v43 = vadd.f32 %v5604_v3, %v5603_v1  ;;  %v3997_v19 = vand.u32 4294901760, %v10344_v63 }
 0x182   :  { %6817 = vmatpush1.bf16.msk.msra.mxu0 %vm10252_vm11, %v11045_v37  ;;  %v6741_v45 = vpack.c.bf16 %v4031_v13, %v4024_v36  ;;  %v3983_v1 = vsub.f32 %v10315_v52, %v3982_v18 }
 0x183   :  { %6818 = vmatprep.subr.bf16.mxu0 %v10968_v58  ;;  %v4016_v58 = vsub.f32 %v10153_v34, %v4015_v30  ;;  %v4043_v30 = vand.u32 4294901760, %v10177_v21  ;;  %v11678_v39 = vld [vmem:[#allocation43_spill] sm:$0xff] }
 0x184   :  { %6730 = vmatpush1.bf16.msk.msra.mxu1 %vm10130_vm5, %v11045_v37 }
 0x185   :  { %4526 = vmatmul.mubr.f32.vlgmr.msra.gmra.mrb[72].mxu0 %v3952_v56  ;;  %6731 = vmatprep.subr.bf16.mxu1 %v11674_v20  ;;  %v4017_v7 = vand.u32 4294901760, %v4016_v58  ;;  %v6825_v49 = vpack.c.bf16 %v4043_v30, %v4036_v26  ;;  %v4050_v56 = vand.u32 4294901760, %v10230_v23  ;;  %v4057_v58 = vand.u32 4294901760, %v10241_v10 }
 0x186   :  { %6820 = vmatpush1.bf16.msra.mxu0 %v6819_v55  ;;  %4533 = vmatprep.mubr.f32.mxu0 %v3961_v53  ;;  %v3976_v55 = vand.u32 4294901760, %v10297_v46  ;;  %v4044_v2 = vsub.f32 %v10177_v21, %v4043_v30  ;;  %v4997_v26 = vsel %vm11675_vm6, 1.0, %v11653_v28  ;;  %v10375_v30 = vadd.f32 %v5605_v43, %v10306_v14 }
 0x187   :  { %6821 = vmatprep.subr.bf16.mxu0 %v11674_v20  ;;  %v6738_v54 = vpack.c.bf16 %v4017_v7, %v4010_v29  ;;  %v4996_v7 = vsel %vm366_vm8, 1.0, %v11653_v28  ;;  %v6828_v3 = vpack.c.bf16 %v4057_v58, %v4050_v56  ;;  %v4051_v16 = vsub.f32 %v10230_v23, %v4050_v56 }
 0x188   :  { %6733 = vmatpush1.bf16.msk.msra.mxu1 %vm10194_vm2, %v11045_v37  ;;  %v3977_v59 = vsub.f32 %v10297_v46, %v3976_v55  ;;  %v4058_v29 = vsub.f32 %v10241_v10, %v4057_v58  ;;  %v4038_v46 = vand.u32 4294901760, %v4037_v9  ;;  %v4045_v62 = vand.u32 4294901760, %v4044_v2 }
 0x189   :  { %4537 = vmatmul.mubr.f32.gmra.mrb[74].mxu0 %v3967_v15  ;;  %6734 = vmatprep.subr.bf16.mxu1 %v11674_v20  ;;  %v4071_v15 = vand.u32 4294901760, %v10261_v27  ;;  %v3992_v14 = vsub.f32 %v10330_v35, %v3991_v61  ;;  %v10382_v43 = vsub.f32 %v4995_v0, %v4995_v0  ;;  %v4078_v56 = vand.u32 4294901760, %v10263_v33 }
 0x18a   :  { %6823 = vmatpush1.bf16.msra.mxu0 %v6822_v42  ;;  %4544 = vmatprep.mubr.f32.mxu0 %v3976_v55  ;;  %v3962_v42 = vsub.f32 %v10257_v22, %v3961_v53  ;;  %v4064_v53 = vand.u32 4294901760, %v10243_v44  ;;  %v3978_v5 = vand.u32 4294901760, %v3977_v59  ;;  %v4085_v58 = vand.u32 4294901760, %v10265_v31 }
 0x18b   :  { %6824 = vmatprep.subr.bf16.mxu0 %v11674_v20  ;;  %v4998_v9 = vsel %vm368_vm9, 1.0, %v11653_v28  ;;  %v4999_v0 = vsel %vm369_vm0, 1.0, %v11653_v28  ;;  %v4052_v36 = vand.u32 4294901760, %v4051_v16  ;;  %v4059_v13 = vand.u32 4294901760, %v4058_v29 }
 0x18c   :  { %6736 = vmatpush1.bf16.msk.msra.mxu1 %vm10252_vm11, %v11045_v37  ;;  %v3963_v55 = vand.u32 4294901760, %v3962_v42  ;;  %v3998_v42 = vsub.f32 %v10344_v63, %v3997_v19  ;;  %v6744_v2 = vpack.c.bf16 %v4045_v62, %v4038_v46  ;;  %v4065_v59 = vsub.f32 %v10243_v44, %v4064_v53 }
 0x18d   :  { %4548 = vmatmul.mubr.f32.gmra.mrb[76].mxu0 %v3982_v18  ;;  %6737 = vmatprep.subr.bf16.mxu1 %v11674_v20  ;;  %v10389_v18 = vsub.f32 %v4997_v26, %v4997_v26  ;;  %v4072_v12 = vsub.f32 %v10261_v27, %v4071_v15  ;;  %v3993_v28 = vand.u32 4294901760, %v3992_v14  ;;  %v4099_v26 = vand.u32 4294901760, %v10382_v43 }
 0x18e   :  { %6826 = vmatpush1.bf16.msra.mxu0 %v6825_v49  ;;  %4555 = vmatprep.mubr.f32.mxu0 %v3991_v61  ;;  %v3969_v49 = vand.u32 4294901760, %v3968_v47  ;;  %v10387_v47 = vsub.f32 %v4996_v7, %v4996_v7  ;;  %v3984_v61 = vand.u32 4294901760, %v3983_v1  ;;  %v6834_v7 = vpack.c.bf16 %v4085_v58, %v4078_v56 }
 0x18f   :  { %6827 = vmatprep.subr.bf16.mxu0 %v11674_v20  ;;  %3955 = vmatmul.mubr.f32.vlgmr.msra.gmra.mrb[72].mxu1 %v3954_v4  ;;  %v6831_v4 = vpack.c.bf16 %v4071_v15, %v4064_v53  ;;  %v10410_v46 = vsub.f32 %v4999_v0, %v4999_v0  ;;  %v3999_v15 = vand.u32 4294901760, %v3998_v42  ;;  %v4066_v16 = vand.u32 4294901760, %v4065_v59 }
 0x190   :  { %6739 = vmatpush1.bf16.msra.mxu1 %v6738_v54  ;;  %3964 = vmatprep.mubr.f32.mxu1 %v3963_v55  ;;  %v5638_v54 = vpop.f32.mrb[24].mxu0  ;;  %v10407_v55 = vsub.f32 %v4998_v9, %v4998_v9  ;;  %v4073_v29 = vand.u32 4294901760, %v4072_v12  ;;  %v4086_v1 = vsub.f32 %v10265_v31, %v4085_v58 }
 0x191   :  { %4559 = vmatmul.mubr.f32.gmra.mrb[78].mxu0 %v3997_v19  ;;  %6740 = vmatprep.subr.bf16.mxu1 %v11674_v20  ;;  %v5639_v50 = vpop.f32.mrb[25].mxu0  ;;  %v5682_v59 = vpop.f32.mrb[24].mxu1 }
 0x192   :  { %6829 = vmatpush1.bf16.msra.mxu0 %v6828_v3  ;;  %4725 = vmatprep.mubr.f32.mxu0 %v9951_v32  ;;  %v5640_v38 = vadd.f32 %v5639_v50, %v5638_v54  ;;  %v4092_v3 = vand.u32 4294901760, %v10337_v51  ;;  %v5641_v53 = vpop.f32.mrb[26].mxu0 }
 0x193   :  { %6830 = vmatprep.subr.bf16.mxu0 %v11674_v20  ;;  %3970 = vmatmul.mubr.f32.gmra.mrb[74].mxu1 %v3969_v49  ;;  %v4079_v49 = vsub.f32 %v10263_v33, %v4078_v56  ;;  %v4100_v56 = vsub.f32 %v10382_v43, %v4099_v26 }
 0x194   :  { %6742 = vmatpush1.bf16.msra.mxu1 %v6741_v45  ;;  %3979 = vmatprep.mubr.f32.mxu1 %v3978_v5  ;;  %v1897_v19 = vadd.f32 %v5640_v38, %v10292_v60  ;;  %v6747_v5 = vpack.c.bf16 %v4059_v13, %v4052_v36  ;;  %v5642_v45 = vpop.f32.mrb[27].mxu0  ;;  %v6837_v14 = vpack.c.bf16 %v4099_v26, %v4092_v3  ;;  %v4106_v60 = vand.u32 4294901760, %v10387_v47 }
 0x195   :  { %6743 = vmatprep.subr.bf16.mxu1 %v11674_v20  ;;  %v5643_v62 = vadd.f32 %v5642_v45, %v5641_v53  ;;  %v5644_v0 = vpop.f32.mrb[28].mxu0  ;;  %v4093_v54 = vsub.f32 %v10337_v51, %v4092_v3  ;;  %v6750_v36 = vpack.c.bf16 %v4073_v29, %v4066_v16  ;;  %v4080_v13 = vand.u32 4294901760, %v4079_v49 }
 0x196   :  { %6832 = vmatpush1.bf16.msra.mxu0 %v6831_v4  ;;  %v4113_v4 = vand.u32 4294901760, %v10389_v18  ;;  %v5645_v58 = vpop.f32.mrb[29].mxu0  ;;  %v4101_v3 = vand.u32 4294901760, %v4100_v56 }
 0x197   :  { %6833 = vmatprep.subr.bf16.mxu0 %v11674_v20  ;;  %3985 = vmatmul.mubr.f32.gmra.mrb[76].mxu1 %v3984_v61  ;;  %v1912_v9 = vadd.f32 %v5643_v62, %v10324_v40  ;;  %v4087_v61 = vand.u32 4294901760, %v4086_v1  ;;  %v5646_v42 = vadd.f32 %v5645_v58, %v5644_v0  ;;  %v4120_v40 = vand.u32 4294901760, %v10407_v55  ;;  %v5647_v38 = vpop.f32.mrb[30].mxu0 }
 0x198   :  { %6745 = vmatpush1.bf16.msra.mxu1 %v6744_v2  ;;  %3994 = vmatprep.mubr.f32.mxu1 %v3993_v28  ;;  %v6840_v50 = vpack.c.bf16 %v4113_v4, %v4106_v60  ;;  %v4127_v2 = vand.u32 4294901760, %v10410_v46  ;;  %v5683_v28 = vpop.f32.mrb[25].mxu1  ;;  %v5648_v53 = vpop.f32.mrb[31].mxu0  ;;  %v4114_v45 = vsub.f32 %v10389_v18, %v4113_v4 }
 0x199   :  { %6746 = vmatprep.subr.bf16.mxu1 %v11674_v20  ;;  %v1927_v12 = vadd.f32 %v5646_v42, %v10350_v6  ;;  %v5684_v26 = vadd.f32 %v5683_v28, %v5682_v59  ;;  %v5649_v16 = vadd.f32 %v5648_v53, %v5647_v38  ;;  %v5685_v1 = vpop.f32.mrb[26].mxu1  ;;  %v4121_v0 = vsub.f32 %v10407_v55, %v4120_v40  ;;  %v11676_v28 = vld [vmem:[#allocation59_spill] sm:$0xff] }
 0x19a   :  { %6835 = vmatpush1.bf16.msra.mxu0 %v6834_v7  ;;  %v4094_v7 = vand.u32 4294901760, %v4093_v54  ;;  %v6843_v29 = vpack.c.bf16 %v4127_v2, %v4120_v40  ;;  %v5686_v62 = vpop.f32.mrb[27].mxu1  ;;  %v4115_v56 = vand.u32 4294901760, %v4114_v45  ;;  %v4128_v4 = vsub.f32 %v10410_v46, %v4127_v2  ;;  %v11680_v53 = vld [vmem:[#allocation31_spill] sm:$0xff] }
 0x19b   :  { %6836 = vmatprep.subr.bf16.mxu0 %v11674_v20  ;;  %4000 = vmatmul.mubr.f32.gmra.mrb[78].mxu1 %v3999_v15  ;;  %v4107_v15 = vsub.f32 %v10387_v47, %v4106_v60  ;;  %v2174_v49 = vadd.f32 %v5684_v26, %v1897_v19  ;;  %v1942_v6 = vadd.f32 %v5649_v16, %v10375_v30  ;;  %v5688_v19 = vpop.f32.mrb[28].mxu1  ;;  %v11679_v26 = vld [vmem:[#allocation52_spill] sm:$0xff] }
 0x19c   :  { %6748 = vmatpush1.bf16.msra.mxu1 %v6747_v5  ;;  %4230 = vmatprep.mubr.f32.mxu1 %v9951_v32  ;;  %v6753_v5 = vpack.c.bf16 %v4087_v61, %v4080_v13  ;;  %v5687_v54 = vadd.f32 %v5686_v62, %v5685_v1  ;;  %v4122_v61 = vand.u32 4294901760, %v4121_v0  ;;  %v4129_v42 = vand.u32 4294901760, %v4128_v4 }
 0x19d   :  { %6749 = vmatprep.subr.bf16.mxu1 %v11674_v20  ;;  %v4108_v60 = vand.u32 4294901760, %v4107_v15  ;;  %v6771_v1 = vpack.c.bf16 %v10177_v21, %v10164_v11  ;;  %v6774_v11 = vpack.c.bf16 %v10241_v10, %v10230_v23  ;;  %v6777_v10 = vpack.c.bf16 %v10261_v27, %v10243_v44 }
 0x19e   :  { %6838 = vmatpush1.bf16.msra.mxu0 %v6837_v14  ;;  %v6756_v14 = vpack.c.bf16 %v4101_v3, %v4094_v7  ;;  %v2181_v58 = vadd.f32 %v5687_v54, %v1912_v9  ;;  %v6762_v59 = vpack.c.bf16 %v4129_v42, %v4122_v61  ;;  %v6780_v44 = vpack.c.bf16 %v10265_v31, %v10263_v33 }
 0x19f   :  { %6839 = vmatprep.subr.bf16.mxu0 %v11674_v20  ;;  %v6759_v30 = vpack.c.bf16 %v4115_v56, %v4108_v60 }
 0x1a0   :  { %6751 = vmatpush1.bf16.msra.mxu1 %v6750_v36  ;;  %v5689_v36 = vpop.f32.mrb[29].mxu1 }
 0x1a1   :  { %6752 = vmatprep.subr.bf16.mxu1 %v11674_v20  ;;  %v5690_v13 = vadd.f32 %v5689_v36, %v5688_v19  ;;  %v5691_v40 = vpop.f32.mrb[30].mxu1  ;;  %v11685_v19 = vld [vmem:[#allocation23_spill] sm:$0xff] }
 0x1a2   :  { %6841 = vmatpush1.bf16.msra.mxu0 %v6840_v50  ;;  %v5692_v9 = vpop.f32.mrb[31].mxu1 }
 0x1a3   :  { %6842 = vmatprep.subr.bf16.mxu0 %v11674_v20  ;;  %v2188_v50 = vadd.f32 %v5690_v13, %v1927_v12  ;;  %v5693_v2 = vadd.f32 %v5692_v9, %v5691_v40  ;;  %v6765_v12 = vpack.c.bf16 %v10153_v34, %v10151_v17  ;;  %v6768_v17 = vpack.c.bf16 %v11680_v53, %v11679_v26  ;;  %v11681_v34 = vld [vmem:[#allocation34_spill] sm:$0xff]  ;;  %v11690_v53 = vld [vmem:[#allocation17_spill] sm:$0xff] }
 0x1a4   :  { %6754 = vmatpush1.bf16.msra.mxu1 %v6753_v5 }
 0x1a5   :  { %6755 = vmatprep.subr.bf16.mxu1 %v11674_v20  ;;  %v2195_v8 = vadd.f32 %v5693_v2, %v1942_v6 }
 0x1a6   :  { %6844 = vmatpush1.bf16.msra.mxu0 %v6843_v29 }
 0x1a7   :  { %6845 = vmatprep.subr.bf16.mxu0 %v11674_v20 }
 0x1a8   :  { %6757 = vmatpush1.bf16.msra.mxu1 %v6756_v14 }
 0x1a9   :  { %4727 = vmatmul.mubr.f32.vlgmr.msra.gmra.mrb[72].mxu0 %v10160_v25  ;;  %6758 = vmatprep.subr.bf16.mxu1 %v11674_v20 }
 0x1aa   :  { %6847 = vmatpush1.bf16.msk.msra.mxu0 %vm9899_vm1, %v11045_v37  ;;  %4732 = vmatprep.mubr.f32.mxu0 %v10198_v57  ;;  %v5726_v7 = vpop.f32.mrb[32].mxu0 }
 0x1ab   :  { %6848 = vmatprep.subr.bf16.mxu0 %v11674_v20  ;;  %v5727_v3 = vpop.f32.mrb[33].mxu0 }
 0x1ac   :  { %6760 = vmatpush1.bf16.msra.mxu1 %v6759_v30  ;;  %v5728_v5 = vadd.f32 %v5727_v3, %v5726_v7  ;;  %v6786_v3 = vpack.c.bf16 %v10389_v18, %v10387_v47  ;;  %v11688_v47 = vld [vmem:[#allocation58_spill] sm:$0xff] }
 0x1ad   :  { %4734 = vmatmul.mubr.f32.gmra.mrb[74].mxu0 %v10228_v48  ;;  %6761 = vmatprep.subr.bf16.mxu1 %v11674_v20 }
 0x1ae   :  { %6850 = vmatpush1.bf16.msk.msra.mxu0 %vm9936_vm4, %v11045_v37  ;;  %4739 = vmatprep.mubr.f32.mxu0 %v10259_v41  ;;  %v2333_v45 = vadd.f32 %v5728_v5, %v2174_v49  ;;  %v5729_v16 = vpop.f32.mrb[34].mxu0 }
 0x1af   :  { %6851 = vmatprep.subr.bf16.mxu0 %v11674_v20  ;;  %v5730_v29 = vpop.f32.mrb[35].mxu0 }
 0x1b0   :  { %6763 = vmatpush1.bf16.msra.mxu1 %v6762_v59  ;;  %v5731_v6 = vadd.f32 %v5730_v29, %v5729_v16 }
 0x1b1   :  { %4741 = vmatmul.mubr.f32.gmra.mrb[76].mxu0 %v11676_v28  ;;  %6764 = vmatprep.subr.bf16.mxu1 %v11674_v20 }
 0x1b2   :  { %6853 = vmatpush1.bf16.msk.msra.mxu0 %vm9973_vm10, %v11045_v37  ;;  %4746 = vmatprep.mubr.f32.mxu0 %v11678_v39  ;;  %v2342_v49 = vadd.f32 %v5731_v6, %v2181_v58  ;;  %v5732_v14 = vpop.f32.mrb[36].mxu0 }
 0x1b3   :  { %6854 = vmatprep.subr.bf16.mxu0 %v11674_v20  ;;  %4232 = vmatmul.mubr.f32.vlgmr.msra.gmra.mrb[72].mxu1 %v10160_v25 }
 0x1b4   :  { %6766 = vmatpush1.bf16.msra.mxu1 %v6765_v12  ;;  %4237 = vmatprep.mubr.f32.mxu1 %v10198_v57  ;;  %v5770_v54 = vpop.f32.mrb[32].mxu1 }
 0x1b5   :  { %4748 = vmatmul.mubr.f32.gmra.mrb[78].mxu0 %v11681_v34  ;;  %6767 = vmatprep.subr.bf16.mxu1 %v11674_v20  ;;  %v5771_v56 = vpop.f32.mrb[33].mxu1 }
 0x1b6   :  { %6856 = vmatpush1.bf16.msk.msra.mxu0 %vm10008_vm12, %v11045_v37  ;;  %4850 = vmatprep.mubr.f32.mxu0 %v9951_v32  ;;  %v5733_v32 = vpop.f32.mrb[37].mxu0  ;;  %v5772_v58 = vadd.f32 %v5771_v56, %v5770_v54 }
 0x1b7   :  { %6857 = vmatprep.subr.bf16.mxu0 %v11674_v20  ;;  %4239 = vmatmul.mubr.f32.gmra.mrb[74].mxu1 %v10228_v48  ;;  %v5734_v21 = vadd.f32 %v5733_v32, %v5732_v14  ;;  %v5735_v4 = vpop.f32.mrb[38].mxu0 }
 0x1b8   :  { %6769 = vmatpush1.bf16.msra.mxu1 %v6768_v17  ;;  %4244 = vmatprep.mubr.f32.mxu1 %v10259_v41  ;;  %v5736_v23 = vpop.f32.mrb[39].mxu0  ;;  %v2468_v30 = vadd.f32 %v5772_v58, %v2333_v45  ;;  %v5773_v61 = vpop.f32.mrb[34].mxu1 }
 0x1b9   :  { %6770 = vmatprep.subr.bf16.mxu1 %v11674_v20  ;;  %v2351_v60 = vadd.f32 %v5734_v21, %v2188_v50  ;;  %v5737_v36 = vadd.f32 %v5736_v23, %v5735_v4  ;;  %v5774_v50 = vpop.f32.mrb[35].mxu1 }
 0x1ba   :  { %6859 = vmatpush1.bf16.msk.msra.mxu0 %vm10042_vm15, %v11045_v37  ;;  %v5775_v40 = vadd.f32 %v5774_v50, %v5773_v61 }
 0x1bb   :  { %6860 = vmatprep.subr.bf16.mxu0 %v11674_v20  ;;  %4246 = vmatmul.mubr.f32.gmra.mrb[76].mxu1 %v11676_v28  ;;  %v2360_v42 = vadd.f32 %v5737_v36, %v2195_v8  ;;  %v6783_v8 = vpack.c.bf16 %v10382_v43, %v10337_v51 }
 0x1bc   :  { %6772 = vmatpush1.bf16.msra.mxu1 %v6771_v1  ;;  %4251 = vmatprep.mubr.f32.mxu1 %v11678_v39  ;;  %v2479_v9 = vadd.f32 %v5775_v40, %v2342_v49  ;;  %v5776_v2 = vpop.f32.mrb[36].mxu1 }
 0x1bd   :  { %6773 = vmatprep.subr.bf16.mxu1 %v11674_v20  ;;  %v5777_v59 = vpop.f32.mrb[37].mxu1 }
 0x1be   :  { %6862 = vmatpush1.bf16.msk.msra.mxu0 %vm10073_vm7, %v11045_v37  ;;  %v5778_v12 = vadd.f32 %v5777_v59, %v5776_v2 }
 0x1bf   :  { %6863 = vmatprep.subr.bf16.mxu0 %v11674_v20  ;;  %4253 = vmatmul.mubr.f32.gmra.mrb[78].mxu1 %v11681_v34 }
 0x1c0   :  { %6775 = vmatpush1.bf16.msra.mxu1 %v6774_v11  ;;  %4388 = vmatprep.mubr.f32.mxu1 %v11685_v19  ;;  %v2490_v33 = vadd.f32 %v5778_v12, %v2351_v60  ;;  %v5779_v31 = vpop.f32.mrb[38].mxu1 }
 0x1c1   :  { %6776 = vmatprep.subr.bf16.mxu1 %v11674_v20  ;;  %v5780_v38 = vpop.f32.mrb[39].mxu1 }
 0x1c2   :  { %6865 = vmatpush1.bf16.msk.msra.mxu0 %vm10130_vm5, %v11045_v37  ;;  %v5781_v7 = vadd.f32 %v5780_v38, %v5779_v31 }
 0x1c3   :  { %6866 = vmatprep.subr.bf16.mxu0 %v11674_v20 }
 0x1c4   :  { %6778 = vmatpush1.bf16.msra.mxu1 %v6777_v10  ;;  %v2501_v51 = vadd.f32 %v5781_v7, %v2360_v42 }
 0x1c5   :  { %6779 = vmatprep.subr.bf16.mxu1 %v11674_v20 }
 0x1c6   :  { %6868 = vmatpush1.bf16.msk.msra.mxu0 %vm10194_vm2, %v11045_v37 }
 0x1c7   :  { %6869 = vmatprep.subr.bf16.mxu0 %v11674_v20 }
 0x1c8   :  { %6781 = vmatpush1.bf16.msra.mxu1 %v6780_v44 }
 0x1c9   :  { %6782 = vmatprep.subr.bf16.mxu1 %v11674_v20 }
 0x1ca   :  { %6871 = vmatpush1.bf16.msk.msra.mxu0 %vm10252_vm11, %v11045_v37  ;;  %v6789_v37 = vpack.c.bf16 %v10410_v46, %v10407_v55  ;;  %v5814_v24 = vpop.f32.mrb[40].mxu0 }
 0x1cc   :  { %6784 = vmatpush1.bf16.msra.mxu1 %v6783_v8 }
 0x1cd   :  { %4852 = vmatmul.mubr.f32.vlgmr.msra.gmra.mrb[72].mxu0 %v10160_v25  ;;  %6785 = vmatprep.subr.bf16.mxu1 %v11674_v20  ;;  %v5815_v25 = vpop.f32.mrb[41].mxu0 }
 0x1ce   :  { %4857 = vmatprep.mubr.f32.mxu0 %v10198_v57  ;;  %v5816_v43 = vadd.f32 %v5815_v25, %v5814_v24  ;;  %v5817_v18 = vpop.f32.mrb[42].mxu0 }
 0x1d0   :  { %6787 = vmatpush1.bf16.msra.mxu1 %v6786_v3  ;;  %v2669_v57 = vadd.f32 %v5816_v43, %v2468_v30 }
 0x1d1   :  { %4859 = vmatmul.mubr.f32.gmra.mrb[74].mxu0 %v10228_v48  ;;  %6788 = vmatprep.subr.bf16.mxu1 %v11674_v20  ;;  %v5818_v48 = vpop.f32.mrb[43].mxu0 }
 0x1d2   :  { %4864 = vmatprep.mubr.f32.mxu0 %v10259_v41  ;;  %v5819_v20 = vadd.f32 %v5818_v48, %v5817_v18  ;;  %v11689_v41 = vld [vmem:[#allocation15_spill] sm:$0xff] }
 0x1d3   :  { %v5820_v46 = vpop.f32.mrb[44].mxu0 }
 0x1d4   :  { %6790 = vmatpush1.bf16.msra.mxu1 %v6789_v37  ;;  %v2676_v55 = vadd.f32 %v5819_v20, %v2479_v9  ;;  %v5821_v26 = vpop.f32.mrb[45].mxu0 }
 0x1d5   :  { %4866 = vmatmul.mubr.f32.gmra.mrb[76].mxu0 %v11676_v28  ;;  %v5822_v28 = vadd.f32 %v5821_v26, %v5820_v46 }
 0x1d6   :  { %4871 = vmatprep.mubr.f32.mxu0 %v11678_v39 }
 0x1d7   :  { %4391 = vmatmul.mubr.f32.vlgmr.msra.gmra.mrb[72].mxu1 %v11688_v47  ;;  %v2683_v39 = vadd.f32 %v5822_v28, %v2490_v33 }
 0x1d8   :  { %4397 = vmatprep.mubr.f32.mxu1 %v10257_v22  ;;  %v5858_v17 = vpop.f32.mrb[40].mxu1 }
 0x1d9   :  { %4873 = vmatmul.mubr.f32.gmra.mrb[78].mxu0 %v11681_v34  ;;  %v5859_v5 = vpop.f32.mrb[41].mxu1 }
 0x1da   :  { %v5860_v45 = vadd.f32 %v5859_v5, %v5858_v17 }
 0x1db   :  { %4400 = vmatmul.mubr.f32.gmra.mrb[74].mxu1 %v11689_v41  ;;  %v5823_v15 = vpop.f32.mrb[46].mxu0 }
 0x1dc   :  { %4406 = vmatprep.mubr.f32.mxu1 %v11690_v53  ;;  %v5824_v16 = vpop.f32.mrb[47].mxu0  ;;  %v2794_v34 = vadd.f32 %v5860_v45, %v2669_v57  ;;  %v5861_v29 = vpop.f32.mrb[42].mxu1 }
 0x1dd   :  { %v5825_v22 = vadd.f32 %v5824_v16, %v5823_v15  ;;  %v5862_v6 = vpop.f32.mrb[43].mxu1 }
 0x1de   :  { %v5863_v62 = vadd.f32 %v5862_v6, %v5861_v29 }
 0x1df   :  { %4409 = vmatmul.mubr.f32.gmra.mrb[76].mxu1 %v10315_v52  ;;  %v2690_v1 = vadd.f32 %v5825_v22, %v2501_v51 }
 0x1e0   :  { %4415 = vmatprep.mubr.f32.mxu1 %v10330_v35  ;;  %v2801_v49 = vadd.f32 %v5863_v62, %v2676_v55  ;;  %v5864_v14 = vpop.f32.mrb[44].mxu1 }
 0x1e1   :  { %v5865_v32 = vpop.f32.mrb[45].mxu1 }
 0x1e2   :  { %v5866_v11 = vadd.f32 %v5865_v32, %v5864_v14 }
 0x1e3   :  { %4418 = vmatmul.mubr.f32.gmra.mrb[78].mxu1 %v10344_v63 }
 0x1e4   :  { %v2808_v21 = vadd.f32 %v5866_v11, %v2683_v39  ;;  %v5867_v0 = vpop.f32.mrb[46].mxu1 }
 0x1e5   :  { %v5868_v52 = vpop.f32.mrb[47].mxu1 }
 0x1e6   :  { %v5869_v54 = vadd.f32 %v5868_v52, %v5867_v0 }
 0x1e8   :  { %v2815_v60 = vadd.f32 %v5869_v54, %v2690_v1 }
 0x1f1   :  { %v5902_v56 = vpop.f32.mrb[48].mxu0 }
 0x1f2   :  { %v5903_v4 = vpop.f32.mrb[49].mxu0 }
 0x1f3   :  { %v5904_v35 = vadd.f32 %v5903_v4, %v5902_v56 }
 0x1f5   :  { %v2927_v58 = vadd.f32 %v5904_v35, %v2794_v34 }
 0x1f6   :  { %v5905_v23 = vpop.f32.mrb[50].mxu0 }
 0x1f7   :  { %v5906_v10 = vpop.f32.mrb[51].mxu0 }
 0x1f8   :  { %v5907_v19 = vadd.f32 %v5906_v10, %v5905_v23 }
 0x1fa   :  { %v2942_v36 = vadd.f32 %v5907_v19, %v2801_v49 }
 0x1fb   :  { %v5908_v13 = vpop.f32.mrb[52].mxu0 }
 0x1fc   :  { %v5909_v63 = vpop.f32.mrb[53].mxu0 }
 0x1fd   :  { %v5910_v30 = vadd.f32 %v5909_v63, %v5908_v13  ;;  %v5946_v61 = vpop.f32.mrb[48].mxu1 }
 0x1fe   :  { %v5947_v50 = vpop.f32.mrb[49].mxu1 }
 0x1ff   :  { %v2957_v42 = vadd.f32 %v5910_v30, %v2808_v21  ;;  %v5911_v40 = vpop.f32.mrb[54].mxu0  ;;  %v5948_v44 = vadd.f32 %v5947_v50, %v5946_v61 }
 0x200   :  { %v5912_v27 = vpop.f32.mrb[55].mxu0 }
 0x201   :  { %v5913_v9 = vadd.f32 %v5912_v27, %v5911_v40  ;;  %v3204_v2 = vadd.f32 %v5948_v44, %v2927_v58  ;;  %v5949_v59 = vpop.f32.mrb[50].mxu1 }
 0x202   :  { %v5950_v8 = vpop.f32.mrb[51].mxu1 }
 0x203   :  { %v2972_v12 = vadd.f32 %v5913_v9, %v2815_v60  ;;  %v5951_v33 = vadd.f32 %v5950_v8, %v5949_v59 }
 0x205   :  { %v3211_v31 = vadd.f32 %v5951_v33, %v2942_v36  ;;  %v5952_v38 = vpop.f32.mrb[52].mxu1 }
 0x206   :  { %v5953_v7 = vpop.f32.mrb[53].mxu1 }
 0x207   :  { %v5954_v3 = vadd.f32 %v5953_v7, %v5952_v38 }
 0x209   :  { %v3218_v51 = vadd.f32 %v5954_v3, %v2957_v42  ;;  %v5955_v37 = vpop.f32.mrb[54].mxu1 }
 0x20a   :  { %v5956_v24 = vpop.f32.mrb[55].mxu1 }
 0x20b   :  { %v5957_v25 = vadd.f32 %v5956_v24, %v5955_v37 }
 0x20d   :  { %v3225_v43 = vadd.f32 %v5957_v25, %v2972_v12 }
 0x214   :  { %v5990_v57 = vpop.f32.mrb[56].mxu0 }
 0x215   :  { %v5991_v47 = vpop.f32.mrb[57].mxu0 }
 0x216   :  { %v5992_v18 = vadd.f32 %v5991_v47, %v5990_v57 }
 0x218   :  { %v3363_v48 = vadd.f32 %v5992_v18, %v3204_v2  ;;  %v5993_v20 = vpop.f32.mrb[58].mxu0 }
 0x219   :  { %v5994_v55 = vpop.f32.mrb[59].mxu0 }
 0x21a   :  { %v5995_v41 = vadd.f32 %v5994_v55, %v5993_v20 }
 0x21c   :  { %v3372_v46 = vadd.f32 %v5995_v41, %v3211_v31  ;;  %v5996_v26 = vpop.f32.mrb[60].mxu0 }
 0x21d   :  { %v5997_v53 = vpop.f32.mrb[61].mxu0 }
 0x21e   :  { %v5998_v28 = vadd.f32 %v5997_v53, %v5996_v26  ;;  %v6034_v17 = vpop.f32.mrb[56].mxu1 }
 0x21f   :  { %v6035_v5 = vpop.f32.mrb[57].mxu1 }
 0x220   :  { %v3381_v39 = vadd.f32 %v5998_v28, %v3218_v51  ;;  %v5999_v15 = vpop.f32.mrb[62].mxu0  ;;  %v6036_v45 = vadd.f32 %v6035_v5, %v6034_v17 }
 0x221   :  { %v6000_v16 = vpop.f32.mrb[63].mxu0 }
 0x222   :  { %v6001_v22 = vadd.f32 %v6000_v16, %v5999_v15  ;;  %v3498_v34 = vadd.f32 %v6036_v45, %v3363_v48  ;;  %v6037_v29 = vpop.f32.mrb[58].mxu1 }
 0x223   :  { %v6038_v6 = vpop.f32.mrb[59].mxu1 }
 0x224   :  { %v3390_v1 = vadd.f32 %v6001_v22, %v3225_v43  ;;  %v6039_v62 = vadd.f32 %v6038_v6, %v6037_v29 }
 0x226   :  { %v3509_v49 = vadd.f32 %v6039_v62, %v3372_v46  ;;  %v6040_v14 = vpop.f32.mrb[60].mxu1 }
 0x227   :  { %v6041_v32 = vpop.f32.mrb[61].mxu1 }
 0x228   :  { %v6042_v11 = vadd.f32 %v6041_v32, %v6040_v14 }
 0x22a   :  { %v3520_v21 = vadd.f32 %v6042_v11, %v3381_v39  ;;  %v6043_v0 = vpop.f32.mrb[62].mxu1 }
 0x22b   :  { %v6044_v52 = vpop.f32.mrb[63].mxu1 }
 0x22c   :  { %v6045_v54 = vadd.f32 %v6044_v52, %v6043_v0 }
 0x22e   :  { %v3531_v60 = vadd.f32 %v6045_v54, %v3390_v1 }
 0x234   :  { %v6078_v56 = vpop.f32.mrb[64].mxu0 }
 0x235   :  { %v6079_v4 = vpop.f32.mrb[65].mxu0 }
 0x236   :  { %v6080_v35 = vadd.f32 %v6079_v4, %v6078_v56 }
 0x238   :  { %v3699_v58 = vadd.f32 %v6080_v35, %v3498_v34  ;;  %v6081_v23 = vpop.f32.mrb[66].mxu0 }
 0x239   :  { %v6082_v10 = vpop.f32.mrb[67].mxu0 }
 0x23a   :  { %v6083_v19 = vadd.f32 %v6082_v10, %v6081_v23 }
 0x23c   :  { %v3706_v36 = vadd.f32 %v6083_v19, %v3509_v49  ;;  %v6084_v13 = vpop.f32.mrb[68].mxu0 }
 0x23d   :  { %v6085_v63 = vpop.f32.mrb[69].mxu0 }
 0x23e   :  { %v6086_v30 = vadd.f32 %v6085_v63, %v6084_v13  ;;  %v6122_v61 = vpop.f32.mrb[64].mxu1 }
 0x23f   :  { %v6123_v50 = vpop.f32.mrb[65].mxu1 }
 0x240   :  { %v3713_v42 = vadd.f32 %v6086_v30, %v3520_v21  ;;  %v6087_v40 = vpop.f32.mrb[70].mxu0  ;;  %v6124_v44 = vadd.f32 %v6123_v50, %v6122_v61 }
 0x241   :  { %v6088_v27 = vpop.f32.mrb[71].mxu0 }
 0x242   :  { %v6089_v9 = vadd.f32 %v6088_v27, %v6087_v40  ;;  %v6125_v2 = vpop.f32.mrb[66].mxu1  ;;  %v3824_v59 = vadd.f32 %v6124_v44, %v3699_v58 }
 0x243   :  { %v6126_v8 = vpop.f32.mrb[67].mxu1 }
 0x244   :  { %v3720_v12 = vadd.f32 %v6089_v9, %v3531_v60  ;;  %v6127_v33 = vadd.f32 %v6126_v8, %v6125_v2 }
 0x246   :  { %v6128_v31 = vpop.f32.mrb[68].mxu1  ;;  %v3831_v38 = vadd.f32 %v6127_v33, %v3706_v36 }
 0x247   :  { %v6129_v7 = vpop.f32.mrb[69].mxu1 }
 0x248   :  { %v6130_v3 = vadd.f32 %v6129_v7, %v6128_v31 }
 0x24a   :  { %v6131_v51 = vpop.f32.mrb[70].mxu1  ;;  %v3838_v37 = vadd.f32 %v6130_v3, %v3713_v42 }
 0x24b   :  { %v6132_v24 = vpop.f32.mrb[71].mxu1 }
 0x24c   :  { %v6133_v25 = vadd.f32 %v6132_v24, %v6131_v51 }
 0x24e   :  { %v3845_v43 = vadd.f32 %v6133_v25, %v3720_v12 }
 0x2a0   :  { %v4853_v57 = vpop.f32.mrb[72].mxu0 }
 0x2a1   :  { %v4855_v47 = vpop.f32.mrb[73].mxu0 }
 0x2a4   :  { %v4860_v18 = vpop.f32.mrb[74].mxu0 }
 0x2a5   :  { %v4862_v48 = vpop.f32.mrb[75].mxu0 }
 0x2a8   :  { %v4867_v20 = vpop.f32.mrb[76].mxu0 }
 0x2a9   :  { %v4869_v55 = vpop.f32.mrb[77].mxu0 }
 0x2aa   :  { %v4392_v41 = vpop.f32.mrb[72].mxu1 }
 0x2ab   :  { %v6872_v46 = vadd.f32 %v4392_v41, %v3824_v59  ;;  %v4394_v26 = vpop.f32.mrb[73].mxu1 }
 0x2ac   :  { %v4874_v53 = vpop.f32.mrb[78].mxu0 }
 0x2ad   :  { %v4876_v28 = vpop.f32.mrb[79].mxu0  ;;  %v6873_v17 = vadd.f32 %v6872_v46, %v4853_v57 }
 0x2ae   :  { %v4401_v39 = vpop.f32.mrb[74].mxu1 }
 0x2af   :  { %4878 = vst [vmem:[%s10546_s3] sm:$0xff] %v6873_v17  ;;  %v6874_v5 = vadd.f32 %v4401_v39, %v3831_v38  ;;  %v4403_v15 = vpop.f32.mrb[75].mxu1 }
 0x2b1   :  { %v6875_v45 = vadd.f32 %v6874_v5, %v4860_v18 }
 0x2b2   :  { %v4410_v16 = vpop.f32.mrb[76].mxu1 }
 0x2b3   :  { %4879 = vst [vmem:[%s10546_s3 + $0x8] sm:$0xff] %v6875_v45  ;;  %v6876_v22 = vadd.f32 %v4410_v16, %v3838_v37  ;;  %v4412_v34 = vpop.f32.mrb[77].mxu1 }
 0x2b5   :  { %v6877_v29 = vadd.f32 %v6876_v22, %v4867_v20 }
 0x2b6   :  { %v4419_v1 = vpop.f32.mrb[78].mxu1 }
 0x2b7   :  { %4880 = vst [vmem:[%s10546_s3 + $0x10] sm:$0xff] %v6877_v29  ;;  %v6878_v6 = vadd.f32 %v4419_v1, %v3845_v43  ;;  %v4421_v62 = vpop.f32.mrb[79].mxu1 }
 0x2b9   :  { %v6879_v49 = vadd.f32 %v6878_v6, %v4874_v53 }
 0x2bb   :  { %4881 = vst [vmem:[%s10546_s3 + $0x18] sm:$0xff] %v6879_v49 }

</bundles_post_ra>
